<compile_context>
chip_gen: v5e
topology: v5e:2x2
jax: 0.10.0
libtpu: 0.0.40
codegen_flags: <defaults>
</compile_context>

<pallas_src>
import math

import jax
import jax.numpy as jnp
from jax.experimental import pallas as pl
from jax.experimental.pallas import tpu as pltpu


def _round_up(x: int, m: int) -> int:
    return ((x + m - 1) // m) * m


# ----------------------------------------------------------------------------
# Tile selection: roofline-ish score = adjacency HBM bytes + per-step overhead.
# Prefers >=2 row blocks (v7x megacore 'parallel' split) and limits the
# lcm(tm, tk) over-padding of N, since adjacency bytes scale with n_pad^2.
# ----------------------------------------------------------------------------
_TILE_SIZES = tuple(128 * m for m in (1, 2, 3, 4, 5, 6, 7, 8, 10, 12, 16))
_STEP_OVERHEAD_S = 0.35e-6   # measured per-grid-step pipeline overhead
_HBM_BW = 1.2e12             # rough cross-generation figure; ranking only


def _choose_tiles(n, tm_target=512, tk_target=2048):
    tm_target = max(tm_target, 128)
    tk_target = max(tk_target, 128)
    best = None
    n_min = _round_up(max(n, 1), 128)
    for tm in _TILE_SIZES:
        if tm > tm_target:
            continue
        for tk in _TILE_SIZES:
            if tk > tk_target:
                continue
            lcm = tm * tk // math.gcd(tm, tk)
            n_pad = _round_up(n_min, lcm)
            rows = n_pad // tm
            cols = n_pad // tk
            steps = rows * cols
            # v7x has 2 TensorCores; the 'parallel' row axis only splits when
            # there are >= 2 row blocks (HBM is shared, step overhead is not).
            cores = 2 if rows >= 2 else 1
            score = (2.0 * n_pad * n_pad) / _HBM_BW + steps * _STEP_OVERHEAD_S / cores
            key = (score, -tk, -tm)
            if best is None or key < best[0]:
                best = (key, tm, tk, n_pad)
    _, tm, tk, n_pad = best
    return tm, tk, n_pad


# ----------------------------------------------------------------------------
# Pallas kernel: pure aggregation,  out = A @ XW + b
# Grid = (rows/tm  [parallel],  cols(src nodes)/tk  [arbitrary reduction]).
# Output block is resident across k (index_map ignores k) -> accumulate into
# out_ref directly; bias written at k == 0.
# ----------------------------------------------------------------------------
def _gcn_agg_kernel(adj_ref, xw_ref, b_ref, out_ref):
    @pl.when(pl.program_id(1) == 0)
    def _init():
        out_ref[...] = jnp.broadcast_to(b_ref[...], out_ref.shape)

    # bf16 x bf16 MXU matmul with f32 accumulation into the resident block.
    out_ref[...] += jnp.dot(adj_ref[...], xw_ref[...],
                            preferred_element_type=jnp.float32)


def _gcn_aggregate(adj_p, xw_bf16, b_row, *, tm, tk):
    """Aggregation of pre-transformed features on padded, lane-dense operands.

    adj_p:   [n_pad, n_pad] bfloat16 (0/1)
    xw_bf16: [n_pad, f_out] bfloat16 (= H @ W^T, cast)
    b_row:   [1, f_out]     float32
    returns: [n_pad, f_out] float32
    """
    n_pad = adj_p.shape[0]
    f_out = xw_bf16.shape[1]
    grid = (n_pad // tm, n_pad // tk)

    # Advisory cost estimate: adjacency read once, XW re-read per row block.
    flops = 2 * n_pad * n_pad * f_out
    bytes_accessed = (adj_p.size * 2
                      + grid[0] * xw_bf16.size * 2
                      + b_row.size * 4
                      + n_pad * f_out * 4)

    # Double-buffered inputs + double-buffered output; cap at 48 MiB so the
    # same setting is safe on v7x (64 MiB physical VMEM) and v5e/v6e.
    vmem_est = (2 * (tm * tk * 2 + tk * f_out * 2 + f_out * 4)
                + 2 * tm * f_out * 4)
    vmem_limit = int(min(max(2 * vmem_est, 16 << 20), 48 << 20))

    return pl.pallas_call(
        _gcn_agg_kernel,
        out_shape=jax.ShapeDtypeStruct((n_pad, f_out), jnp.float32),
        grid_spec=pltpu.PrefetchScalarGridSpec(
            num_scalar_prefetch=0,
            grid=grid,
            in_specs=[
                pl.BlockSpec((tm, tk), lambda i, k: (i, k)),      # adjacency tile
                pl.BlockSpec((tk, f_out), lambda i, k: (k, 0)),   # XW tile (bf16)
                pl.BlockSpec((1, f_out), lambda i, k: (0, 0)),    # bias row
            ],
            out_specs=pl.BlockSpec((tm, f_out), lambda i, k: (i, 0)),
        ),
        compiler_params=pltpu.CompilerParams(
            dimension_semantics=("parallel", "arbitrary"),
            vmem_limit_bytes=vmem_limit,
        ),
        cost_estimate=pl.CostEstimate(
            flops=int(flops), transcendentals=0,
            bytes_accessed=int(bytes_accessed)),
    )(adj_p, xw_bf16, b_row)


# ----------------------------------------------------------------------------
# Net.forward wrapper: pad to lane-dense/tiled shapes, run two GCN layers.
# ----------------------------------------------------------------------------
def net_forward(adj, features, w1, b1, w2, b2, *, tm_target=512, tk_target=2048):
    """
    adj:      [N, N]   dense adjacency (A[v,u]=1 for edge u->v)
    features: [N, Fin] node features
    w1: [16, Fin], b1: [16]   (PyTorch nn.Linear: y = x @ W^T + b)
    w2: [7, 16],   b2: [7]
    returns:  [N, 7]  float32
    """
    n, _ = features.shape
    hid = w1.shape[0]
    out_dim = w2.shape[0]

    tm, tk, n_pad = _choose_tiles(n, tm_target, tk_target)

    # Lane-dense output dims (pad to 128 -> unmasked vst, full MXU columns).
    hid_pad = _round_up(hid, 128)
    out_pad = _round_up(out_dim, 128)

    # Adjacency pad + bf16 cast (0/1 -> lossless): once per call, shared by
    # both layers.  Cache adj_p externally if running many forwards per graph.
    adj_p = jnp.pad(adj.astype(jnp.bfloat16),
                    ((0, n_pad - n), (0, n_pad - n)))

    h0 = jnp.pad(features.astype(jnp.float32), ((0, n_pad - n), (0, 0)))
    w1t_p = jnp.pad(jnp.transpose(w1).astype(jnp.float32),
                    ((0, 0), (0, hid_pad - hid)))                  # [Fin, hid_pad]
    w2t_p = jnp.pad(jnp.transpose(w2).astype(jnp.float32),
                    ((0, hid_pad - hid), (0, out_pad - out_dim)))  # [hid_pad, out_pad]
    b1_row = jnp.pad(b1.astype(jnp.float32), (0, hid_pad - hid)).reshape(1, hid_pad)
    b2_row = jnp.pad(b2.astype(jnp.float32), (0, out_pad - out_dim)).reshape(1, out_pad)

    # --- GCN layer 1: transform hoisted (tiny f32 XLA matmul, bf16 cast) ---
    xw1 = (h0 @ w1t_p).astype(jnp.bfloat16)                        # [n_pad, hid_pad]
    h1 = _gcn_aggregate(adj_p, xw1, b1_row, tm=tm, tk=tk)          # [n_pad, hid_pad] f32
    # dropout1: eval-mode identity.

    # --- GCN layer 2 ---
    xw2 = (h1 @ w2t_p).astype(jnp.bfloat16)                        # [n_pad, out_pad]
    h2 = _gcn_aggregate(adj_p, xw2, b2_row, tm=tm, tk=tk)          # [n_pad, out_pad] f32
    # dropout2: eval-mode identity.

    return h2[:n, :out_dim]


# ----------------------------------------------------------------------------
# Pure-JAX f32 reference
# ----------------------------------------------------------------------------
def net_forward_ref(adj, features, w1, b1, w2, b2):
    h1 = (adj @ features) @ w1.T + b1
    h2 = (adj @ h1) @ w2.T + b2
    return h2


if __name__ == "__main__":
    key = jax.random.PRNGKey(0)
    k_adj, k_feat, k_w1, k_b1, k_w2, k_b2 = jax.random.split(key, 6)

    # Small synthetic graph; N not a multiple of the tile size to exercise
    # padding, and large enough that the row grid has >1 block.
    N = 777
    GRAPH_FEATURES = 32
    HID = 16
    OUT = 7

    adj = (jax.random.uniform(k_adj, (N, N)) < 0.1).astype(jnp.float32)
    features = jax.random.normal(k_feat, (N, GRAPH_FEATURES), dtype=jnp.float32)

    w1 = jax.random.normal(k_w1, (HID, GRAPH_FEATURES), dtype=jnp.float32) * 0.1
    b1 = jax.random.normal(k_b1, (HID,), dtype=jnp.float32) * 0.1
    w2 = jax.random.normal(k_w2, (OUT, HID), dtype=jnp.float32) * 0.1
    b2 = jax.random.normal(k_b2, (OUT,), dtype=jnp.float32) * 0.1

    fwd = jax.jit(net_forward)
    out = jax.block_until_ready(fwd(adj, features, w1, b1, w2, b2))

    ref = net_forward_ref(adj, features, w1, b1, w2, b2)
    assert out.shape == (N, OUT), out.shape
    # The aggregation uses the bf16 MXU path (bf16 adjacency x bf16 transformed
    # features, f32 accumulation), so compare with a tolerance that absorbs
    # bf16 rounding against the pure-f32 reference.
    rel_err = float(jnp.max(jnp.abs(out - ref)) / (jnp.max(jnp.abs(ref)) + 1e-6))
    assert rel_err < 2e-2, f"relative error too large: {rel_err}"

    print("KERNEL_OK")
</pallas_src>

<mosaic_0001>
module attributes {stable_mosaic.version = 11 : i64} {
  func.func @_gcn_agg_kernel(%arg0: i32, %arg1: i32, %arg2: memref<512x1024xbf16, #tpu.memory_space<vmem>>, %arg3: memref<1024x128xbf16, #tpu.memory_space<vmem>>, %arg4: memref<1x128xf32, #tpu.memory_space<vmem>>, %arg5: memref<512x128xf32, #tpu.memory_space<vmem>>) attributes {dimension_semantics = [#tpu.dimension_semantics<parallel>, #tpu.dimension_semantics<arbitrary>], iteration_bounds = array<i64: 2, 1>, scalar_prefetch = 0 : i64, scratch_operands = 0 : i64, tpu.core_type = #tpu.core_type<tc>, window_params = [{transform_indices = @transform_0, window_bounds = array<i64: 512, 1024>}, {transform_indices = @transform_1, window_bounds = array<i64: 1024, 128>}, {pipeline_mode = #tpu.pipeline_mode<synchronous>, transform_indices = @transform_2, window_bounds = array<i64: 1, 128>}, {transform_indices = @transform_3, window_bounds = array<i64: 512, 128>}]} {
    %c0_i32 = arith.constant 0 : i32
    %0 = arith.cmpi eq, %arg1, %c0_i32 : i32
    %1 = arith.extui %0 : i1 to i32
    %c0_i32_0 = arith.constant 0 : i32
    %2 = arith.cmpi ne, %1, %c0_i32_0 : i32
    scf.if %2 {
      %c0_8 = arith.constant 0 : index
      %c0_9 = arith.constant 0 : index
      %9 = vector.load %arg4[%c0_8, %c0_9] : memref<1x128xf32, #tpu.memory_space<vmem>>, vector<1x128xf32>
      %10 = vector.shape_cast %9 : vector<1x128xf32> to vector<1x128xf32>
      %11 = vector.broadcast %10 : vector<1x128xf32> to vector<512x128xf32>
      %c0_10 = arith.constant 0 : index
      %c0_11 = arith.constant 0 : index
      %12 = vector.load %arg5[%c0_10, %c0_11] : memref<512x128xf32, #tpu.memory_space<vmem>>, vector<512x128xf32>
      tpu.vector_store %arg5[%c0_10, %c0_11], %11 {strides = array<i32>} : memref<512x128xf32, #tpu.memory_space<vmem>>, vector<512x128xf32>,
    } else {
    }
    %c0 = arith.constant 0 : index
    %c0_1 = arith.constant 0 : index
    %3 = vector.load %arg5[%c0, %c0_1] : memref<512x128xf32, #tpu.memory_space<vmem>>, vector<512x128xf32>
    %c0_2 = arith.constant 0 : index
    %c0_3 = arith.constant 0 : index
    %4 = vector.load %arg2[%c0_2, %c0_3] : memref<512x1024xbf16, #tpu.memory_space<vmem>>, vector<512x1024xbf16>
    %c0_4 = arith.constant 0 : index
    %c0_5 = arith.constant 0 : index
    %5 = vector.load %arg3[%c0_4, %c0_5] : memref<1024x128xbf16, #tpu.memory_space<vmem>>, vector<1024x128xbf16>
    %cst = arith.constant dense<0.000000e+00> : vector<512x128xf32>
    %6 = tpu.matmul %4, %5, %cst {dimension_numbers = #tpu.dot_dimension_numbers<[1], [0], [0], [1], [0, 0, 1, 1], [], []>} : vector<512x1024xbf16>, vector<1024x128xbf16>, vector<512x128xf32> -> vector<512x128xf32>
    %7 = arith.addf %3, %6 : vector<512x128xf32>
    %c0_6 = arith.constant 0 : index
    %c0_7 = arith.constant 0 : index
    %8 = vector.load %arg5[%c0_6, %c0_7] : memref<512x128xf32, #tpu.memory_space<vmem>>, vector<512x128xf32>
    tpu.vector_store %arg5[%c0_6, %c0_7], %7 {strides = array<i32>} : memref<512x128xf32, #tpu.memory_space<vmem>>, vector<512x128xf32>,
    return
  }
  func.func @transform_0(%arg0: i32, %arg1: i32) -> (i32, i32) {
    %c0_i32 = arith.constant 0 : i32
    return %arg0, %arg1 : i32, i32
  }
  func.func @transform_1(%arg0: i32, %arg1: i32) -> (i32, i32) {
    %c0_i32 = arith.constant 0 : i32
    %c0_i32_0 = arith.constant 0 : i32
    return %arg1, %c0_i32 : i32, i32
  }
  func.func @transform_2(%arg0: i32, %arg1: i32) -> (i32, i32) {
    %c0_i32 = arith.constant 0 : i32
    %c0_i32_0 = arith.constant 0 : i32
    %c0_i32_1 = arith.constant 0 : i32
    return %c0_i32, %c0_i32_0 : i32, i32
  }
  func.func @transform_3(%arg0: i32, %arg1: i32) -> (i32, i32) {
    %c0_i32 = arith.constant 0 : i32
    %c0_i32_0 = arith.constant 0 : i32
    return %arg0, %c0_i32 : i32, i32
  }
}

</mosaic_0001>

<bundles_post_ra>
// kernel: net_forward.2
= control target key start
LH: loop header
LB: loop body
LE: loop exit
PB: predicated region body
PF: predicated region fallthrough
CT: control target
= control target key end

     0   :  { %s5661_s12 = smov 0   ;;  %s5663_s13 = smov 0   ;;  %s6808_s0 = inlined_call_operand.vmem [shape: bf16[1024,1024], index: 0, kind: input, shape index: {}]   ;;  %s6809_s1 = inlined_call_operand.vmem [shape: bf16[1024,128], index: 1, kind: input, shape index: {}]   ;;  %s6810_s2 = inlined_call_operand.vmem [shape: f32[1,128], index: 2, kind: input, shape index: {}]   ;;  %s6811_s3 = inlined_call_operand.vmem [shape: f32[1024,128], index: 3, kind: output, shape index: {}]  }
   0x1   :  { %s5665_s14 = smov 0  }
   0x2 LB: > { %s25_s15 = sadd.s32 1, %s5635_s13  ;;  %p3982_p0 = scmp.ge.s32.totalorder %s5639_s14, 1  ;;  %s5639_s14 = sphi %s5665_s14, %s13_s14   ;;  %s5635_s13 = sphi %s5663_s13, %s6857_s13   ;;  %s5631_s12 = sphi %s5661_s12, %s6856_s12  }
   0x3   : > { %p27_p1 = scmp.ge.s32.totalorder %s25_s15, 2  ;;  %p169_p2 = scmp.lt.s32.totalorder %s5639_s14, 3 }
   0x5   : > { %s6859_s15 = smov (%p27_p1, %s25_s15), 0  ;;  %p170_p3 = pnand %p3982_p0, %p169_p2 }
   0x7   : > { %173 = sbr.rel (%p170_p3) target bundleno = 1201 (0x4b1), region = 32 }
   0xc   : > { %v5534_v0 = vld [vmem:[%s6809_s1 + $0x38] sm:$0xff]  ;;  %v5533_v4 = vld [vmem:[%s6809_s1 + $0x30] sm:$0xff]  ;;  %v5532_v8 = vld [vmem:[%s6809_s1 + $0x28] sm:$0xff]  ;;  %s3983_s17 = sshll.u32 %s5631_s12, 6 }
   0xd   : > { %v5542_v1 = vld [vmem:[%s6809_s1 + $0x78] sm:$0xff]  ;;  %2411 = vmatpush.bf16.msra.mxu0 %v5534_v0  ;;  %v5541_v5 = vld [vmem:[%s6809_s1 + $0x70] sm:$0xff]  ;;  %v5540_v9 = vld [vmem:[%s6809_s1 + $0x68] sm:$0xff]  ;;  %p205_p4 = scmp.lt.s32.totalorder %s3983_s17, 127 }
   0xe   : > { %v5550_v2 = vld [vmem:[%s6809_s1 + $0xb8] sm:$0xff]  ;;  %2580 = vmatpush.bf16.msra.mxu1 %v5542_v1  ;;  %v5549_v6 = vld [vmem:[%s6809_s1 + $0xb0] sm:$0xff]  ;;  %v5548_v10 = vld [vmem:[%s6809_s1 + $0xa8] sm:$0xff] }
   0xf   : > { %v5558_v3 = vld [vmem:[%s6809_s1 + $0xf8] sm:$0xff]  ;;  %2749 = vmatpush.bf16.msra.mxu2 %v5550_v2  ;;  %v5557_v7 = vld [vmem:[%s6809_s1 + $0xf0] sm:$0xff]  ;;  %v5556_v11 = vld [vmem:[%s6809_s1 + $0xe8] sm:$0xff]  ;;  %s6861_s17 = smov (!%p205_p4, %s3983_s17), 127 }
  0x10   : > { %2918 = vmatpush.bf16.msra.mxu3 %v5558_v3  ;;  %v5531_v12 = vld [vmem:[%s6809_s1 + $0x20] sm:$0xff]  ;;  %v5530_v16 = vld [vmem:[%s6809_s1 + $0x18] sm:$0xff]  ;;  %v5529_v20 = vld [vmem:[%s6809_s1 + $0x10] sm:$0xff]  ;;  %s5270_s19 = sshll.u32 %s6861_s17, 5  ;;  %s3987_s9 = sshll.u32 %s6861_s17, 3 }
  0x11   : > { %2412 = vmatpush.bf16.msra.mxu0 %v5533_v4  ;;  %v5539_v13 = vld [vmem:[%s6809_s1 + $0x60] sm:$0xff]  ;;  %v5538_v17 = vld [vmem:[%s6809_s1 + $0x58] sm:$0xff]  ;;  %v5537_v21 = vld [vmem:[%s6809_s1 + $0x50] sm:$0xff]  ;;  %s5766_s12 = scalar_lea.vmem %s6808_s0, %s5270_s19  ;;  %s6323_s19 = scalar_lea.vmem %s6811_s3, %s3987_s9 }
  0x12   : > { %2581 = vmatpush.bf16.msra.mxu1 %v5541_v5  ;;  %v5547_v14 = vld [vmem:[%s6809_s1 + $0xa0] sm:$0xff]  ;;  %v5546_v18 = vld [vmem:[%s6809_s1 + $0x98] sm:$0xff]  ;;  %v5545_v22 = vld [vmem:[%s6809_s1 + $0x90] sm:$0xff] }
  0x13   : > { %2750 = vmatpush.bf16.msra.mxu2 %v5549_v6  ;;  %v5555_v15 = vld [vmem:[%s6809_s1 + $0xe0] sm:$0xff]  ;;  %v5554_v19 = vld [vmem:[%s6809_s1 + $0xd8] sm:$0xff]  ;;  %v5553_v23 = vld [vmem:[%s6809_s1 + $0xd0] sm:$0xff] }
  0x14   : > { %2919 = vmatpush.bf16.msra.mxu3 %v5557_v7  ;;  %v5528_v24 = vld [vmem:[%s6809_s1 + $0x8] sm:$0xff]  ;;  %v5527_v28 = vld [vmem:[%s6809_s1] sm:$0xff]  ;;  %v5582_v40 = vld [vmem:[%s6809_s1 + $0x1b8] sm:$0xff] }
  0x15   : > { %2413 = vmatpush.bf16.msra.mxu0 %v5532_v8  ;;  %v5536_v25 = vld [vmem:[%s6809_s1 + $0x48] sm:$0xff]  ;;  %v5535_v29 = vld [vmem:[%s6809_s1 + $0x40] sm:$0xff]  ;;  %v5566_v41 = vld [vmem:[%s6809_s1 + $0x138] sm:$0xff] }
  0x16   : > { %2582 = vmatpush.bf16.msra.mxu1 %v5540_v9  ;;  %v5544_v26 = vld [vmem:[%s6809_s1 + $0x88] sm:$0xff]  ;;  %v5543_v30 = vld [vmem:[%s6809_s1 + $0x80] sm:$0xff]  ;;  %v5590_v46 = vld [vmem:[%s6809_s1 + $0x1f8] sm:$0xff] }
  0x17   : > { %2751 = vmatpush.bf16.msra.mxu2 %v5548_v10  ;;  %v5552_v27 = vld [vmem:[%s6809_s1 + $0xc8] sm:$0xff]  ;;  %v5551_v31 = vld [vmem:[%s6809_s1 + $0xc0] sm:$0xff]  ;;  %v5574_v47 = vld [vmem:[%s6809_s1 + $0x178] sm:$0xff] }
  0x18   : > { %2920 = vmatpush.bf16.msra.mxu3 %v5556_v11  ;;  %v3990_v32 = vld [vmem:[%s5766_s12] sm:$0xf]  ;;  %v5271_v34 = vld [vmem:[%s5766_s12 + $0x4] sm:$0xf]  ;;  %v3998_v36 = vld [vmem:[%s5766_s12 + $0x8] sm:$0xf] }
  0x19   : > { %2414 = vmatpush.bf16.msra.mxu0 %v5531_v12  ;;  %v5275_v33 = vld [vmem:[%s5766_s12 + $0x1c] sm:$0xf0]  ;;  %v3992_v35 = vld [vmem:[%s5766_s12 + $0x20] sm:$0xf0]  ;;  %v5276_v37 = vld [vmem:[%s5766_s12 + $0x24] sm:$0xf0] }
  0x1a   : > { %2583 = vmatpush.bf16.msra.mxu1 %v5539_v13  ;;  %v5272_v38 = vld [vmem:[%s5766_s12 + $0xc] sm:$0xf]  ;;  %v3991_v42 = vor.u32 %v5275_v33, %v3990_v32  ;;  %v3995_v43 = vor.u32 %v5271_v34, %v3992_v35  ;;  %v3999_v44 = vor.u32 %v5276_v37, %v3998_v36  ;;  %v4022_v48 = vld [vmem:[%s5766_s12 + $0x40] sm:$0xf]  ;;  %v5279_v50 = vld [vmem:[%s5766_s12 + $0x44] sm:$0xf] }
  0x1b   : > { %2752 = vmatpush.bf16.msra.mxu2 %v5547_v14  ;;  %v4000_v39 = vld [vmem:[%s5766_s12 + $0x28] sm:$0xf0]  ;;  %v5283_v49 = vld [vmem:[%s5766_s12 + $0x5c] sm:$0xf0]  ;;  %v4024_v51 = vld [vmem:[%s5766_s12 + $0x60] sm:$0xf0] }
  0x1c   : > { %2921 = vmatpush.bf16.msra.mxu3 %v5555_v15  ;;  %v4003_v45 = vor.u32 %v5272_v38, %v4000_v39  ;;  %v4030_v52 = vld [vmem:[%s5766_s12 + $0x48] sm:$0xf]  ;;  %v5280_v54 = vld [vmem:[%s5766_s12 + $0x4c] sm:$0xf]  ;;  %v4023_v56 = vor.u32 %v5283_v49, %v4022_v48  ;;  %v4027_v57 = vor.u32 %v5279_v50, %v4024_v51  ;;  %v4054_v60 = vld [vmem:[%s5766_s12 + $0x80] sm:$0xf] }
  0x1d   : > { %2415 = vmatpush.bf16.msra.mxu0 %v5530_v16  ;;  %v5284_v53 = vld [vmem:[%s5766_s12 + $0x64] sm:$0xf0]  ;;  %v4032_v55 = vld [vmem:[%s5766_s12 + $0x68] sm:$0xf0]  ;;  %v5291_v61 = vld [vmem:[%s5766_s12 + $0x9c] sm:$0xf0] }
  0x1e   : > { %2584 = vmatpush.bf16.msra.mxu1 %v5538_v17  ;;  %v4031_v58 = vor.u32 %v5284_v53, %v4030_v52  ;;  %v4035_v59 = vor.u32 %v5280_v54, %v4032_v55  ;;  %v5287_v62 = vld [vmem:[%s5766_s12 + $0x84] sm:$0xf]  ;;  %v4062_v0 = vld [vmem:[%s5766_s12 + $0x88] sm:$0xf]  ;;  %v5288_v2 = vld [vmem:[%s5766_s12 + $0x8c] sm:$0xf]  ;;  %v4055_v4 = vor.u32 %v5291_v61, %v4054_v60 }
  0x1f   : > { %2753 = vmatpush.bf16.msra.mxu2 %v5546_v18  ;;  %v4056_v63 = vld [vmem:[%s5766_s12 + $0xa0] sm:$0xf0]  ;;  %v5292_v1 = vld [vmem:[%s5766_s12 + $0xa4] sm:$0xf0]  ;;  %v4064_v3 = vld [vmem:[%s5766_s12 + $0xa8] sm:$0xf0] }
  0x20   : > { %2922 = vmatpush.bf16.msra.mxu3 %v5554_v19  ;;  %v4059_v5 = vor.u32 %v5287_v62, %v4056_v63  ;;  %v4063_v6 = vor.u32 %v5292_v1, %v4062_v0  ;;  %v4067_v7 = vor.u32 %v5288_v2, %v4064_v3  ;;  %v5581_v8 = vld [vmem:[%s6809_s1 + $0x1b0] sm:$0xff]  ;;  %v4086_v12 = vld [vmem:[%s5766_s12 + $0xc0] sm:$0xf]  ;;  %v5295_v14 = vld [vmem:[%s5766_s12 + $0xc4] sm:$0xf] }
  0x21   : > { %2416 = vmatpush.bf16.msra.mxu0 %v5529_v20  ;;  %v5565_v9 = vld [vmem:[%s6809_s1 + $0x130] sm:$0xff]  ;;  %v5299_v13 = vld [vmem:[%s5766_s12 + $0xdc] sm:$0xf0]  ;;  %v4088_v15 = vld [vmem:[%s5766_s12 + $0xe0] sm:$0xf0] }
  0x22   : > { %2585 = vmatpush.bf16.msra.mxu1 %v5537_v21  ;;  %v5589_v10 = vld [vmem:[%s6809_s1 + $0x1f0] sm:$0xff]  ;;  %v4094_v16 = vld [vmem:[%s5766_s12 + $0xc8] sm:$0xf]  ;;  %v5296_v18 = vld [vmem:[%s5766_s12 + $0xcc] sm:$0xf]  ;;  %v4087_v20 = vor.u32 %v5299_v13, %v4086_v12  ;;  %v4091_v21 = vor.u32 %v5295_v14, %v4088_v15 }
  0x23   : > { %2754 = vmatpush.bf16.msra.mxu2 %v5545_v22  ;;  %v5573_v11 = vld [vmem:[%s6809_s1 + $0x170] sm:$0xff]  ;;  %v5300_v17 = vld [vmem:[%s5766_s12 + $0xe4] sm:$0xf0]  ;;  %v4096_v19 = vld [vmem:[%s5766_s12 + $0xe8] sm:$0xf0] }
  0x24   : > { %2923 = vmatpush.bf16.msra.mxu3 %v5553_v23  ;;  %v4095_v22 = vor.u32 %v5300_v17, %v4094_v16  ;;  %v4099_v23 = vor.u32 %v5296_v18, %v4096_v19  ;;  %v4150_v36 = vld [vmem:[%s5766_s12 + $0x140] sm:$0xf]  ;;  %v5311_v38 = vld [vmem:[%s5766_s12 + $0x144] sm:$0xf]  ;;  %v4190_v52 = vld [vmem:[%s5766_s12 + $0x188] sm:$0xf] }
  0x25   : > { %2417 = vmatpush.bf16.msra.mxu0 %v5528_v24  ;;  %v4118_v24 = vld [vmem:[%s5766_s12 + $0x100] sm:$0xf]  ;;  %v4152_v39 = vld [vmem:[%s5766_s12 + $0x160] sm:$0xf0]  ;;  %v5324_v53 = vld [vmem:[%s5766_s12 + $0x1a4] sm:$0xf0] }
  0x26   : > { %2586 = vmatpush.bf16.msra.mxu1 %v5536_v25  ;;  %v5307_v25 = vld [vmem:[%s5766_s12 + $0x11c] sm:$0xf0]  ;;  %v5319_v50 = vld [vmem:[%s5766_s12 + $0x184] sm:$0xf]  ;;  %v5320_v54 = vld [vmem:[%s5766_s12 + $0x18c] sm:$0xf] }
  0x27   : > { %2755 = vmatpush.bf16.msra.mxu2 %v5544_v26  ;;  %v5303_v26 = vld [vmem:[%s5766_s12 + $0x104] sm:$0xf]  ;;  %v4119_v32 = vor.u32 %v5307_v25, %v4118_v24  ;;  %v5315_v37 = vld [vmem:[%s5766_s12 + $0x15c] sm:$0xf0]  ;;  %v4192_v55 = vld [vmem:[%s5766_s12 + $0x1a8] sm:$0xf0] }
  0x28   : > { %2924 = vmatpush.bf16.msra.mxu3 %v5552_v27  ;;  %v4120_v27 = vld [vmem:[%s5766_s12 + $0x120] sm:$0xf0]  ;;  %v4182_v48 = vld [vmem:[%s5766_s12 + $0x180] sm:$0xf]  ;;  %v5580_v60 = vld [vmem:[%s6809_s1 + $0x1a8] sm:$0xff] }
  0x29   : > { %2418 = vmatpush.bf16.msra.mxu0 %v5527_v28  ;;  %v4126_v28 = vld [vmem:[%s5766_s12 + $0x108] sm:$0xf]  ;;  %v4123_v33 = vor.u32 %v5303_v26, %v4120_v27  ;;  %v5323_v49 = vld [vmem:[%s5766_s12 + $0x19c] sm:$0xf0]  ;;  %v4184_v51 = vld [vmem:[%s5766_s12 + $0x1a0] sm:$0xf0] }
  0x2a   : > { %2587 = vmatpush.bf16.msra.mxu1 %v5535_v29  ;;  %v5308_v29 = vld [vmem:[%s5766_s12 + $0x124] sm:$0xf0]  ;;  %v4214_v0 = vld [vmem:[%s5766_s12 + $0x1c0] sm:$0xf]  ;;  %v5327_v2 = vld [vmem:[%s5766_s12 + $0x1c4] sm:$0xf] }
  0x2b   : > { %2756 = vmatpush.bf16.msra.mxu2 %v5543_v30  ;;  %v5304_v30 = vld [vmem:[%s5766_s12 + $0x10c] sm:$0xf]  ;;  %v4127_v34 = vor.u32 %v5308_v29, %v4126_v28  ;;  %v5331_v1 = vld [vmem:[%s5766_s12 + $0x1dc] sm:$0xf0]  ;;  %v4216_v3 = vld [vmem:[%s5766_s12 + $0x1e0] sm:$0xf0] }
  0x2c   : > { %2925 = vmatpush.bf16.msra.mxu3 %v5551_v31  ;;  %2419 = vmatmul.bf16.vlgmr.msra.gmra.mxu0 %v3991_v42  ;;  %v4128_v31 = vld [vmem:[%s5766_s12 + $0x128] sm:$0xf0]  ;;  %v4246_v12 = vld [vmem:[%s5766_s12 + $0x200] sm:$0xf]  ;;  %v5335_v14 = vld [vmem:[%s5766_s12 + $0x204] sm:$0xf] }
  0x2d   : > { %3087 = vmatpush.bf16.msrb.mxu0 %v5566_v41  ;;  %2588 = vmatmul.bf16.vlgmr.msra.gmra.mxu1 %v3995_v43  ;;  %v4131_v35 = vor.u32 %v5304_v30, %v4128_v31  ;;  %v5316_v41 = vld [vmem:[%s5766_s12 + $0x164] sm:$0xf0]  ;;  %v5312_v42 = vld [vmem:[%s5766_s12 + $0x14c] sm:$0xf]  ;;  %v5339_v13 = vld [vmem:[%s5766_s12 + $0x21c] sm:$0xf0] }
  0x2e   : > { %2757 = vmatmul.bf16.vlgmr.msra.gmra.mxu2 %v3999_v44  ;;  %3256 = vmatpush.bf16.msrb.mxu1 %v5574_v47  ;;  %v4160_v43 = vld [vmem:[%s5766_s12 + $0x168] sm:$0xf0]  ;;  %v4151_v44 = vor.u32 %v5315_v37, %v4150_v36  ;;  %v4248_v15 = vld [vmem:[%s5766_s12 + $0x220] sm:$0xf0]  ;;  %v4254_v16 = vld [vmem:[%s5766_s12 + $0x208] sm:$0xf] }
  0x2f   : > { %3425 = vmatpush.bf16.msrb.mxu2 %v5582_v40  ;;  %2926 = vmatmul.bf16.vlgmr.msra.gmra.mxu3 %v4003_v45  ;;  %v4158_v40 = vld [vmem:[%s5766_s12 + $0x148] sm:$0xf]  ;;  %v4155_v45 = vor.u32 %v5311_v38, %v4152_v39  ;;  %v4163_v47 = vor.u32 %v5312_v42, %v4160_v43  ;;  %v5336_v18 = vld [vmem:[%s5766_s12 + $0x20c] sm:$0xf]  ;;  %v5343_v36 = vld [vmem:[%s5766_s12 + $0x244] sm:$0xf] }
  0x30   : > { %3594 = vmatpush.bf16.msrb.mxu3 %v5590_v46  ;;  %v4159_v46 = vor.u32 %v5316_v41, %v4158_v40  ;;  %v5564_v61 = vld [vmem:[%s6809_s1 + $0x128] sm:$0xff]  ;;  %v4280_v37 = vld [vmem:[%s5766_s12 + $0x260] sm:$0xf0] }
  0x31   : > { %3088 = vmatpush.bf16.msrb.mxu0 %v5565_v9  ;;  %v5588_v62 = vld [vmem:[%s6809_s1 + $0x1e8] sm:$0xff]  ;;  %v4219_v9 = vor.u32 %v5327_v2, %v4216_v3 }
  0x32   : > { %3257 = vmatpush.bf16.msrb.mxu1 %v5573_v11  ;;  %v5572_v63 = vld [vmem:[%s6809_s1 + $0x168] sm:$0xff] }
  0x33   : > { %3426 = vmatpush.bf16.msrb.mxu2 %v5581_v8  ;;  %v4215_v8 = vor.u32 %v5331_v1, %v4214_v0  ;;  %v5340_v17 = vld [vmem:[%s5766_s12 + $0x224] sm:$0xf0]  ;;  %v4256_v19 = vld [vmem:[%s5766_s12 + $0x228] sm:$0xf0] }
  0x34   : > { %3595 = vmatpush.bf16.msrb.mxu3 %v5589_v10  ;;  %v4255_v24 = vor.u32 %v5340_v17, %v4254_v16  ;;  %v4259_v25 = vor.u32 %v5336_v18, %v4256_v19  ;;  %v4286_v38 = vld [vmem:[%s5766_s12 + $0x248] sm:$0xf]  ;;  %v5344_v40 = vld [vmem:[%s5766_s12 + $0x24c] sm:$0xf]  ;;  %v5563_v16 = vld [vmem:[%s6809_s1 + $0x120] sm:$0xff] }
  0x35   : > { %3089 = vmatpush.bf16.msrb.mxu0 %v5564_v61  ;;  %v5348_v39 = vld [vmem:[%s5766_s12 + $0x264] sm:$0xf0]  ;;  %v4288_v41 = vld [vmem:[%s5766_s12 + $0x268] sm:$0xf0]  ;;  %v5355_v61 = vld [vmem:[%s5766_s12 + $0x29c] sm:$0xf0] }
  0x36   : > { %3258 = vmatpush.bf16.msrb.mxu1 %v5572_v63  ;;  %v4312_v63 = vld [vmem:[%s5766_s12 + $0x2a0] sm:$0xf0]  ;;  %v4318_v0 = vld [vmem:[%s5766_s12 + $0x288] sm:$0xf]  ;;  %v5352_v2 = vld [vmem:[%s5766_s12 + $0x28c] sm:$0xf] }
  0x37   : > { %3427 = vmatpush.bf16.msrb.mxu2 %v5580_v60  ;;  %v4310_v60 = vld [vmem:[%s5766_s12 + $0x280] sm:$0xf]  ;;  %v5356_v1 = vld [vmem:[%s5766_s12 + $0x2a4] sm:$0xf0]  ;;  %v4320_v3 = vld [vmem:[%s5766_s12 + $0x2a8] sm:$0xf0] }
  0x38   : > { %3596 = vmatpush.bf16.msrb.mxu3 %v5588_v62  ;;  %v5351_v62 = vld [vmem:[%s5766_s12 + $0x284] sm:$0xf] }
  0x39   : > { %v5587_v17 = vld [vmem:[%s6809_s1 + $0x1e0] sm:$0xff]  ;;  %3090 = vmatpush.bf16.msrb.mxu0 %v5563_v16 }
  0x3c   : > { %2424 = vmatmul.bf16.gmra.mxu0 %v4023_v56  ;;  %v4183_v56 = vor.u32 %v5323_v49, %v4182_v48  ;;  %v4287_v49 = vor.u32 %v5348_v39, %v4286_v38  ;;  %3597 = vmatpush.bf16.msrb.mxu3 %v5587_v17 }
  0x3d   : > { %2593 = vmatmul.bf16.gmra.mxu1 %v4027_v57  ;;  %v4187_v57 = vor.u32 %v5319_v50, %v4184_v51  ;;  %v4291_v50 = vor.u32 %v5344_v40, %v4288_v41 }
  0x3e   : > { %2762 = vmatmul.bf16.gmra.mxu2 %v4031_v58  ;;  %v4191_v58 = vor.u32 %v5324_v53, %v4190_v52 }
  0x3f   : > { %2931 = vmatmul.bf16.gmra.mxu3 %v4035_v59  ;;  %v4195_v59 = vor.u32 %v5320_v54, %v4192_v55 }
  0x4c   : > { %2429 = vmatmul.bf16.gmra.mxu0 %v4055_v4  ;;  %v4222_v4 = vld [vmem:[%s5766_s12 + $0x1c8] sm:$0xf] }
  0x4d   : > { %2598 = vmatmul.bf16.gmra.mxu1 %v4059_v5  ;;  %v5332_v5 = vld [vmem:[%s5766_s12 + $0x1e4] sm:$0xf0] }
  0x4e   : > { %2767 = vmatmul.bf16.gmra.mxu2 %v4063_v6  ;;  %v5328_v6 = vld [vmem:[%s5766_s12 + $0x1cc] sm:$0xf]  ;;  %v4223_v10 = vor.u32 %v5332_v5, %v4222_v4 }
  0x4f   : > { %2936 = vmatmul.bf16.gmra.mxu3 %v4067_v7  ;;  %v4224_v7 = vld [vmem:[%s5766_s12 + $0x1e8] sm:$0xf0] }
  0x50   : > { %v4227_v11 = vor.u32 %v5328_v6, %v4224_v7  ;;  %v4311_v6 = vor.u32 %v5355_v61, %v4310_v60  ;;  %v4315_v7 = vor.u32 %v5351_v62, %v4312_v63  ;;  %v5372_v60 = vld [vmem:[%s5766_s12 + $0x324] sm:$0xf0]  ;;  %v5368_v61 = vld [vmem:[%s5766_s12 + $0x30c] sm:$0xf] }
  0x51   : > { %v4384_v62 = vld [vmem:[%s5766_s12 + $0x328] sm:$0xf0] }
  0x5c   : > { %2434 = vmatmul.bf16.gmra.mxu0 %v4087_v20  ;;  %v4247_v20 = vor.u32 %v5339_v13, %v4246_v12  ;;  %v4323_v12 = vor.u32 %v5352_v2, %v4320_v3 }
  0x5d   : > { %2603 = vmatmul.bf16.gmra.mxu1 %v4091_v21  ;;  %v4251_v21 = vor.u32 %v5335_v14, %v4248_v15  ;;  %v5579_v15 = vld [vmem:[%s6809_s1 + $0x1a0] sm:$0xff] }
  0x5e   : > { %2772 = vmatmul.bf16.gmra.mxu2 %v4095_v22 }
  0x5f   : > { %2941 = vmatmul.bf16.gmra.mxu3 %v4099_v23  ;;  %3428 = vmatpush.bf16.msrb.mxu2 %v5579_v15 }
  0x6c   : > { %2439 = vmatmul.bf16.gmra.mxu0 %v4119_v32 }
  0x6d   : > { %2608 = vmatmul.bf16.gmra.mxu1 %v4123_v33 }
  0x6e   : > { %2777 = vmatmul.bf16.gmra.mxu2 %v4127_v34  ;;  %v4278_v34 = vld [vmem:[%s5766_s12 + $0x240] sm:$0xf] }
  0x6f   : > { %2946 = vmatmul.bf16.gmra.mxu3 %v4131_v35  ;;  %v5347_v35 = vld [vmem:[%s5766_s12 + $0x25c] sm:$0xf0] }
  0x7c   : > { %2444 = vmatmul.bf16.gmra.mxu0 %v4151_v44  ;;  %v4279_v44 = vor.u32 %v5347_v35, %v4278_v34  ;;  %v4352_v34 = vld [vmem:[%s5766_s12 + $0x2e8] sm:$0xf0] }
  0x7d   : > { %2613 = vmatmul.bf16.gmra.mxu1 %v4155_v45  ;;  %v4283_v45 = vor.u32 %v5343_v36, %v4280_v37 }
  0x7e   : > { %2782 = vmatmul.bf16.gmra.mxu2 %v4159_v46 }
  0x7f   : > { %2951 = vmatmul.bf16.gmra.mxu3 %v4163_v47 }
  0x8c   : > { %2449 = vmatmul.bf16.gmra.mxu0 %v4183_v56 }
  0x8d   : > { %2618 = vmatmul.bf16.gmra.mxu1 %v4187_v57 }
  0x8e   : > { %2787 = vmatmul.bf16.gmra.mxu2 %v4191_v58 }
  0x8f   : > { %2956 = vmatmul.bf16.gmra.mxu3 %v4195_v59 }
  0x9c   : > { %2454 = vmatmul.bf16.gmra.mxu0 %v4215_v8 }
  0x9d   : > { %2623 = vmatmul.bf16.gmra.mxu1 %v4219_v9 }
  0x9e   : > { %2792 = vmatmul.bf16.gmra.mxu2 %v4223_v10 }
  0x9f   : > { %2961 = vmatmul.bf16.gmra.mxu3 %v4227_v11  ;;  %v4319_v11 = vor.u32 %v5356_v1, %v4318_v0 }
  0xa9   : > { %v2420_v22 = vpop.f32.mrf.mxu0 }
  0xaa   : > { %v2589_v23 = vpop.f32.mrf.mxu1 }
  0xab   : > { %v2590_v26 = vadd.f32 %v2589_v23, %v2420_v22 }
  0xac   : > { %2459 = vmatmul.bf16.gmra.mxu0 %v4247_v20 }
  0xad   : > { %2628 = vmatmul.bf16.gmra.mxu1 %v4251_v21 }
  0xae   : > { %2797 = vmatmul.bf16.gmra.mxu2 %v4255_v24 }
  0xaf   : > { %2966 = vmatmul.bf16.gmra.mxu3 %v4259_v25  ;;  %v5571_v25 = vld [vmem:[%s6809_s1 + $0x160] sm:$0xff] }
  0xb0   : > { %3259 = vmatpush.bf16.msrb.mxu1 %v5571_v25  ;;  %v5376_v25 = vld [vmem:[%s5766_s12 + $0x34c] sm:$0xf] }
  0xb1   : > { %v2758_v27 = vpop.f32.mrf.mxu2  ;;  %v2422_v30 = vpop.f32.mrf.mxu0 }
  0xb2   : > { %v2927_v28 = vpop.f32.mrf.mxu3  ;;  %v2759_v29 = vadd.f32 %v2758_v27, %v2590_v26  ;;  %v2591_v31 = vpop.f32.mrf.mxu1  ;;  %v4342_v26 = vld [vmem:[%s5766_s12 + $0x2c0] sm:$0xf] }
  0xb3   : > { %v2592_v32 = vadd.f32 %v2591_v31, %v2422_v30  ;;  %v5363_v27 = vld [vmem:[%s5766_s12 + $0x2dc] sm:$0xf0]  ;;  %v4350_v30 = vld [vmem:[%s5766_s12 + $0x2c8] sm:$0xf] }
  0xb4   : > { %v5894_v33 = vadd.f32 %v2927_v28, %v2759_v29  ;;  %v5359_v28 = vld [vmem:[%s5766_s12 + $0x2c4] sm:$0xf]  ;;  %v5364_v31 = vld [vmem:[%s5766_s12 + $0x2e4] sm:$0xf0]  ;;  %v4343_v37 = vor.u32 %v5363_v27, %v4342_v26  ;;  %v4416_v26 = vld [vmem:[%s5766_s12 + $0x368] sm:$0xf0] }
  0xb5   : > { %v4344_v29 = vld [vmem:[%s5766_s12 + $0x2e0] sm:$0xf0] }
  0xb6   : > { %v4347_v38 = vor.u32 %v5359_v28, %v4344_v29 }
  0xb9   : > { %v2760_v42 = vpop.f32.mrf.mxu2  ;;  %v2425_v47 = vpop.f32.mrf.mxu0 }
  0xba   : > { %v2929_v43 = vpop.f32.mrf.mxu3  ;;  %v2761_v46 = vadd.f32 %v2760_v42, %v2592_v32  ;;  %v2594_v48 = vpop.f32.mrf.mxu1  ;;  %v5360_v32 = vld [vmem:[%s5766_s12 + $0x2cc] sm:$0xf]  ;;  %v4351_v42 = vor.u32 %v5364_v31, %v4350_v30 }
  0xbb   : > { %v2595_v51 = vadd.f32 %v2594_v48, %v2425_v47 }
  0xbc   : > { %v5904_v52 = vadd.f32 %v2929_v43, %v2761_v46  ;;  %2464 = vmatmul.bf16.gmra.mxu0 %v4279_v44  ;;  %v4355_v43 = vor.u32 %v5360_v32, %v4352_v34 }
  0xbd   : > { %2633 = vmatmul.bf16.gmra.mxu1 %v4283_v45 }
  0xbe   : > { %2802 = vmatmul.bf16.gmra.mxu2 %v4287_v49 }
  0xbf   : > { %2971 = vmatmul.bf16.gmra.mxu3 %v4291_v50 }
  0xc1   : > { %v2763_v53 = vpop.f32.mrf.mxu2  ;;  %v2427_v56 = vpop.f32.mrf.mxu0 }
  0xc2   : > { %v2932_v54 = vpop.f32.mrf.mxu3  ;;  %v2764_v55 = vadd.f32 %v2763_v53, %v2595_v51  ;;  %v2596_v57 = vpop.f32.mrf.mxu1 }
  0xc3   : > { %v2597_v58 = vadd.f32 %v2596_v57, %v2427_v56  ;;  %v5367_v56 = vld [vmem:[%s5766_s12 + $0x304] sm:$0xf] }
  0xc4   : > { %v5906_v59 = vadd.f32 %v2932_v54, %v2764_v55  ;;  %v4374_v54 = vld [vmem:[%s5766_s12 + $0x300] sm:$0xf]  ;;  %v4376_v57 = vld [vmem:[%s5766_s12 + $0x320] sm:$0xf0] }
  0xc5   : > { %v5371_v55 = vld [vmem:[%s5766_s12 + $0x31c] sm:$0xf0]  ;;  %v4379_v2 = vor.u32 %v5367_v56, %v4376_v57  ;;  %v4448_v56 = vld [vmem:[%s5766_s12 + $0x3a8] sm:$0xf0] }
  0xc6   : > { %v4375_v1 = vor.u32 %v5371_v55, %v4374_v54  ;;  %v5388_v54 = vld [vmem:[%s5766_s12 + $0x3a4] sm:$0xf0]  ;;  %v5384_v55 = vld [vmem:[%s5766_s12 + $0x38c] sm:$0xf] }
  0xc9   : > { %v2765_v4 = vpop.f32.mrf.mxu2  ;;  %v2430_v9 = vpop.f32.mrf.mxu0 }
  0xca   : > { %v2934_v5 = vpop.f32.mrf.mxu3  ;;  %v2766_v8 = vadd.f32 %v2765_v4, %v2597_v58  ;;  %v2599_v10 = vpop.f32.mrf.mxu1  ;;  %v4382_v58 = vld [vmem:[%s5766_s12 + $0x308] sm:$0xf] }
  0xcb   : > { %v2600_v13 = vadd.f32 %v2599_v10, %v2430_v9 }
  0xcc   : > { %v5916_v14 = vadd.f32 %v2934_v5, %v2766_v8  ;;  %2469 = vmatmul.bf16.gmra.mxu0 %v4311_v6  ;;  %v4383_v6 = vor.u32 %v5372_v60, %v4382_v58 }
  0xcd   : > { %2638 = vmatmul.bf16.gmra.mxu1 %v4315_v7  ;;  %v4387_v7 = vor.u32 %v5368_v61, %v4384_v62 }
  0xce   : > { %2807 = vmatmul.bf16.gmra.mxu2 %v4319_v11 }
  0xcf   : > { %2976 = vmatmul.bf16.gmra.mxu3 %v4323_v12 }
  0xd1   : > { %v2768_v18 = vpop.f32.mrf.mxu2  ;;  %v2432_v21 = vpop.f32.mrf.mxu0 }
  0xd2   : > { %v2937_v19 = vpop.f32.mrf.mxu3  ;;  %v2769_v20 = vadd.f32 %v2768_v18, %v2600_v13  ;;  %v2601_v22 = vpop.f32.mrf.mxu1  ;;  %v4406_v18 = vld [vmem:[%s5766_s12 + $0x340] sm:$0xf] }
  0xd3   : > { %v2602_v23 = vadd.f32 %v2601_v22, %v2432_v21  ;;  %v4408_v21 = vld [vmem:[%s5766_s12 + $0x360] sm:$0xf0]  ;;  %v4414_v22 = vld [vmem:[%s5766_s12 + $0x348] sm:$0xf] }
  0xd4   : > { %v5927_v24 = vadd.f32 %v2937_v19, %v2769_v20  ;;  %v5379_v19 = vld [vmem:[%s5766_s12 + $0x35c] sm:$0xf0]  ;;  %v5375_v20 = vld [vmem:[%s5766_s12 + $0x344] sm:$0xf] }
  0xd5   : > { %v4407_v29 = vor.u32 %v5379_v19, %v4406_v18  ;;  %v4411_v30 = vor.u32 %v5375_v20, %v4408_v21  ;;  %v5570_v18 = vld [vmem:[%s6809_s1 + $0x158] sm:$0xff]  ;;  %v4470_v19 = vld [vmem:[%s5766_s12 + $0x3c0] sm:$0xf]  ;;  %v5391_v21 = vld [vmem:[%s5766_s12 + $0x3c4] sm:$0xf] }
  0xd6   : > { %v5395_v20 = vld [vmem:[%s5766_s12 + $0x3dc] sm:$0xf0]  ;;  %3260 = vmatpush.bf16.msrb.mxu1 %v5570_v18 }
  0xd9   : > { %v2770_v35 = vpop.f32.mrf.mxu2  ;;  %v2435_v40 = vpop.f32.mrf.mxu0 }
  0xda   : > { %v2939_v36 = vpop.f32.mrf.mxu3  ;;  %v2771_v39 = vadd.f32 %v2770_v35, %v2602_v23  ;;  %v2604_v41 = vpop.f32.mrf.mxu1  ;;  %v5380_v23 = vld [vmem:[%s5766_s12 + $0x364] sm:$0xf0] }
  0xdb   : > { %v2605_v44 = vadd.f32 %v2604_v41, %v2435_v40  ;;  %v4415_v35 = vor.u32 %v5380_v23, %v4414_v22  ;;  %v4472_v22 = vld [vmem:[%s5766_s12 + $0x3e0] sm:$0xf0]  ;;  %v4478_v23 = vld [vmem:[%s5766_s12 + $0x3c8] sm:$0xf] }
  0xdc   : > { %v5940_v45 = vadd.f32 %v2939_v36, %v2771_v39  ;;  %2474 = vmatmul.bf16.gmra.mxu0 %v4343_v37  ;;  %v4419_v36 = vor.u32 %v5376_v25, %v4416_v26  ;;  %v5396_v25 = vld [vmem:[%s5766_s12 + $0x3e4] sm:$0xf0]  ;;  %v5392_v26 = vld [vmem:[%s5766_s12 + $0x3cc] sm:$0xf] }
  0xdd   : > { %2643 = vmatmul.bf16.gmra.mxu1 %v4347_v38 }
  0xde   : > { %2812 = vmatmul.bf16.gmra.mxu2 %v4351_v42 }
  0xdf   : > { %2981 = vmatmul.bf16.gmra.mxu3 %v4355_v43 }
  0xe1   : > { %v2773_v46 = vpop.f32.mrf.mxu2  ;;  %v2437_v49 = vpop.f32.mrf.mxu0 }
  0xe2   : > { %v2942_v47 = vpop.f32.mrf.mxu3  ;;  %v2774_v48 = vadd.f32 %v2773_v46, %v2605_v44  ;;  %v2606_v50 = vpop.f32.mrf.mxu1 }
  0xe3   : > { %v2607_v51 = vadd.f32 %v2606_v50, %v2437_v49  ;;  %v5383_v49 = vld [vmem:[%s5766_s12 + $0x384] sm:$0xf] }
  0xe4   : > { %v5942_v53 = vadd.f32 %v2942_v47, %v2774_v48  ;;  %v4438_v47 = vld [vmem:[%s5766_s12 + $0x380] sm:$0xf]  ;;  %v4440_v50 = vld [vmem:[%s5766_s12 + $0x3a0] sm:$0xf0] }
  0xe5   : > { %v5387_v48 = vld [vmem:[%s5766_s12 + $0x39c] sm:$0xf0]  ;;  %v4443_v61 = vor.u32 %v5383_v49, %v4440_v50 }
  0xe6   : > { %v4439_v60 = vor.u32 %v5387_v48, %v4438_v47  ;;  %v4502_v50 = vld [vmem:[%s5766_s12 + $0x400] sm:$0xf] }
  0xe9   : > { %v2775_v63 = vpop.f32.mrf.mxu2  ;;  %v2440_v4 = vpop.f32.mrf.mxu0 }
  0xea   : > { %v2944_v0 = vpop.f32.mrf.mxu3  ;;  %v2776_v3 = vadd.f32 %v2775_v63, %v2607_v51  ;;  %v2609_v5 = vpop.f32.mrf.mxu1  ;;  %v4446_v51 = vld [vmem:[%s5766_s12 + $0x388] sm:$0xf] }
  0xeb   : > { %v2610_v8 = vadd.f32 %v2609_v5, %v2440_v4  ;;  %v5578_v5 = vld [vmem:[%s6809_s1 + $0x198] sm:$0xff] }
  0xec   : > { %v5952_v9 = vadd.f32 %v2944_v0, %v2776_v3  ;;  %2479 = vmatmul.bf16.gmra.mxu0 %v4375_v1  ;;  %v4447_v1 = vor.u32 %v5388_v54, %v4446_v51  ;;  %3429 = vmatpush.bf16.msrb.mxu2 %v5578_v5  ;;  %v5403_v51 = vld [vmem:[%s5766_s12 + $0x41c] sm:$0xf0]  ;;  %v5399_v54 = vld [vmem:[%s5766_s12 + $0x404] sm:$0xf] }
  0xed   : > { %2648 = vmatmul.bf16.gmra.mxu1 %v4379_v2  ;;  %v4451_v2 = vor.u32 %v5384_v55, %v4448_v56  ;;  %v4504_v55 = vld [vmem:[%s5766_s12 + $0x420] sm:$0xf0]  ;;  %v4510_v56 = vld [vmem:[%s5766_s12 + $0x408] sm:$0xf] }
  0xee   : > { %2817 = vmatmul.bf16.gmra.mxu2 %v4383_v6  ;;  %v5562_v6 = vld [vmem:[%s6809_s1 + $0x118] sm:$0xff] }
  0xef   : > { %2986 = vmatmul.bf16.gmra.mxu3 %v4387_v7  ;;  %v5586_v7 = vld [vmem:[%s6809_s1 + $0x1d8] sm:$0xff]  ;;  %3091 = vmatpush.bf16.msrb.mxu0 %v5562_v6 }
  0xf0   : > { %3598 = vmatpush.bf16.msrb.mxu3 %v5586_v7 }
  0xf1   : > { %v2778_v10 = vpop.f32.mrf.mxu2  ;;  %v2442_v13 = vpop.f32.mrf.mxu0 }
  0xf2   : > { %v2947_v11 = vpop.f32.mrf.mxu3  ;;  %v2779_v12 = vadd.f32 %v2778_v10, %v2610_v8  ;;  %v2611_v15 = vpop.f32.mrf.mxu1 }
  0xf3   : > { %v2612_v16 = vadd.f32 %v2611_v15, %v2442_v13 }
  0xf4   : > { %v5954_v17 = vadd.f32 %v2947_v11, %v2779_v12 }
  0xf9   : > { %v2780_v27 = vpop.f32.mrf.mxu2  ;;  %v2445_v32 = vpop.f32.mrf.mxu0 }
  0xfa   : > { %v2949_v28 = vpop.f32.mrf.mxu3  ;;  %v2781_v31 = vadd.f32 %v2780_v27, %v2612_v16  ;;  %v2614_v34 = vpop.f32.mrf.mxu1  ;;  %v4480_v27 = vld [vmem:[%s5766_s12 + $0x3e8] sm:$0xf0] }
  0xfb   : > { %v2615_v37 = vadd.f32 %v2614_v34, %v2445_v32 }
  0xfc   : > { %v5964_v38 = vadd.f32 %v2949_v28, %v2781_v31  ;;  %2484 = vmatmul.bf16.gmra.mxu0 %v4407_v29  ;;  %v4475_v31 = vor.u32 %v5391_v21, %v4472_v22  ;;  %v5411_v21 = vld [vmem:[%s5766_s12 + $0x45c] sm:$0xf0]  ;;  %v5407_v22 = vld [vmem:[%s5766_s12 + $0x444] sm:$0xf] }
  0xfd   : > { %2653 = vmatmul.bf16.gmra.mxu1 %v4411_v30  ;;  %v4471_v30 = vor.u32 %v5395_v20, %v4470_v19  ;;  %v4534_v20 = vld [vmem:[%s5766_s12 + $0x440] sm:$0xf] }
  0xfe   : > { %2822 = vmatmul.bf16.gmra.mxu2 %v4415_v35 }
  0xff   : > { %2991 = vmatmul.bf16.gmra.mxu3 %v4419_v36  ;;  %v4479_v36 = vor.u32 %v5396_v25, %v4478_v23  ;;  %v4536_v23 = vld [vmem:[%s5766_s12 + $0x460] sm:$0xf0]  ;;  %v4542_v25 = vld [vmem:[%s5766_s12 + $0x448] sm:$0xf] }
 0x101   : > { %v2783_v39 = vpop.f32.mrf.mxu2  ;;  %v2447_v42 = vpop.f32.mrf.mxu0 }
 0x102   : > { %v2952_v40 = vpop.f32.mrf.mxu3  ;;  %v2784_v41 = vadd.f32 %v2783_v39, %v2615_v37  ;;  %v2616_v43 = vpop.f32.mrf.mxu1  ;;  %v4483_v37 = vor.u32 %v5392_v26, %v4480_v27  ;;  %v5412_v26 = vld [vmem:[%s5766_s12 + $0x464] sm:$0xf0]  ;;  %v5408_v27 = vld [vmem:[%s5766_s12 + $0x44c] sm:$0xf] }
 0x103   : > { %v2617_v44 = vadd.f32 %v2616_v43, %v2447_v42 }
 0x104   : > { %v5966_v46 = vadd.f32 %v2952_v40, %v2784_v41 }
 0x109   : > { %v2785_v57 = vpop.f32.mrf.mxu2  ;;  %v2450_v63 = vpop.f32.mrf.mxu0 }
 0x10a   : > { %v2954_v58 = vpop.f32.mrf.mxu3  ;;  %v2786_v62 = vadd.f32 %v2785_v57, %v2617_v44  ;;  %v2619_v0 = vpop.f32.mrf.mxu1  ;;  %v5404_v57 = vld [vmem:[%s5766_s12 + $0x424] sm:$0xf0] }
 0x10b   : > { %v2620_v3 = vadd.f32 %v2619_v0, %v2450_v63  ;;  %v4503_v63 = vor.u32 %v5403_v51, %v4502_v50  ;;  %v4507_v0 = vor.u32 %v5399_v54, %v4504_v55  ;;  %v4511_v5 = vor.u32 %v5404_v57, %v4510_v56  ;;  %v4566_v55 = vld [vmem:[%s5766_s12 + $0x480] sm:$0xf]  ;;  %v5415_v57 = vld [vmem:[%s5766_s12 + $0x484] sm:$0xf] }
 0x10c   : > { %v5976_v4 = vadd.f32 %v2954_v58, %v2786_v62  ;;  %2489 = vmatmul.bf16.gmra.mxu0 %v4439_v60  ;;  %v5400_v58 = vld [vmem:[%s5766_s12 + $0x40c] sm:$0xf]  ;;  %v5419_v56 = vld [vmem:[%s5766_s12 + $0x49c] sm:$0xf0] }
 0x10d   : > { %2658 = vmatmul.bf16.gmra.mxu1 %v4443_v61  ;;  %v4512_v60 = vld [vmem:[%s5766_s12 + $0x428] sm:$0xf0] }
 0x10e   : > { %2827 = vmatmul.bf16.gmra.mxu2 %v4447_v1  ;;  %v4515_v6 = vor.u32 %v5400_v58, %v4512_v60  ;;  %v4568_v58 = vld [vmem:[%s5766_s12 + $0x4a0] sm:$0xf0]  ;;  %v4574_v60 = vld [vmem:[%s5766_s12 + $0x488] sm:$0xf] }
 0x10f   : > { %2996 = vmatmul.bf16.gmra.mxu3 %v4451_v2 }
 0x111   : > { %v2788_v8 = vpop.f32.mrf.mxu2  ;;  %v2452_v12 = vpop.f32.mrf.mxu0 }
 0x112   : > { %v2957_v10 = vpop.f32.mrf.mxu3  ;;  %v2789_v11 = vadd.f32 %v2788_v8, %v2620_v3  ;;  %v2621_v13 = vpop.f32.mrf.mxu1 }
 0x113   : > { %v2622_v15 = vadd.f32 %v2621_v13, %v2452_v12 }
 0x114   : > { %v5987_v16 = vadd.f32 %v2957_v10, %v2789_v11 }
 0x119   : > { %v2790_v28 = vpop.f32.mrf.mxu2  ;;  %v2455_v34 = vpop.f32.mrf.mxu0 }
 0x11a   : > { %v2959_v29 = vpop.f32.mrf.mxu3  ;;  %v2791_v32 = vadd.f32 %v2790_v28, %v2622_v15  ;;  %v2624_v35 = vpop.f32.mrf.mxu1  ;;  %v4544_v28 = vld [vmem:[%s5766_s12 + $0x468] sm:$0xf0] }
 0x11b   : > { %v2625_v39 = vadd.f32 %v2624_v35, %v2455_v34 }
 0x11c   : > { %v6000_v40 = vadd.f32 %v2959_v29, %v2791_v32  ;;  %2494 = vmatmul.bf16.gmra.mxu0 %v4471_v30  ;;  %v4539_v32 = vor.u32 %v5407_v22, %v4536_v23 }
 0x11d   : > { %2663 = vmatmul.bf16.gmra.mxu1 %v4475_v31  ;;  %v4535_v31 = vor.u32 %v5411_v21, %v4534_v20  ;;  %v5585_v20 = vld [vmem:[%s6809_s1 + $0x1d0] sm:$0xff] }
 0x11e   : > { %2832 = vmatmul.bf16.gmra.mxu2 %v4479_v36  ;;  %3599 = vmatpush.bf16.msrb.mxu3 %v5585_v20 }
 0x11f   : > { %3001 = vmatmul.bf16.gmra.mxu3 %v4483_v37  ;;  %v4543_v37 = vor.u32 %v5412_v26, %v4542_v25 }
 0x121   : > { %v2793_v41 = vpop.f32.mrf.mxu2  ;;  %v2457_v44 = vpop.f32.mrf.mxu0 }
 0x122   : > { %v2962_v42 = vpop.f32.mrf.mxu3  ;;  %v2794_v43 = vadd.f32 %v2793_v41, %v2625_v39  ;;  %v2626_v47 = vpop.f32.mrf.mxu1  ;;  %v4547_v39 = vor.u32 %v5408_v27, %v4544_v28 }
 0x123   : > { %v2627_v48 = vadd.f32 %v2626_v47, %v2457_v44 }
 0x124   : > { %v6002_v49 = vadd.f32 %v2962_v42, %v2794_v43 }
 0x129   : > { %v2795_v61 = vpop.f32.mrf.mxu2  ;;  %v2460_v2 = vpop.f32.mrf.mxu0 }
 0x12a   : > { %v2964_v62 = vpop.f32.mrf.mxu3  ;;  %v2796_v1 = vadd.f32 %v2795_v61, %v2627_v48  ;;  %v2629_v3 = vpop.f32.mrf.mxu1  ;;  %v5420_v61 = vld [vmem:[%s5766_s12 + $0x4a4] sm:$0xf0] }
 0x12b   : > { %v2630_v7 = vadd.f32 %v2629_v3, %v2460_v2  ;;  %v4567_v2 = vor.u32 %v5419_v56, %v4566_v55  ;;  %v4571_v3 = vor.u32 %v5415_v57, %v4568_v58 }
 0x12c   : > { %v6012_v8 = vadd.f32 %v2964_v62, %v2796_v1  ;;  %2499 = vmatmul.bf16.gmra.mxu0 %v4503_v63  ;;  %v5416_v62 = vld [vmem:[%s5766_s12 + $0x48c] sm:$0xf] }
 0x12d   : > { %2668 = vmatmul.bf16.gmra.mxu1 %v4507_v0  ;;  %v4576_v63 = vld [vmem:[%s5766_s12 + $0x4a8] sm:$0xf0] }
 0x12e   : > { %2837 = vmatmul.bf16.gmra.mxu2 %v4511_v5 }
 0x12f   : > { %3006 = vmatmul.bf16.gmra.mxu3 %v4515_v6 }
 0x131   : > { %v2798_v10 = vpop.f32.mrf.mxu2  ;;  %v2462_v13 = vpop.f32.mrf.mxu0 }
 0x132   : > { %v2967_v11 = vpop.f32.mrf.mxu3  ;;  %v2799_v12 = vadd.f32 %v2798_v10, %v2630_v7  ;;  %v2631_v15 = vpop.f32.mrf.mxu1  ;;  %v4575_v10 = vor.u32 %v5420_v61, %v4574_v60 }
 0x133   : > { %v2632_v18 = vadd.f32 %v2631_v15, %v2462_v13  ;;  %v5577_v15 = vld [vmem:[%s6809_s1 + $0x190] sm:$0xff] }
 0x134   : > { %v6014_v19 = vadd.f32 %v2967_v11, %v2799_v12  ;;  %v4579_v11 = vor.u32 %v5416_v62, %v4576_v63  ;;  %3430 = vmatpush.bf16.msrb.mxu2 %v5577_v15  ;;  %v4640_v15 = vld [vmem:[%s5766_s12 + $0x528] sm:$0xf0] }
 0x139   : > { %v2800_v29 = vpop.f32.mrf.mxu2  ;;  %v2465_v35 = vpop.f32.mrf.mxu0 }
 0x13a   : > { %v2969_v30 = vpop.f32.mrf.mxu3  ;;  %v2801_v34 = vadd.f32 %v2800_v29, %v2632_v18  ;;  %v2634_v36 = vpop.f32.mrf.mxu1  ;;  %v5561_v18 = vld [vmem:[%s6809_s1 + $0x110] sm:$0xff] }
 0x13b   : > { %v2635_v41 = vadd.f32 %v2634_v36, %v2465_v35  ;;  %3092 = vmatpush.bf16.msrb.mxu0 %v5561_v18  ;;  %v5569_v29 = vld [vmem:[%s6809_s1 + $0x150] sm:$0xff]  ;;  %v4606_v35 = vld [vmem:[%s5766_s12 + $0x4c8] sm:$0xf] }
 0x13c   : > { %v6024_v42 = vadd.f32 %v2969_v30, %v2801_v34  ;;  %2504 = vmatmul.bf16.gmra.mxu0 %v4535_v31  ;;  %v4598_v30 = vld [vmem:[%s5766_s12 + $0x4c0] sm:$0xf]  ;;  %v4600_v34 = vld [vmem:[%s5766_s12 + $0x4e0] sm:$0xf0]  ;;  %3261 = vmatpush.bf16.msrb.mxu1 %v5569_v29  ;;  %v5428_v36 = vld [vmem:[%s5766_s12 + $0x4e4] sm:$0xf0] }
 0x13d   : > { %2673 = vmatmul.bf16.gmra.mxu1 %v4539_v32  ;;  %v5427_v31 = vld [vmem:[%s5766_s12 + $0x4dc] sm:$0xf0]  ;;  %v5423_v32 = vld [vmem:[%s5766_s12 + $0x4c4] sm:$0xf]  ;;  %v4607_v55 = vor.u32 %v5428_v36, %v4606_v35 }
 0x13e   : > { %2842 = vmatmul.bf16.gmra.mxu2 %v4543_v37  ;;  %v5424_v37 = vld [vmem:[%s5766_s12 + $0x4cc] sm:$0xf] }
 0x13f   : > { %3011 = vmatmul.bf16.gmra.mxu3 %v4547_v39  ;;  %v4608_v39 = vld [vmem:[%s5766_s12 + $0x4e8] sm:$0xf0] }
 0x140   : > { %v4611_v56 = vor.u32 %v5424_v37, %v4608_v39 }
 0x141   : > { %v2803_v43 = vpop.f32.mrf.mxu2  ;;  %v2467_v48 = vpop.f32.mrf.mxu0 }
 0x142   : > { %v2972_v44 = vpop.f32.mrf.mxu3  ;;  %v2804_v47 = vadd.f32 %v2803_v43, %v2635_v41  ;;  %v2636_v50 = vpop.f32.mrf.mxu1 }
 0x143   : > { %v2637_v51 = vadd.f32 %v2636_v50, %v2467_v48 }
 0x144   : > { %v6026_v54 = vadd.f32 %v2972_v44, %v2804_v47  ;;  %v4599_v44 = vor.u32 %v5427_v31, %v4598_v30  ;;  %v4603_v47 = vor.u32 %v5423_v32, %v4600_v34 }
 0x149   : > { %v2805_v0 = vpop.f32.mrf.mxu2  ;;  %v2470_v6 = vpop.f32.mrf.mxu0 }
 0x14a   : > { %v2974_v1 = vpop.f32.mrf.mxu3  ;;  %v2806_v5 = vadd.f32 %v2805_v0, %v2637_v51  ;;  %v2639_v7 = vpop.f32.mrf.mxu1 }
 0x14b   : > { %v2640_v12 = vadd.f32 %v2639_v7, %v2470_v6  ;;  %v5431_v6 = vld [vmem:[%s5766_s12 + $0x504] sm:$0xf] }
 0x14c   : > { %v6036_v13 = vadd.f32 %v2974_v1, %v2806_v5  ;;  %2509 = vmatmul.bf16.gmra.mxu0 %v4567_v2  ;;  %v5435_v5 = vld [vmem:[%s5766_s12 + $0x51c] sm:$0xf0]  ;;  %v4632_v7 = vld [vmem:[%s5766_s12 + $0x520] sm:$0xf0] }
 0x14d   : > { %2678 = vmatmul.bf16.gmra.mxu1 %v4571_v3  ;;  %v4630_v3 = vld [vmem:[%s5766_s12 + $0x500] sm:$0xf] }
 0x14e   : > { %2847 = vmatmul.bf16.gmra.mxu2 %v4575_v10  ;;  %v4638_v10 = vld [vmem:[%s5766_s12 + $0x508] sm:$0xf] }
 0x14f   : > { %3016 = vmatmul.bf16.gmra.mxu3 %v4579_v11  ;;  %v5436_v11 = vld [vmem:[%s5766_s12 + $0x524] sm:$0xf0] }
 0x151   : > { %v2808_v21 = vpop.f32.mrf.mxu2  ;;  %v2472_v25 = vpop.f32.mrf.mxu0 }
 0x152   : > { %v2977_v22 = vpop.f32.mrf.mxu3  ;;  %v2809_v23 = vadd.f32 %v2808_v21, %v2640_v12  ;;  %v2641_v26 = vpop.f32.mrf.mxu1  ;;  %v5432_v12 = vld [vmem:[%s5766_s12 + $0x50c] sm:$0xf]  ;;  %v4631_v21 = vor.u32 %v5435_v5, %v4630_v3 }
 0x153   : > { %v2642_v27 = vadd.f32 %v2641_v26, %v2472_v25  ;;  %v4643_v29 = vor.u32 %v5432_v12, %v4640_v15 }
 0x154   : > { %v6047_v28 = vadd.f32 %v2977_v22, %v2809_v23  ;;  %v4635_v22 = vor.u32 %v5431_v6, %v4632_v7 }
 0x159   : > { %v2810_v41 = vpop.f32.mrf.mxu2  ;;  %v2475_v50 = vpop.f32.mrf.mxu0 }
 0x15a   : > { %v2979_v43 = vpop.f32.mrf.mxu3  ;;  %v2811_v48 = vadd.f32 %v2810_v41, %v2642_v27  ;;  %v2644_v51 = vpop.f32.mrf.mxu1  ;;  %v4639_v27 = vor.u32 %v5436_v11, %v4638_v10 }
 0x15b   : > { %v2645_v57 = vadd.f32 %v2644_v51, %v2475_v50  ;;  %v4670_v50 = vld [vmem:[%s5766_s12 + $0x548] sm:$0xf] }
 0x15c   : > { %v6060_v58 = vadd.f32 %v2979_v43, %v2811_v48  ;;  %2514 = vmatmul.bf16.gmra.mxu0 %v4599_v44  ;;  %v4662_v43 = vld [vmem:[%s5766_s12 + $0x540] sm:$0xf]  ;;  %v4664_v48 = vld [vmem:[%s5766_s12 + $0x560] sm:$0xf0]  ;;  %v5444_v51 = vld [vmem:[%s5766_s12 + $0x564] sm:$0xf0] }
 0x15d   : > { %2683 = vmatmul.bf16.gmra.mxu1 %v4603_v47  ;;  %v5443_v44 = vld [vmem:[%s5766_s12 + $0x55c] sm:$0xf0]  ;;  %v5439_v47 = vld [vmem:[%s5766_s12 + $0x544] sm:$0xf]  ;;  %v4671_v3 = vor.u32 %v5444_v51, %v4670_v50 }
 0x15e   : > { %2852 = vmatmul.bf16.gmra.mxu2 %v4607_v55  ;;  %v5440_v55 = vld [vmem:[%s5766_s12 + $0x54c] sm:$0xf] }
 0x15f   : > { %3021 = vmatmul.bf16.gmra.mxu3 %v4611_v56  ;;  %v4672_v56 = vld [vmem:[%s5766_s12 + $0x568] sm:$0xf0] }
 0x160   : > { %v4675_v5 = vor.u32 %v5440_v55, %v4672_v56  ;;  %v5576_v55 = vld [vmem:[%s6809_s1 + $0x188] sm:$0xff] }
 0x161   : > { %v2813_v60 = vpop.f32.mrf.mxu2  ;;  %v2477_v63 = vpop.f32.mrf.mxu0  ;;  %v5560_v56 = vld [vmem:[%s6809_s1 + $0x108] sm:$0xff]  ;;  %3431 = vmatpush.bf16.msrb.mxu2 %v5576_v55 }
 0x162   : > { %v2982_v61 = vpop.f32.mrf.mxu3  ;;  %v2814_v62 = vadd.f32 %v2813_v60, %v2645_v57  ;;  %v2646_v0 = vpop.f32.mrf.mxu1  ;;  %3093 = vmatpush.bf16.msrb.mxu0 %v5560_v56  ;;  %v4758_v56 = vld [vmem:[%s5766_s12 + $0x600] sm:$0xf] }
 0x163   : > { %v2647_v1 = vadd.f32 %v2646_v0, %v2477_v63 }
 0x164   : > { %v6062_v2 = vadd.f32 %v2982_v61, %v2814_v62  ;;  %v4663_v61 = vor.u32 %v5443_v44, %v4662_v43  ;;  %v4667_v62 = vor.u32 %v5439_v47, %v4664_v48 }
 0x169   : > { %v2815_v18 = vpop.f32.mrf.mxu2  ;;  %v2480_v25 = vpop.f32.mrf.mxu0 }
 0x16a   : > { %v2984_v20 = vpop.f32.mrf.mxu3  ;;  %v2816_v23 = vadd.f32 %v2815_v18, %v2647_v1  ;;  %v2649_v26 = vpop.f32.mrf.mxu1 }
 0x16b   : > { %v2650_v30 = vadd.f32 %v2649_v26, %v2480_v25  ;;  %v5447_v25 = vld [vmem:[%s5766_s12 + $0x584] sm:$0xf] }
 0x16c   : > { %v6072_v31 = vadd.f32 %v2984_v20, %v2816_v23  ;;  %2519 = vmatmul.bf16.gmra.mxu0 %v4631_v21  ;;  %v5451_v23 = vld [vmem:[%s5766_s12 + $0x59c] sm:$0xf0]  ;;  %v4696_v26 = vld [vmem:[%s5766_s12 + $0x5a0] sm:$0xf0] }
 0x16d   : > { %2688 = vmatmul.bf16.gmra.mxu1 %v4635_v22  ;;  %v4694_v22 = vld [vmem:[%s5766_s12 + $0x580] sm:$0xf] }
 0x16e   : > { %2857 = vmatmul.bf16.gmra.mxu2 %v4639_v27  ;;  %v4702_v27 = vld [vmem:[%s5766_s12 + $0x588] sm:$0xf] }
 0x16f   : > { %3026 = vmatmul.bf16.gmra.mxu3 %v4643_v29  ;;  %v5452_v29 = vld [vmem:[%s5766_s12 + $0x5a4] sm:$0xf0] }
 0x170   : > { %v4703_v47 = vor.u32 %v5452_v29, %v4702_v27 }
 0x171   : > { %v2818_v32 = vpop.f32.mrf.mxu2  ;;  %v2482_v36 = vpop.f32.mrf.mxu0 }
 0x172   : > { %v2987_v34 = vpop.f32.mrf.mxu3  ;;  %v2819_v35 = vadd.f32 %v2818_v32, %v2650_v30  ;;  %v2651_v37 = vpop.f32.mrf.mxu1  ;;  %v5448_v30 = vld [vmem:[%s5766_s12 + $0x58c] sm:$0xf] }
 0x173   : > { %v2652_v39 = vadd.f32 %v2651_v37, %v2482_v36  ;;  %v4704_v32 = vld [vmem:[%s5766_s12 + $0x5a8] sm:$0xf0]  ;;  %v4695_v36 = vor.u32 %v5451_v23, %v4694_v22  ;;  %v4699_v37 = vor.u32 %v5447_v25, %v4696_v26 }
 0x174   : > { %v6074_v41 = vadd.f32 %v2987_v34, %v2819_v35  ;;  %v4707_v48 = vor.u32 %v5448_v30, %v4704_v32  ;;  %v4736_v22 = vld [vmem:[%s5766_s12 + $0x5e8] sm:$0xf0] }
 0x179   : > { %v2820_v57 = vpop.f32.mrf.mxu2  ;;  %v2485_v0 = vpop.f32.mrf.mxu0 }
 0x17a   : > { %v2989_v60 = vpop.f32.mrf.mxu3  ;;  %v2821_v63 = vadd.f32 %v2820_v57, %v2652_v39  ;;  %v2654_v1 = vpop.f32.mrf.mxu1  ;;  %v5584_v57 = vld [vmem:[%s6809_s1 + $0x1c8] sm:$0xff] }
 0x17b   : > { %v2655_v6 = vadd.f32 %v2654_v1, %v2485_v0  ;;  %3600 = vmatpush.bf16.msrb.mxu3 %v5584_v57  ;;  %v5467_v57 = vld [vmem:[%s5766_s12 + $0x61c] sm:$0xf0] }
 0x17c   : > { %v6084_v7 = vadd.f32 %v2989_v60, %v2821_v63  ;;  %2524 = vmatmul.bf16.gmra.mxu0 %v4663_v61 }
 0x17d   : > { %2693 = vmatmul.bf16.gmra.mxu1 %v4667_v62 }
 0x17e   : > { %2862 = vmatmul.bf16.gmra.mxu2 %v4671_v3 }
 0x17f   : > { %3031 = vmatmul.bf16.gmra.mxu3 %v4675_v5  ;;  %v5568_v5 = vld [vmem:[%s6809_s1 + $0x148] sm:$0xff] }
 0x180   : > { %3262 = vmatpush.bf16.msrb.mxu1 %v5568_v5 }
 0x181   : > { %v2823_v10 = vpop.f32.mrf.mxu2  ;;  %v2487_v15 = vpop.f32.mrf.mxu0 }
 0x182   : > { %v2992_v11 = vpop.f32.mrf.mxu3  ;;  %v2824_v12 = vadd.f32 %v2823_v10, %v2655_v6  ;;  %v2656_v18 = vpop.f32.mrf.mxu1  ;;  %v4726_v6 = vld [vmem:[%s5766_s12 + $0x5c0] sm:$0xf] }
 0x183   : > { %v2657_v20 = vadd.f32 %v2656_v18, %v2487_v15  ;;  %v5459_v10 = vld [vmem:[%s5766_s12 + $0x5dc] sm:$0xf0]  ;;  %v4734_v15 = vld [vmem:[%s5766_s12 + $0x5c8] sm:$0xf] }
 0x184   : > { %v6086_v21 = vadd.f32 %v2992_v11, %v2824_v12  ;;  %v5455_v11 = vld [vmem:[%s5766_s12 + $0x5c4] sm:$0xf]  ;;  %v5460_v18 = vld [vmem:[%s5766_s12 + $0x5e4] sm:$0xf0]  ;;  %v4727_v26 = vor.u32 %v5459_v10, %v4726_v6  ;;  %v4759_v10 = vor.u32 %v5467_v57, %v4758_v56  ;;  %v4800_v56 = vld [vmem:[%s5766_s12 + $0x668] sm:$0xf0] }
 0x185   : > { %v4728_v12 = vld [vmem:[%s5766_s12 + $0x5e0] sm:$0xf0] }
 0x186   : > { %v4731_v27 = vor.u32 %v5455_v11, %v4728_v12 }
 0x189   : > { %v2825_v34 = vpop.f32.mrf.mxu2  ;;  %v2490_v43 = vpop.f32.mrf.mxu0 }
 0x18a   : > { %v2994_v35 = vpop.f32.mrf.mxu3  ;;  %v2826_v39 = vadd.f32 %v2825_v34, %v2657_v20  ;;  %v2659_v44 = vpop.f32.mrf.mxu1  ;;  %v5456_v20 = vld [vmem:[%s5766_s12 + $0x5cc] sm:$0xf]  ;;  %v4735_v34 = vor.u32 %v5460_v18, %v4734_v15 }
 0x18b   : > { %v2660_v50 = vadd.f32 %v2659_v44, %v2490_v43 }
 0x18c   : > { %v6096_v51 = vadd.f32 %v2994_v35, %v2826_v39  ;;  %2529 = vmatmul.bf16.gmra.mxu0 %v4695_v36  ;;  %v4739_v35 = vor.u32 %v5456_v20, %v4736_v22 }
 0x18d   : > { %2698 = vmatmul.bf16.gmra.mxu1 %v4699_v37 }
 0x18e   : > { %2867 = vmatmul.bf16.gmra.mxu2 %v4703_v47 }
 0x18f   : > { %3036 = vmatmul.bf16.gmra.mxu3 %v4707_v48 }
 0x191   : > { %v2828_v60 = vpop.f32.mrf.mxu2  ;;  %v2492_v63 = vpop.f32.mrf.mxu0 }
 0x192   : > { %v2997_v61 = vpop.f32.mrf.mxu3  ;;  %v2829_v62 = vadd.f32 %v2828_v60, %v2660_v50  ;;  %v2661_v0 = vpop.f32.mrf.mxu1  ;;  %v5463_v60 = vld [vmem:[%s5766_s12 + $0x604] sm:$0xf] }
 0x193   : > { %v2662_v1 = vadd.f32 %v2661_v0, %v2492_v63  ;;  %v5468_v63 = vld [vmem:[%s5766_s12 + $0x624] sm:$0xf0]  ;;  %v5464_v0 = vld [vmem:[%s5766_s12 + $0x60c] sm:$0xf] }
 0x194   : > { %v6107_v3 = vadd.f32 %v2997_v61, %v2829_v62  ;;  %v4760_v61 = vld [vmem:[%s5766_s12 + $0x620] sm:$0xf0]  ;;  %v4766_v62 = vld [vmem:[%s5766_s12 + $0x608] sm:$0xf] }
 0x195   : > { %v4763_v11 = vor.u32 %v5463_v60, %v4760_v61  ;;  %v4767_v20 = vor.u32 %v5468_v63, %v4766_v62 }
 0x199   : > { %v2830_v23 = vpop.f32.mrf.mxu2  ;;  %v2495_v30 = vpop.f32.mrf.mxu0 }
 0x19a   : > { %v2999_v25 = vpop.f32.mrf.mxu3  ;;  %v2831_v29 = vadd.f32 %v2830_v23, %v2662_v1  ;;  %v2664_v32 = vpop.f32.mrf.mxu1  ;;  %v4768_v1 = vld [vmem:[%s5766_s12 + $0x628] sm:$0xf0] }
 0x19b   : > { %v2665_v36 = vadd.f32 %v2664_v32, %v2495_v30  ;;  %v4771_v22 = vor.u32 %v5464_v0, %v4768_v1 }
 0x19c   : > { %v6120_v37 = vadd.f32 %v2999_v25, %v2831_v29  ;;  %2534 = vmatmul.bf16.gmra.mxu0 %v4727_v26 }
 0x19d   : > { %2703 = vmatmul.bf16.gmra.mxu1 %v4731_v27 }
 0x19e   : > { %2872 = vmatmul.bf16.gmra.mxu2 %v4735_v34 }
 0x19f   : > { %3041 = vmatmul.bf16.gmra.mxu3 %v4739_v35 }
 0x1a1   : > { %v2833_v39 = vpop.f32.mrf.mxu2  ;;  %v2497_v47 = vpop.f32.mrf.mxu0 }
 0x1a2   : > { %v3002_v43 = vpop.f32.mrf.mxu3  ;;  %v2834_v44 = vadd.f32 %v2833_v39, %v2665_v36  ;;  %v2666_v48 = vpop.f32.mrf.mxu1  ;;  %v4790_v36 = vld [vmem:[%s5766_s12 + $0x640] sm:$0xf] }
 0x1a3   : > { %v2667_v50 = vadd.f32 %v2666_v48, %v2497_v47  ;;  %v5475_v39 = vld [vmem:[%s5766_s12 + $0x65c] sm:$0xf0]  ;;  %v4798_v47 = vld [vmem:[%s5766_s12 + $0x648] sm:$0xf] }
 0x1a4   : > { %v6122_v55 = vadd.f32 %v3002_v43, %v2834_v44  ;;  %v5471_v43 = vld [vmem:[%s5766_s12 + $0x644] sm:$0xf]  ;;  %v5476_v48 = vld [vmem:[%s5766_s12 + $0x664] sm:$0xf0]  ;;  %v4791_v61 = vor.u32 %v5475_v39, %v4790_v36  ;;  %v5480_v39 = vld [vmem:[%s5766_s12 + $0x68c] sm:$0xf] }
 0x1a5   : > { %v4792_v44 = vld [vmem:[%s5766_s12 + $0x660] sm:$0xf0]  ;;  %v5484_v36 = vld [vmem:[%s5766_s12 + $0x6a4] sm:$0xf0] }
 0x1a6   : > { %v4795_v62 = vor.u32 %v5471_v43, %v4792_v44  ;;  %v4832_v43 = vld [vmem:[%s5766_s12 + $0x6a8] sm:$0xf0] }
 0x1a9   : > { %v2835_v5 = vpop.f32.mrf.mxu2  ;;  %v2500_v15 = vpop.f32.mrf.mxu0 }
 0x1aa   : > { %v3004_v6 = vpop.f32.mrf.mxu3  ;;  %v2836_v12 = vadd.f32 %v2835_v5, %v2667_v50  ;;  %v2669_v18 = vpop.f32.mrf.mxu1  ;;  %v5472_v50 = vld [vmem:[%s5766_s12 + $0x64c] sm:$0xf]  ;;  %v4799_v5 = vor.u32 %v5476_v48, %v4798_v47 }
 0x1ab   : > { %v2670_v23 = vadd.f32 %v2669_v18, %v2500_v15 }
 0x1ac   : > { %v6132_v25 = vadd.f32 %v3004_v6, %v2836_v12  ;;  %2539 = vmatmul.bf16.gmra.mxu0 %v4759_v10  ;;  %v4803_v6 = vor.u32 %v5472_v50, %v4800_v56 }
 0x1ad   : > { %2708 = vmatmul.bf16.gmra.mxu1 %v4763_v11 }
 0x1ae   : > { %2877 = vmatmul.bf16.gmra.mxu2 %v4767_v20 }
 0x1af   : > { %3046 = vmatmul.bf16.gmra.mxu3 %v4771_v22 }
 0x1b1   : > { %v2838_v26 = vpop.f32.mrf.mxu2  ;;  %v2502_v30 = vpop.f32.mrf.mxu0 }
 0x1b2   : > { %v3007_v27 = vpop.f32.mrf.mxu3  ;;  %v2839_v29 = vadd.f32 %v2838_v26, %v2670_v23  ;;  %v2671_v32 = vpop.f32.mrf.mxu1 }
 0x1b3   : > { %v2672_v34 = vadd.f32 %v2671_v32, %v2502_v30  ;;  %v5479_v30 = vld [vmem:[%s5766_s12 + $0x684] sm:$0xf] }
 0x1b4   : > { %v6134_v35 = vadd.f32 %v3007_v27, %v2839_v29  ;;  %v4822_v27 = vld [vmem:[%s5766_s12 + $0x680] sm:$0xf]  ;;  %v4824_v32 = vld [vmem:[%s5766_s12 + $0x6a0] sm:$0xf0] }
 0x1b5   : > { %v5483_v29 = vld [vmem:[%s5766_s12 + $0x69c] sm:$0xf0]  ;;  %v4827_v50 = vor.u32 %v5479_v30, %v4824_v32  ;;  %v5487_v32 = vld [vmem:[%s5766_s12 + $0x6c4] sm:$0xf] }
 0x1b6   : > { %v4823_v48 = vor.u32 %v5483_v29, %v4822_v27  ;;  %v5567_v27 = vld [vmem:[%s6809_s1 + $0x140] sm:$0xff] }
 0x1b7   : > { %v4854_v29 = vld [vmem:[%s5766_s12 + $0x6c0] sm:$0xf]  ;;  %3263 = vmatpush.bf16.msrb.mxu1 %v5567_v27 }
 0x1b8   : > { %v5491_v30 = vld [vmem:[%s5766_s12 + $0x6dc] sm:$0xf0] }
 0x1b9   : > { %v2840_v57 = vpop.f32.mrf.mxu2  ;;  %v2505_v0 = vpop.f32.mrf.mxu0  ;;  %v4886_v27 = vld [vmem:[%s5766_s12 + $0x700] sm:$0xf] }
 0x1ba   : > { %v3009_v60 = vpop.f32.mrf.mxu3  ;;  %v2841_v63 = vadd.f32 %v2840_v57, %v2672_v34  ;;  %v2674_v1 = vpop.f32.mrf.mxu1  ;;  %v4830_v34 = vld [vmem:[%s5766_s12 + $0x688] sm:$0xf] }
 0x1bb   : > { %v2675_v10 = vadd.f32 %v2674_v1, %v2505_v0  ;;  %v5575_v1 = vld [vmem:[%s6809_s1 + $0x180] sm:$0xff] }
 0x1bc   : > { %v6144_v11 = vadd.f32 %v3009_v60, %v2841_v63  ;;  %2544 = vmatmul.bf16.gmra.mxu0 %v4791_v61  ;;  %v4831_v61 = vor.u32 %v5484_v36, %v4830_v34  ;;  %3432 = vmatpush.bf16.msrb.mxu2 %v5575_v1  ;;  %v4856_v34 = vld [vmem:[%s5766_s12 + $0x6e0] sm:$0xf0]  ;;  %v4862_v36 = vld [vmem:[%s5766_s12 + $0x6c8] sm:$0xf] }
 0x1bd   : > { %2713 = vmatmul.bf16.gmra.mxu1 %v4795_v62  ;;  %v4835_v62 = vor.u32 %v5480_v39, %v4832_v43  ;;  %v5492_v39 = vld [vmem:[%s5766_s12 + $0x6e4] sm:$0xf0]  ;;  %v5488_v43 = vld [vmem:[%s5766_s12 + $0x6cc] sm:$0xf] }
 0x1be   : > { %2882 = vmatmul.bf16.gmra.mxu2 %v4799_v5  ;;  %v5559_v5 = vld [vmem:[%s6809_s1 + $0x100] sm:$0xff] }
 0x1bf   : > { %3051 = vmatmul.bf16.gmra.mxu3 %v4803_v6  ;;  %v5583_v6 = vld [vmem:[%s6809_s1 + $0x1c0] sm:$0xff]  ;;  %3094 = vmatpush.bf16.msrb.mxu0 %v5559_v5 }
 0x1c0   : > { %3601 = vmatpush.bf16.msrb.mxu3 %v5583_v6 }
 0x1c1   : > { %v2843_v12 = vpop.f32.mrf.mxu2  ;;  %v2507_v20 = vpop.f32.mrf.mxu0 }
 0x1c2   : > { %v3012_v15 = vpop.f32.mrf.mxu3  ;;  %v2844_v18 = vadd.f32 %v2843_v12, %v2675_v10  ;;  %v2676_v22 = vpop.f32.mrf.mxu1 }
 0x1c3   : > { %v2677_v23 = vadd.f32 %v2676_v22, %v2507_v20 }
 0x1c4   : > { %v6146_v26 = vadd.f32 %v3012_v15, %v2844_v18 }
 0x1c9   : > { %v2845_v44 = vpop.f32.mrf.mxu2  ;;  %v2510_v57 = vpop.f32.mrf.mxu0 }
 0x1ca   : > { %v3014_v47 = vpop.f32.mrf.mxu3  ;;  %v2846_v56 = vadd.f32 %v2845_v44, %v2677_v23  ;;  %v2679_v60 = vpop.f32.mrf.mxu1  ;;  %v4864_v44 = vld [vmem:[%s5766_s12 + $0x6e8] sm:$0xf0] }
 0x1cb   : > { %v2680_v63 = vadd.f32 %v2679_v60, %v2510_v57 }
 0x1cc   : > { %v6156_v0 = vadd.f32 %v3014_v47, %v2846_v56  ;;  %2549 = vmatmul.bf16.gmra.mxu0 %v4823_v48  ;;  %v4859_v56 = vor.u32 %v5487_v32, %v4856_v34  ;;  %v4888_v32 = vld [vmem:[%s5766_s12 + $0x720] sm:$0xf0]  ;;  %v4894_v34 = vld [vmem:[%s5766_s12 + $0x708] sm:$0xf] }
 0x1cd   : > { %2718 = vmatmul.bf16.gmra.mxu1 %v4827_v50  ;;  %v4855_v50 = vor.u32 %v5491_v30, %v4854_v29  ;;  %v5499_v29 = vld [vmem:[%s5766_s12 + $0x71c] sm:$0xf0]  ;;  %v5495_v30 = vld [vmem:[%s5766_s12 + $0x704] sm:$0xf] }
 0x1ce   : > { %2887 = vmatmul.bf16.gmra.mxu2 %v4831_v61 }
 0x1cf   : > { %3056 = vmatmul.bf16.gmra.mxu3 %v4835_v62  ;;  %v4863_v62 = vor.u32 %v5492_v39, %v4862_v36  ;;  %v5500_v36 = vld [vmem:[%s5766_s12 + $0x724] sm:$0xf0]  ;;  %v5496_v39 = vld [vmem:[%s5766_s12 + $0x70c] sm:$0xf] }
 0x1d1   : > { %v2848_v10 = vpop.f32.mrf.mxu2  ;;  %v2512_v18 = vpop.f32.mrf.mxu0 }
 0x1d2   : > { %v3017_v12 = vpop.f32.mrf.mxu3  ;;  %v2849_v15 = vadd.f32 %v2848_v10, %v2680_v63  ;;  %v2681_v20 = vpop.f32.mrf.mxu1  ;;  %v4867_v63 = vor.u32 %v5488_v43, %v4864_v44  ;;  %v4896_v43 = vld [vmem:[%s5766_s12 + $0x728] sm:$0xf0] }
 0x1d3   : > { %v2682_v22 = vadd.f32 %v2681_v20, %v2512_v18 }
 0x1d4   : > { %v6167_v23 = vadd.f32 %v3017_v12, %v2849_v15 }
 0x1d9   : > { %v2850_v47 = vpop.f32.mrf.mxu2  ;;  %v2515_v60 = vpop.f32.mrf.mxu0 }
 0x1da   : > { %v3019_v48 = vpop.f32.mrf.mxu3  ;;  %v2851_v57 = vadd.f32 %v2850_v47, %v2682_v22  ;;  %v2684_v61 = vpop.f32.mrf.mxu1 }
 0x1db   : > { %v2685_v1 = vadd.f32 %v2684_v61, %v2515_v60  ;;  %v4895_v61 = vor.u32 %v5500_v36, %v4894_v34  ;;  %v4920_v34 = vld [vmem:[%s5766_s12 + $0x760] sm:$0xf0]  ;;  %v4926_v36 = vld [vmem:[%s5766_s12 + $0x748] sm:$0xf] }
 0x1dc   : > { %v6180_v5 = vadd.f32 %v3019_v48, %v2851_v57  ;;  %2554 = vmatmul.bf16.gmra.mxu0 %v4855_v50  ;;  %v4887_v48 = vor.u32 %v5499_v29, %v4886_v27  ;;  %v4891_v50 = vor.u32 %v5495_v30, %v4888_v32  ;;  %v4918_v29 = vld [vmem:[%s5766_s12 + $0x740] sm:$0xf]  ;;  %v5503_v32 = vld [vmem:[%s5766_s12 + $0x744] sm:$0xf] }
 0x1dd   : > { %2723 = vmatmul.bf16.gmra.mxu1 %v4859_v56  ;;  %v5507_v30 = vld [vmem:[%s5766_s12 + $0x75c] sm:$0xf0] }
 0x1de   : > { %2892 = vmatmul.bf16.gmra.mxu2 %v4863_v62  ;;  %v4899_v62 = vor.u32 %v5496_v39, %v4896_v43  ;;  %v5508_v39 = vld [vmem:[%s5766_s12 + $0x764] sm:$0xf0]  ;;  %v5504_v43 = vld [vmem:[%s5766_s12 + $0x74c] sm:$0xf] }
 0x1df   : > { %3061 = vmatmul.bf16.gmra.mxu3 %v4867_v63 }
 0x1e1   : > { %v2853_v6 = vpop.f32.mrf.mxu2  ;;  %v2517_v15 = vpop.f32.mrf.mxu0 }
 0x1e2   : > { %v3022_v10 = vpop.f32.mrf.mxu3  ;;  %v2854_v12 = vadd.f32 %v2853_v6, %v2685_v1  ;;  %v2686_v18 = vpop.f32.mrf.mxu1 }
 0x1e3   : > { %v2687_v20 = vadd.f32 %v2686_v18, %v2517_v15 }
 0x1e4   : > { %v6182_v22 = vadd.f32 %v3022_v10, %v2854_v12 }
 0x1e9   : > { %v2855_v44 = vpop.f32.mrf.mxu2  ;;  %v2520_v57 = vpop.f32.mrf.mxu0 }
 0x1ea   : > { %v3024_v47 = vpop.f32.mrf.mxu3  ;;  %v2856_v56 = vadd.f32 %v2855_v44, %v2687_v20  ;;  %v2689_v60 = vpop.f32.mrf.mxu1  ;;  %v4928_v44 = vld [vmem:[%s5766_s12 + $0x768] sm:$0xf0] }
 0x1eb   : > { %v2690_v63 = vadd.f32 %v2689_v60, %v2520_v57 }
 0x1ec   : > { %v6192_v1 = vadd.f32 %v3024_v47, %v2856_v56  ;;  %2559 = vmatmul.bf16.gmra.mxu0 %v4887_v48  ;;  %v4923_v56 = vor.u32 %v5503_v32, %v4920_v34  ;;  %v4950_v34 = vld [vmem:[%s5766_s12 + $0x780] sm:$0xf] }
 0x1ed   : > { %2728 = vmatmul.bf16.gmra.mxu1 %v4891_v50  ;;  %v4919_v50 = vor.u32 %v5507_v30, %v4918_v29 }
 0x1ee   : > { %2897 = vmatmul.bf16.gmra.mxu2 %v4895_v61 }
 0x1ef   : > { %3066 = vmatmul.bf16.gmra.mxu3 %v4899_v62  ;;  %v4927_v62 = vor.u32 %v5508_v39, %v4926_v36  ;;  %v5515_v36 = vld [vmem:[%s5766_s12 + $0x79c] sm:$0xf0]  ;;  %v5511_v39 = vld [vmem:[%s5766_s12 + $0x784] sm:$0xf] }
 0x1f1   : > { %v2858_v6 = vpop.f32.mrf.mxu2  ;;  %v2522_v15 = vpop.f32.mrf.mxu0 }
 0x1f2   : > { %v3027_v10 = vpop.f32.mrf.mxu3  ;;  %v2859_v12 = vadd.f32 %v2858_v6, %v2690_v63  ;;  %v2691_v18 = vpop.f32.mrf.mxu1  ;;  %v4931_v63 = vor.u32 %v5504_v43, %v4928_v44  ;;  %v4952_v43 = vld [vmem:[%s5766_s12 + $0x7a0] sm:$0xf0]  ;;  %v4958_v44 = vld [vmem:[%s5766_s12 + $0x788] sm:$0xf] }
 0x1f3   : > { %v2692_v20 = vadd.f32 %v2691_v18, %v2522_v15 }
 0x1f4   : > { %v6194_v27 = vadd.f32 %v3027_v10, %v2859_v12 }
 0x1f9   : > { %v2860_v47 = vpop.f32.mrf.mxu2  ;;  %v2525_v60 = vpop.f32.mrf.mxu0 }
 0x1fa   : > { %v3029_v48 = vpop.f32.mrf.mxu3  ;;  %v2861_v57 = vadd.f32 %v2860_v47, %v2692_v20  ;;  %v2694_v61 = vpop.f32.mrf.mxu1  ;;  %v5516_v47 = vld [vmem:[%s5766_s12 + $0x7a4] sm:$0xf0] }
 0x1fb   : > { %v2695_v6 = vadd.f32 %v2694_v61, %v2525_v60  ;;  %v4951_v60 = vor.u32 %v5515_v36, %v4950_v34  ;;  %v4955_v61 = vor.u32 %v5511_v39, %v4952_v43 }
 0x1fc   : > { %v6204_v10 = vadd.f32 %v3029_v48, %v2861_v57  ;;  %2564 = vmatmul.bf16.gmra.mxu0 %v4919_v50  ;;  %v5512_v48 = vld [vmem:[%s5766_s12 + $0x78c] sm:$0xf] }
 0x1fd   : > { %2733 = vmatmul.bf16.gmra.mxu1 %v4923_v56  ;;  %v4960_v50 = vld [vmem:[%s5766_s12 + $0x7a8] sm:$0xf0] }
 0x1fe   : > { %2902 = vmatmul.bf16.gmra.mxu2 %v4927_v62 }
 0x1ff   : > { %3071 = vmatmul.bf16.gmra.mxu3 %v4931_v63 }
 0x201   : > { %v2863_v12 = vpop.f32.mrf.mxu2  ;;  %v2527_v20 = vpop.f32.mrf.mxu0 }
 0x202   : > { %v3032_v15 = vpop.f32.mrf.mxu3  ;;  %v2864_v18 = vadd.f32 %v2863_v12, %v2695_v6  ;;  %v2696_v29 = vpop.f32.mrf.mxu1  ;;  %v4959_v12 = vor.u32 %v5516_v47, %v4958_v44  ;;  %v4982_v47 = vld [vmem:[%s5766_s12 + $0x7c0] sm:$0xf] }
 0x203   : > { %v2697_v30 = vadd.f32 %v2696_v29, %v2527_v20 }
 0x204   : > { %v6206_v32 = vadd.f32 %v3032_v15, %v2864_v18  ;;  %v4963_v15 = vor.u32 %v5512_v48, %v4960_v50  ;;  %v5523_v48 = vld [vmem:[%s5766_s12 + $0x7dc] sm:$0xf0]  ;;  %v5519_v50 = vld [vmem:[%s5766_s12 + $0x7c4] sm:$0xf] }
 0x206   : > { %6812 = vst [vmem:[#allocation2_spill] sm:$0xff] %v6206_v32 }
 0x209   : > { %v2865_v56 = vpop.f32.mrf.mxu2  ;;  %v2530_v63 = vpop.f32.mrf.mxu0 }
 0x20a   : > { %v3034_v57 = vpop.f32.mrf.mxu3  ;;  %v2866_v62 = vadd.f32 %v2865_v56, %v2697_v30  ;;  %v2699_v6 = vpop.f32.mrf.mxu1  ;;  %v4984_v56 = vld [vmem:[%s5766_s12 + $0x7e0] sm:$0xf0] }
 0x20b   : > { %v2700_v18 = vadd.f32 %v2699_v6, %v2530_v63 }
 0x20c   : > { %v6216_v20 = vadd.f32 %v3034_v57, %v2866_v62  ;;  %2569 = vmatmul.bf16.gmra.mxu0 %v4951_v60  ;;  %v4990_v57 = vld [vmem:[%s5766_s12 + $0x7c8] sm:$0xf]  ;;  %v5520_v62 = vld [vmem:[%s5766_s12 + $0x7cc] sm:$0xf] }
 0x20d   : > { %2738 = vmatmul.bf16.gmra.mxu1 %v4955_v61  ;;  %v5524_v60 = vld [vmem:[%s5766_s12 + $0x7e4] sm:$0xf0]  ;;  %v4992_v61 = vld [vmem:[%s5766_s12 + $0x7e8] sm:$0xf0] }
 0x20e   : > { %6813 = vst [vmem:[#allocation3_spill] sm:$0xff] %v6216_v20  ;;  %2907 = vmatmul.bf16.gmra.mxu2 %v4959_v12  ;;  %v4983_v12 = vor.u32 %v5523_v48, %v4982_v47 }
 0x20f   : > { %3076 = vmatmul.bf16.gmra.mxu3 %v4963_v15  ;;  %v4987_v15 = vor.u32 %v5519_v50, %v4984_v56 }
 0x211   : > { %v2868_v29 = vpop.f32.mrf.mxu2  ;;  %v2532_v36 = vpop.f32.mrf.mxu0 }
 0x212   : > { %v3037_v30 = vpop.f32.mrf.mxu3  ;;  %v2869_v34 = vadd.f32 %v2868_v29, %v2700_v18  ;;  %v2701_v39 = vpop.f32.mrf.mxu1  ;;  %v4991_v29 = vor.u32 %v5524_v60, %v4990_v57  ;;  %v5277_v60 = vld [vmem:[%s5766_s12 + $0x2c] sm:$0xf0] }
 0x213   : > { %v2702_v43 = vadd.f32 %v2701_v39, %v2532_v36 }
 0x214   : > { %v6218_v44 = vadd.f32 %v3037_v30, %v2869_v34  ;;  %v4995_v30 = vor.u32 %v5520_v62, %v4992_v61  ;;  %v4008_v62 = vld [vmem:[%s5766_s12 + $0x30] sm:$0xf0]  ;;  %v4014_v61 = vld [vmem:[%s5766_s12 + $0x18] sm:$0xf] }
 0x216   : > { %6814 = vst [vmem:[#allocation4_spill] sm:$0xff] %v6218_v44 }
 0x219   : > { %v2870_v63 = vpop.f32.mrf.mxu2  ;;  %v2535_v32 = vpop.f32.mrf.mxu0 }
 0x21a   : > { %v3039_v6 = vpop.f32.mrf.mxu3  ;;  %v2871_v20 = vadd.f32 %v2870_v63, %v2702_v43  ;;  %v2704_v18 = vpop.f32.mrf.mxu1  ;;  %v5278_v63 = vld [vmem:[%s5766_s12 + $0x34] sm:$0xf0] }
 0x21b   : > { %v2705_v34 = vadd.f32 %v2704_v18, %v2535_v32  ;;  %v4006_v32 = vld [vmem:[%s5766_s12 + $0x10] sm:$0xf] }
 0x21c   : > { %v6228_v36 = vadd.f32 %v3039_v6, %v2871_v20  ;;  %2574 = vmatmul.bf16.gmra.mxu0 %v4983_v12  ;;  %v5273_v20 = vld [vmem:[%s5766_s12 + $0x14] sm:$0xf]  ;;  %v5274_v6 = vld [vmem:[%s5766_s12 + $0x1c] sm:$0xf] }
 0x21d   : > { %2743 = vmatmul.bf16.gmra.mxu1 %v4987_v15  ;;  %v4016_v12 = vld [vmem:[%s5766_s12 + $0x38] sm:$0xf0] }
 0x21e   : > { %6815 = vst [vmem:[#allocation5_spill] sm:$0xff] %v6228_v36  ;;  %2912 = vmatmul.bf16.gmra.mxu2 %v4991_v29  ;;  %v4007_v29 = vor.u32 %v5277_v60, %v4006_v32 }
 0x21f   : > { %3081 = vmatmul.bf16.gmra.mxu3 %v4995_v30  ;;  %v4011_v30 = vor.u32 %v5273_v20, %v4008_v62 }
 0x221   : > { %v2873_v39 = vpop.f32.mrf.mxu2  ;;  %v2537_v48 = vpop.f32.mrf.mxu0 }
 0x222   : > { %v3042_v43 = vpop.f32.mrf.mxu3  ;;  %v2874_v47 = vadd.f32 %v2873_v39, %v2705_v34  ;;  %v2706_v50 = vpop.f32.mrf.mxu1  ;;  %v4015_v39 = vor.u32 %v5278_v63, %v4014_v61  ;;  %v5285_v63 = vld [vmem:[%s5766_s12 + $0x6c] sm:$0xf0] }
 0x223   : > { %v2707_v56 = vadd.f32 %v2706_v50, %v2537_v48 }
 0x224   : > { %v6230_v57 = vadd.f32 %v3042_v43, %v2874_v47  ;;  %v4019_v43 = vor.u32 %v5274_v6, %v4016_v12  ;;  %v4040_v6 = vld [vmem:[%s5766_s12 + $0x70] sm:$0xf0]  ;;  %v4046_v12 = vld [vmem:[%s5766_s12 + $0x58] sm:$0xf] }
 0x226   : > { %6816 = vst [vmem:[#allocation6_spill] sm:$0xff] %v6230_v57 }
 0x229   : > { %v2875_v15 = vpop.f32.mrf.mxu2  ;;  %v2540_v44 = vpop.f32.mrf.mxu0 }
 0x22a   : > { %v3044_v18 = vpop.f32.mrf.mxu3  ;;  %v2876_v36 = vadd.f32 %v2875_v15, %v2707_v56  ;;  %v2709_v34 = vpop.f32.mrf.mxu1  ;;  %v5286_v15 = vld [vmem:[%s5766_s12 + $0x74] sm:$0xf0] }
 0x22b   : > { %v2710_v47 = vadd.f32 %v2709_v34, %v2540_v44  ;;  %v4038_v44 = vld [vmem:[%s5766_s12 + $0x50] sm:$0xf] }
 0x22c   : > { %v6240_v48 = vadd.f32 %v3044_v18, %v2876_v36  ;;  %3095 = vmatmul.bf16.vlgmr.msrb.gmra.mxu0 %v4007_v29  ;;  %v5281_v36 = vld [vmem:[%s5766_s12 + $0x54] sm:$0xf]  ;;  %v5282_v18 = vld [vmem:[%s5766_s12 + $0x5c] sm:$0xf] }
 0x22d   : > { %3264 = vmatmul.bf16.vlgmr.msrb.gmra.mxu1 %v4011_v30  ;;  %v4048_v29 = vld [vmem:[%s5766_s12 + $0x78] sm:$0xf0] }
 0x22e   : > { %6817 = vst [vmem:[#allocation7_spill] sm:$0xff] %v6240_v48  ;;  %3433 = vmatmul.bf16.vlgmr.msrb.gmra.mxu2 %v4015_v39  ;;  %v4039_v39 = vor.u32 %v5285_v63, %v4038_v44 }
 0x22f   : > { %3602 = vmatmul.bf16.vlgmr.msrb.gmra.mxu3 %v4019_v43  ;;  %v4043_v43 = vor.u32 %v5281_v36, %v4040_v6 }
 0x231   : > { %v2878_v50 = vpop.f32.mrf.mxu2  ;;  %v2542_v60 = vpop.f32.mrf.mxu0 }
 0x232   : > { %v3047_v56 = vpop.f32.mrf.mxu3  ;;  %v2879_v32 = vadd.f32 %v2878_v50, %v2710_v47  ;;  %v2711_v20 = vpop.f32.mrf.mxu1  ;;  %v4047_v50 = vor.u32 %v5286_v15, %v4046_v12  ;;  %v5293_v15 = vld [vmem:[%s5766_s12 + $0xac] sm:$0xf0] }
 0x233   : > { %v2712_v62 = vadd.f32 %v2711_v20, %v2542_v60 }
 0x234   : > { %v6242_v61 = vadd.f32 %v3047_v56, %v2879_v32  ;;  %v4051_v56 = vor.u32 %v5282_v18, %v4048_v29  ;;  %v4072_v18 = vld [vmem:[%s5766_s12 + $0xb0] sm:$0xf0]  ;;  %v4078_v29 = vld [vmem:[%s5766_s12 + $0x98] sm:$0xf] }
 0x236   : > { %6818 = vst [vmem:[#allocation8_spill] sm:$0xff] %v6242_v61 }
 0x239   : > { %v2880_v30 = vpop.f32.mrf.mxu2  ;;  %v2545_v57 = vpop.f32.mrf.mxu0 }
 0x23a   : > { %v3049_v34 = vpop.f32.mrf.mxu3  ;;  %v2881_v48 = vadd.f32 %v2880_v30, %v2712_v62  ;;  %v2714_v47 = vpop.f32.mrf.mxu1  ;;  %v5294_v30 = vld [vmem:[%s5766_s12 + $0xb4] sm:$0xf0] }
 0x23b   : > { %v2715_v32 = vadd.f32 %v2714_v47, %v2545_v57  ;;  %v4070_v57 = vld [vmem:[%s5766_s12 + $0x90] sm:$0xf] }
 0x23c   : > { %v6252_v60 = vadd.f32 %v3049_v34, %v2881_v48  ;;  %3100 = vmatmul.bf16.gmra.mxu0 %v4039_v39  ;;  %v5289_v48 = vld [vmem:[%s5766_s12 + $0x94] sm:$0xf]  ;;  %v5290_v34 = vld [vmem:[%s5766_s12 + $0x9c] sm:$0xf] }
 0x23d   : > { %3269 = vmatmul.bf16.gmra.mxu1 %v4043_v43  ;;  %v4080_v39 = vld [vmem:[%s5766_s12 + $0xb8] sm:$0xf0] }
 0x23e   : > { %6819 = vst [vmem:[#allocation9_spill] sm:$0xff] %v6252_v60  ;;  %3438 = vmatmul.bf16.gmra.mxu2 %v4047_v50  ;;  %v4071_v50 = vor.u32 %v5293_v15, %v4070_v57 }
 0x23f   : > { %3607 = vmatmul.bf16.gmra.mxu3 %v4051_v56  ;;  %v4075_v56 = vor.u32 %v5289_v48, %v4072_v18 }
 0x241   : > { %v2883_v20 = vpop.f32.mrf.mxu2  ;;  %v2547_v63 = vpop.f32.mrf.mxu0 }
 0x242   : > { %v3052_v62 = vpop.f32.mrf.mxu3  ;;  %v2884_v44 = vadd.f32 %v2883_v20, %v2715_v32  ;;  %v2716_v36 = vpop.f32.mrf.mxu1  ;;  %v4079_v20 = vor.u32 %v5294_v30, %v4078_v29  ;;  %v5301_v30 = vld [vmem:[%s5766_s12 + $0xec] sm:$0xf0] }
 0x243   : > { %v2717_v6 = vadd.f32 %v2716_v36, %v2547_v63 }
 0x244   : > { %v6254_v12 = vadd.f32 %v3052_v62, %v2884_v44  ;;  %v4083_v62 = vor.u32 %v5290_v34, %v4080_v39  ;;  %v4104_v34 = vld [vmem:[%s5766_s12 + $0xf0] sm:$0xf0]  ;;  %v4110_v39 = vld [vmem:[%s5766_s12 + $0xd8] sm:$0xf] }
 0x246   : > { %6820 = vst [vmem:[#allocation10_spill] sm:$0xff] %v6254_v12 }
 0x249   : > { %v2885_v43 = vpop.f32.mrf.mxu2  ;;  %v2550_v61 = vpop.f32.mrf.mxu0 }
 0x24a   : > { %v3054_v47 = vpop.f32.mrf.mxu3  ;;  %v2886_v60 = vadd.f32 %v2885_v43, %v2717_v6  ;;  %v2719_v32 = vpop.f32.mrf.mxu1  ;;  %v5302_v43 = vld [vmem:[%s5766_s12 + $0xf4] sm:$0xf0] }
 0x24b   : > { %v2720_v44 = vadd.f32 %v2719_v32, %v2550_v61  ;;  %v4102_v61 = vld [vmem:[%s5766_s12 + $0xd0] sm:$0xf] }
 0x24c   : > { %v6264_v63 = vadd.f32 %v3054_v47, %v2886_v60  ;;  %3105 = vmatmul.bf16.gmra.mxu0 %v4071_v50  ;;  %v5297_v60 = vld [vmem:[%s5766_s12 + $0xd4] sm:$0xf]  ;;  %v5298_v47 = vld [vmem:[%s5766_s12 + $0xdc] sm:$0xf] }
 0x24d   : > { %3274 = vmatmul.bf16.gmra.mxu1 %v4075_v56  ;;  %v4112_v50 = vld [vmem:[%s5766_s12 + $0xf8] sm:$0xf0] }
 0x24e   : > { %6821 = vst [vmem:[#allocation11_spill] sm:$0xff] %v6264_v63  ;;  %3443 = vmatmul.bf16.gmra.mxu2 %v4079_v20  ;;  %v4103_v20 = vor.u32 %v5301_v30, %v4102_v61 }
 0x24f   : > { %3612 = vmatmul.bf16.gmra.mxu3 %v4083_v62  ;;  %v4107_v62 = vor.u32 %v5297_v60, %v4104_v34 }
 0x251   : > { %v2888_v36 = vpop.f32.mrf.mxu2  ;;  %v2552_v15 = vpop.f32.mrf.mxu0 }
 0x252   : > { %v3057_v6 = vpop.f32.mrf.mxu3  ;;  %v2889_v57 = vadd.f32 %v2888_v36, %v2720_v44  ;;  %v2721_v48 = vpop.f32.mrf.mxu1  ;;  %v4111_v36 = vor.u32 %v5302_v43, %v4110_v39  ;;  %v5309_v43 = vld [vmem:[%s5766_s12 + $0x12c] sm:$0xf0] }
 0x253   : > { %v2722_v18 = vadd.f32 %v2721_v48, %v2552_v15 }
 0x254   : > { %v6266_v29 = vadd.f32 %v3057_v6, %v2889_v57  ;;  %v4115_v6 = vor.u32 %v5298_v47, %v4112_v50  ;;  %v4136_v47 = vld [vmem:[%s5766_s12 + $0x130] sm:$0xf0]  ;;  %v4142_v50 = vld [vmem:[%s5766_s12 + $0x118] sm:$0xf] }
 0x256   : > { %6822 = vst [vmem:[#allocation12_spill] sm:$0xff] %v6266_v29 }
 0x259   : > { %v2890_v56 = vpop.f32.mrf.mxu2  ;;  %v2555_v12 = vpop.f32.mrf.mxu0 }
 0x25a   : > { %v3059_v32 = vpop.f32.mrf.mxu3  ;;  %v2891_v63 = vadd.f32 %v2890_v56, %v2722_v18  ;;  %v2724_v44 = vpop.f32.mrf.mxu1  ;;  %v5310_v56 = vld [vmem:[%s5766_s12 + $0x134] sm:$0xf0] }
 0x25b   : > { %v2725_v57 = vadd.f32 %v2724_v44, %v2555_v12  ;;  %v4134_v12 = vld [vmem:[%s5766_s12 + $0x110] sm:$0xf] }
 0x25c   : > { %v6276_v15 = vadd.f32 %v3059_v32, %v2891_v63  ;;  %3110 = vmatmul.bf16.gmra.mxu0 %v4103_v20  ;;  %v5305_v63 = vld [vmem:[%s5766_s12 + $0x114] sm:$0xf]  ;;  %v5306_v32 = vld [vmem:[%s5766_s12 + $0x11c] sm:$0xf] }
 0x25d   : > { %3279 = vmatmul.bf16.gmra.mxu1 %v4107_v62  ;;  %v4144_v20 = vld [vmem:[%s5766_s12 + $0x138] sm:$0xf0] }
 0x25e   : > { %6823 = vst [vmem:[#allocation13_spill] sm:$0xff] %v6276_v15  ;;  %3448 = vmatmul.bf16.gmra.mxu2 %v4111_v36  ;;  %v4135_v36 = vor.u32 %v5309_v43, %v4134_v12 }
 0x25f   : > { %3617 = vmatmul.bf16.gmra.mxu3 %v4115_v6  ;;  %v4139_v6 = vor.u32 %v5305_v63, %v4136_v47 }
 0x261   : > { %v2893_v48 = vpop.f32.mrf.mxu2  ;;  %v2557_v30 = vpop.f32.mrf.mxu0 }
 0x262   : > { %v3062_v18 = vpop.f32.mrf.mxu3  ;;  %v2894_v61 = vadd.f32 %v2893_v48, %v2725_v57  ;;  %v2726_v60 = vpop.f32.mrf.mxu1  ;;  %v4143_v48 = vor.u32 %v5310_v56, %v4142_v50  ;;  %v5317_v56 = vld [vmem:[%s5766_s12 + $0x16c] sm:$0xf0] }
 0x263   : > { %v2727_v34 = vadd.f32 %v2726_v60, %v2557_v30 }
 0x264   : > { %v6278_v39 = vadd.f32 %v3062_v18, %v2894_v61  ;;  %v4147_v18 = vor.u32 %v5306_v32, %v4144_v20  ;;  %v4168_v32 = vld [vmem:[%s5766_s12 + $0x170] sm:$0xf0]  ;;  %v4174_v20 = vld [vmem:[%s5766_s12 + $0x158] sm:$0xf] }
 0x266   : > { %6824 = vst [vmem:[#allocation14_spill] sm:$0xff] %v6278_v39 }
 0x269   : > { %v2895_v62 = vpop.f32.mrf.mxu2  ;;  %v2560_v29 = vpop.f32.mrf.mxu0 }
 0x26a   : > { %v3064_v44 = vpop.f32.mrf.mxu3  ;;  %v2896_v15 = vadd.f32 %v2895_v62, %v2727_v34  ;;  %v2729_v57 = vpop.f32.mrf.mxu1  ;;  %v5318_v62 = vld [vmem:[%s5766_s12 + $0x174] sm:$0xf0] }
 0x26b   : > { %v2730_v61 = vadd.f32 %v2729_v57, %v2560_v29  ;;  %v4166_v29 = vld [vmem:[%s5766_s12 + $0x150] sm:$0xf] }
 0x26c   : > { %v6288_v30 = vadd.f32 %v3064_v44, %v2896_v15  ;;  %3115 = vmatmul.bf16.gmra.mxu0 %v4135_v36  ;;  %v5313_v15 = vld [vmem:[%s5766_s12 + $0x154] sm:$0xf]  ;;  %v5314_v44 = vld [vmem:[%s5766_s12 + $0x15c] sm:$0xf] }
 0x26d   : > { %3284 = vmatmul.bf16.gmra.mxu1 %v4139_v6  ;;  %v4176_v36 = vld [vmem:[%s5766_s12 + $0x178] sm:$0xf0] }
 0x26e   : > { %6825 = vst [vmem:[#allocation15_spill] sm:$0xff] %v6288_v30  ;;  %3453 = vmatmul.bf16.gmra.mxu2 %v4143_v48  ;;  %v4167_v48 = vor.u32 %v5317_v56, %v4166_v29 }
 0x26f   : > { %3622 = vmatmul.bf16.gmra.mxu3 %v4147_v18  ;;  %v4171_v18 = vor.u32 %v5313_v15, %v4168_v32 }
 0x271   : > { %v2898_v60 = vpop.f32.mrf.mxu2  ;;  %v2562_v43 = vpop.f32.mrf.mxu0 }
 0x272   : > { %v3067_v34 = vpop.f32.mrf.mxu3  ;;  %v2899_v12 = vadd.f32 %v2898_v60, %v2730_v61  ;;  %v2731_v63 = vpop.f32.mrf.mxu1  ;;  %v4175_v60 = vor.u32 %v5318_v62, %v4174_v20  ;;  %v5325_v62 = vld [vmem:[%s5766_s12 + $0x1ac] sm:$0xf0] }
 0x273   : > { %v2732_v47 = vadd.f32 %v2731_v63, %v2562_v43 }
 0x274   : > { %v6290_v50 = vadd.f32 %v3067_v34, %v2899_v12  ;;  %v4179_v34 = vor.u32 %v5314_v44, %v4176_v36  ;;  %v4200_v44 = vld [vmem:[%s5766_s12 + $0x1b0] sm:$0xf0]  ;;  %v4206_v36 = vld [vmem:[%s5766_s12 + $0x198] sm:$0xf] }
 0x276   : > { %6826 = vst [vmem:[#allocation16_spill] sm:$0xff] %v6290_v50 }
 0x279   : > { %v2900_v6 = vpop.f32.mrf.mxu2  ;;  %v2565_v39 = vpop.f32.mrf.mxu0 }
 0x27a   : > { %v3069_v57 = vpop.f32.mrf.mxu3  ;;  %v2901_v30 = vadd.f32 %v2900_v6, %v2732_v47  ;;  %v2734_v61 = vpop.f32.mrf.mxu1  ;;  %v5326_v6 = vld [vmem:[%s5766_s12 + $0x1b4] sm:$0xf0] }
 0x27b   : > { %v2735_v12 = vadd.f32 %v2734_v61, %v2565_v39  ;;  %v4198_v39 = vld [vmem:[%s5766_s12 + $0x190] sm:$0xf]  ;;  %v4207_v50 = vor.u32 %v5326_v6, %v4206_v36 }
 0x27c   : > { %v6300_v43 = vadd.f32 %v3069_v57, %v2901_v30  ;;  %3120 = vmatmul.bf16.gmra.mxu0 %v4167_v48  ;;  %v5321_v30 = vld [vmem:[%s5766_s12 + $0x194] sm:$0xf]  ;;  %v5322_v57 = vld [vmem:[%s5766_s12 + $0x19c] sm:$0xf]  ;;  %v4230_v36 = vld [vmem:[%s5766_s12 + $0x1d0] sm:$0xf] }
 0x27d   : > { %3289 = vmatmul.bf16.gmra.mxu1 %v4171_v18  ;;  %v4208_v48 = vld [vmem:[%s5766_s12 + $0x1b8] sm:$0xf0]  ;;  %v5333_v6 = vld [vmem:[%s5766_s12 + $0x1ec] sm:$0xf0] }
 0x27e   : > { %6827 = vst [vmem:[#allocation17_spill] sm:$0xff] %v6300_v43  ;;  %3458 = vmatmul.bf16.gmra.mxu2 %v4175_v60  ;;  %v4199_v60 = vor.u32 %v5325_v62, %v4198_v39 }
 0x27f   : > { %3627 = vmatmul.bf16.gmra.mxu3 %v4179_v34  ;;  %v4203_v34 = vor.u32 %v5321_v30, %v4200_v44 }
 0x281   : > { %v2903_v63 = vpop.f32.mrf.mxu2  ;;  %v2567_v56 = vpop.f32.mrf.mxu0 }
 0x282   : > { %v3072_v47 = vpop.f32.mrf.mxu3  ;;  %v2904_v29 = vadd.f32 %v2903_v63, %v2735_v12  ;;  %v2736_v15 = vpop.f32.mrf.mxu1 }
 0x283   : > { %v2737_v32 = vadd.f32 %v2736_v15, %v2567_v56  ;;  %v4211_v56 = vor.u32 %v5322_v57, %v4208_v48  ;;  %v5329_v57 = vld [vmem:[%s5766_s12 + $0x1d4] sm:$0xf] }
 0x284   : > { %v6302_v20 = vadd.f32 %v3072_v47, %v2904_v29  ;;  %v4232_v48 = vld [vmem:[%s5766_s12 + $0x1f0] sm:$0xf0] }
 0x286   : > { %6828 = vst [vmem:[#allocation18_spill] sm:$0xff] %v6302_v20 }
 0x289   : > { %v2905_v18 = vpop.f32.mrf.mxu2  ;;  %v2570_v12 = vpop.f32.mrf.mxu0 }
 0x28a   : > { %v3074_v61 = vpop.f32.mrf.mxu3  ;;  %v2906_v43 = vadd.f32 %v2905_v18, %v2737_v32  ;;  %v2739_v63 = vpop.f32.mrf.mxu1  ;;  %v4238_v18 = vld [vmem:[%s5766_s12 + $0x1d8] sm:$0xf] }
 0x28b   : > { %v2740_v47 = vadd.f32 %v2739_v63, %v2570_v12 }
 0x28c   : > { %v6312_v29 = vadd.f32 %v3074_v61, %v2906_v43  ;;  %3125 = vmatmul.bf16.gmra.mxu0 %v4199_v60  ;;  %v6318_v43 = vld [vmem:[%s6810_s2] ss:$0 sm:$0xff]  ;;  %v5334_v61 = vld [vmem:[%s5766_s12 + $0x1f4] sm:$0xf0]  ;;  %v5330_v60 = vld [vmem:[%s5766_s12 + $0x1dc] sm:$0xf] }
 0x28d   : > { %3294 = vmatmul.bf16.gmra.mxu1 %v4203_v34  ;;  %261 = vst [vmem:[%s6323_s19 + $0xd0] sm:$0xff] %v6318_v43  ;;  %v4240_v34 = vld [vmem:[%s5766_s12 + $0x1f8] sm:$0xf0] }
 0x28e   : > { %6829 = vst [vmem:[#allocation19_spill] sm:$0xff] %v6312_v29  ;;  %3463 = vmatmul.bf16.gmra.mxu2 %v4207_v50 }
 0x28f   : > { %3632 = vmatmul.bf16.gmra.mxu3 %v4211_v56  ;;  %262 = vst [vmem:[%s6323_s19 + $0xd8] sm:$0xff] %v6318_v43  ;;  %v4231_v56 = vor.u32 %v5333_v6, %v4230_v36 }
 0x290   : > { %263 = vst [vmem:[%s6323_s19 + $0xe0] sm:$0xff] %v6318_v43 }
 0x291   : > { %v2908_v15 = vpop.f32.mrf.mxu2  ;;  %v2572_v62 = vpop.f32.mrf.mxu0  ;;  %264 = vst [vmem:[%s6323_s19 + $0xe8] sm:$0xff] %v6318_v43 }
 0x292   : > { %v3077_v32 = vpop.f32.mrf.mxu3  ;;  %v2909_v39 = vadd.f32 %v2908_v15, %v2740_v47  ;;  %v2741_v30 = vpop.f32.mrf.mxu1  ;;  %265 = vst [vmem:[%s6323_s19 + $0xf0] sm:$0xff] %v6318_v43  ;;  %v4235_v47 = vor.u32 %v5329_v57, %v4232_v48 }
 0x293   : > { %v2742_v44 = vadd.f32 %v2741_v30, %v2572_v62  ;;  %266 = vst [vmem:[%s6323_s19 + $0xf8] sm:$0xff] %v6318_v43  ;;  %v4239_v62 = vor.u32 %v5334_v61, %v4238_v18  ;;  %v4243_v30 = vor.u32 %v5330_v60, %v4240_v34  ;;  %v4262_v60 = vld [vmem:[%s5766_s12 + $0x210] sm:$0xf] }
 0x294   : > { %v6325_v50 = vadd.f32 %v3077_v32, %v2909_v39  ;;  %267 = vst [vmem:[%s6323_s19 + $0x100] sm:$0xff] %v6318_v43  ;;  %v5341_v34 = vld [vmem:[%s5766_s12 + $0x22c] sm:$0xf0] }
 0x295   : > { %268 = vst [vmem:[%s6323_s19 + $0x108] sm:$0xff] %v6318_v43 }
 0x296   : > { %6830 = vst [vmem:[#allocation20_spill] sm:$0xff] %v6325_v50 }
 0x297   : > { %269 = vst [vmem:[%s6323_s19 + $0x110] sm:$0xff] %v6318_v43 }
 0x298   : > { %270 = vst [vmem:[%s6323_s19 + $0x118] sm:$0xff] %v6318_v43 }
 0x299   : > { %v2910_v12 = vpop.f32.mrf.mxu2  ;;  %v2575_v32 = vpop.f32.mrf.mxu0  ;;  %271 = vst [vmem:[%s6323_s19 + $0x120] sm:$0xff] %v6318_v43 }
 0x29a   : > { %v3079_v63 = vpop.f32.mrf.mxu3  ;;  %v2911_v15 = vadd.f32 %v2910_v12, %v2742_v44  ;;  %v2744_v39 = vpop.f32.mrf.mxu1  ;;  %272 = vst [vmem:[%s6323_s19 + $0x128] sm:$0xff] %v6318_v43  ;;  %v5337_v12 = vld [vmem:[%s5766_s12 + $0x214] sm:$0xf] }
 0x29b   : > { %v2745_v50 = vadd.f32 %v2744_v39, %v2575_v32  ;;  %273 = vst [vmem:[%s6323_s19 + $0x130] sm:$0xff] %v6318_v43 }
 0x29c   : > { %v6351_v29 = vadd.f32 %v3079_v63, %v2911_v15  ;;  %3130 = vmatmul.bf16.gmra.mxu0 %v4231_v56  ;;  %274 = vst [vmem:[%s6323_s19 + $0x138] sm:$0xff] %v6318_v43  ;;  %v4270_v63 = vld [vmem:[%s5766_s12 + $0x218] sm:$0xf]  ;;  %v4272_v15 = vld [vmem:[%s5766_s12 + $0x238] sm:$0xf0] }
 0x29d   : > { %3299 = vmatmul.bf16.gmra.mxu1 %v4235_v47  ;;  %275 = vst [vmem:[%s6323_s19 + $0x140] sm:$0xff] %v6318_v43  ;;  %v5342_v56 = vld [vmem:[%s5766_s12 + $0x234] sm:$0xf0]  ;;  %v5338_v47 = vld [vmem:[%s5766_s12 + $0x21c] sm:$0xf] }
 0x29e   : > { %6831 = vst [vmem:[#allocation21_spill] sm:$0xff] %v6351_v29  ;;  %3468 = vmatmul.bf16.gmra.mxu2 %v4239_v62  ;;  %v4263_v62 = vor.u32 %v5341_v34, %v4262_v60 }
 0x29f   : > { %3637 = vmatmul.bf16.gmra.mxu3 %v4243_v30  ;;  %276 = vst [vmem:[%s6323_s19 + $0x148] sm:$0xff] %v6318_v43 }
 0x2a0   : > { %277 = vst [vmem:[%s6323_s19 + $0x150] sm:$0xff] %v6318_v43 }
 0x2a1   : > { %v2913_v44 = vpop.f32.mrf.mxu2  ;;  %v2577_v57 = vpop.f32.mrf.mxu0  ;;  %278 = vst [vmem:[%s6323_s19 + $0x158] sm:$0xff] %v6318_v43 }
 0x2a2   : > { %v3082_v36 = vpop.f32.mrf.mxu3  ;;  %v2914_v6 = vadd.f32 %v2913_v44, %v2745_v50  ;;  %v2746_v48 = vpop.f32.mrf.mxu1  ;;  %v4264_v50 = vld [vmem:[%s5766_s12 + $0x230] sm:$0xf0]  ;;  %279 = vst [vmem:[%s6323_s19 + $0x160] sm:$0xff] %v6318_v43 }
 0x2a3   : > { %v2747_v18 = vadd.f32 %v2746_v48, %v2577_v57  ;;  %280 = vst [vmem:[%s6323_s19 + $0x168] sm:$0xff] %v6318_v43  ;;  %v4267_v30 = vor.u32 %v5337_v12, %v4264_v50  ;;  %v4271_v57 = vor.u32 %v5342_v56, %v4270_v63  ;;  %v4275_v48 = vor.u32 %v5338_v47, %v4272_v15  ;;  %v4294_v15 = vld [vmem:[%s5766_s12 + $0x250] sm:$0xf] }
 0x2a4   : > { %v6369_v61 = vadd.f32 %v3082_v36, %v2914_v6  ;;  %281 = vst [vmem:[%s6323_s19 + $0x170] sm:$0xff] %v6318_v43 }
 0x2a5   : > { %282 = vst [vmem:[%s6323_s19 + $0x178] sm:$0xff] %v6318_v43 }
 0x2a6   : > { %6832 = vst [vmem:[#allocation22_spill] sm:$0xff] %v6369_v61 }
 0x2a7   : > { %283 = vst [vmem:[%s6323_s19 + $0x180] sm:$0xff] %v6318_v43 }
 0x2a8   : > { %284 = vst [vmem:[%s6323_s19 + $0x188] sm:$0xff] %v6318_v43 }
 0x2a9   : > { %v2915_v32 = vpop.f32.mrf.mxu2  ;;  %v3096_v36 = vpop.f32.mrf.mxu0  ;;  %285 = vst [vmem:[%s6323_s19 + $0x190] sm:$0xff] %v6318_v43 }
 0x2aa   : > { %v3084_v39 = vpop.f32.mrf.mxu3  ;;  %v2916_v44 = vadd.f32 %v2915_v32, %v2747_v18  ;;  %v3265_v6 = vpop.f32.mrf.mxu1  ;;  %v3097_v60 = vadd.f32 %v3096_v36, %v5894_v33  ;;  %286 = vst [vmem:[%s6323_s19 + $0x198] sm:$0xff] %v6318_v43  ;;  %v5349_v32 = vld [vmem:[%s5766_s12 + $0x26c] sm:$0xf0]  ;;  %v5350_v36 = vld [vmem:[%s5766_s12 + $0x274] sm:$0xf0] }
 0x2ab   : > { %287 = vst [vmem:[%s6323_s19 + $0x1a0] sm:$0xff] %v6318_v43 }
 0x2ac   : > { %v6395_v61 = vadd.f32 %v3084_v39, %v2916_v44  ;;  %3135 = vmatmul.bf16.gmra.mxu0 %v4263_v62  ;;  %288 = vst [vmem:[%s6323_s19 + $0x1a8] sm:$0xff] %v6318_v43  ;;  %v3266_v18 = vadd.f32 %v3265_v6, %v3097_v60  ;;  %v5345_v39 = vld [vmem:[%s5766_s12 + $0x254] sm:$0xf]  ;;  %v4302_v44 = vld [vmem:[%s5766_s12 + $0x258] sm:$0xf] }
 0x2ad   : > { %3304 = vmatmul.bf16.gmra.mxu1 %v4267_v30  ;;  %289 = vst [vmem:[%s6323_s19 + $0x1b0] sm:$0xff] %v6318_v43  ;;  %v4296_v62 = vld [vmem:[%s5766_s12 + $0x270] sm:$0xf0]  ;;  %v5346_v6 = vld [vmem:[%s5766_s12 + $0x25c] sm:$0xf] }
 0x2ae   : > { %6833 = vst [vmem:[#allocation23_spill] sm:$0xff] %v6395_v61  ;;  %3473 = vmatmul.bf16.gmra.mxu2 %v4271_v57  ;;  %v4304_v57 = vld [vmem:[%s5766_s12 + $0x278] sm:$0xf0] }
 0x2af   : > { %3642 = vmatmul.bf16.gmra.mxu3 %v4275_v48  ;;  %290 = vst [vmem:[%s6323_s19 + $0x1b8] sm:$0xff] %v6318_v43  ;;  %v4307_v61 = vor.u32 %v5346_v6, %v4304_v57  ;;  %v5353_v57 = vld [vmem:[%s5766_s12 + $0x294] sm:$0xf] }
 0x2b0   : > { %291 = vst [vmem:[%s6323_s19 + $0x1c0] sm:$0xff] %v6318_v43 }
 0x2b1   : > { %v3434_v33 = vpop.f32.mrf.mxu2  ;;  %v3098_v50 = vpop.f32.mrf.mxu0  ;;  %292 = vst [vmem:[%s6323_s19 + $0x1c8] sm:$0xff] %v6318_v43 }
 0x2b2   : > { %v3603_v34 = vpop.f32.mrf.mxu3  ;;  %v3435_v12 = vadd.f32 %v3434_v33, %v3266_v18  ;;  %v3267_v63 = vpop.f32.mrf.mxu1  ;;  %293 = vst [vmem:[%s6323_s19 + $0x1d0] sm:$0xff] %v6318_v43  ;;  %v3099_v47 = vadd.f32 %v3098_v50, %v5904_v52  ;;  %v4295_v18 = vor.u32 %v5349_v32, %v4294_v15  ;;  %v4299_v33 = vor.u32 %v5345_v39, %v4296_v62 }
 0x2b3   : > { %294 = vst [vmem:[%s6323_s19 + $0x1d8] sm:$0xff] %v6318_v43 }
 0x2b4   : > { %v3604_v56 = vadd.f32 %v3603_v34, %v3435_v12  ;;  %295 = vst [vmem:[%s6323_s19 + $0x1e0] sm:$0xff] %v6318_v43  ;;  %v3268_v48 = vadd.f32 %v3267_v63, %v3099_v47 }
 0x2b5   : > { %296 = vst [vmem:[%s6323_s19 + $0x1e8] sm:$0xff] %v6318_v43 }
 0x2b6   : > { %v3763_v30 = vadd.f32 %v6318_v43, %v3604_v56  ;;  %297 = vst [vmem:[%s6323_s19 + $0x1f0] sm:$0xff] %v6318_v43  ;;  %v4303_v56 = vor.u32 %v5350_v36, %v4302_v44  ;;  %v4326_v36 = vld [vmem:[%s5766_s12 + $0x290] sm:$0xf] }
 0x2b7   : > { %298 = vst [vmem:[%s6323_s19 + $0x1f8] sm:$0xff] %v6318_v43 }
 0x2b8   : > { %3827 = vst [vmem:[%s6323_s19] sm:$0xff] %v3763_v30 }
 0x2b9   : > { %v3436_v52 = vpop.f32.mrf.mxu2  ;;  %v3101_v12 = vpop.f32.mrf.mxu0 }
 0x2ba   : > { %v3605_v60 = vpop.f32.mrf.mxu3  ;;  %v3437_v34 = vadd.f32 %v3436_v52, %v3268_v48  ;;  %v3270_v50 = vpop.f32.mrf.mxu1  ;;  %v3102_v20 = vadd.f32 %v3101_v12, %v5906_v59  ;;  %v4334_v48 = vld [vmem:[%s5766_s12 + $0x298] sm:$0xf] }
 0x2bb   : > { %v5358_v52 = vld [vmem:[%s5766_s12 + $0x2b4] sm:$0xf0] }
 0x2bc   : > { %v3606_v29 = vadd.f32 %v3605_v60, %v3437_v34  ;;  %3140 = vmatmul.bf16.gmra.mxu0 %v4295_v18  ;;  %v3271_v47 = vadd.f32 %v3270_v50, %v3102_v20  ;;  %v5354_v60 = vld [vmem:[%s5766_s12 + $0x29c] sm:$0xf] }
 0x2bd   : > { %3309 = vmatmul.bf16.gmra.mxu1 %v4299_v33  ;;  %v4336_v20 = vld [vmem:[%s5766_s12 + $0x2b8] sm:$0xf0] }
 0x2be   : > { %v3764_v63 = vadd.f32 %v6318_v43, %v3606_v29  ;;  %3478 = vmatmul.bf16.gmra.mxu2 %v4303_v56  ;;  %v5357_v29 = vld [vmem:[%s5766_s12 + $0x2ac] sm:$0xf0] }
 0x2bf   : > { %3647 = vmatmul.bf16.gmra.mxu3 %v4307_v61  ;;  %v4328_v61 = vld [vmem:[%s5766_s12 + $0x2b0] sm:$0xf0]  ;;  %v4327_v12 = vor.u32 %v5357_v29, %v4326_v36 }
 0x2c0   : > { %3828 = vst [vmem:[%s6323_s19 + $0x8] sm:$0xff] %v3764_v63  ;;  %v4331_v50 = vor.u32 %v5353_v57, %v4328_v61  ;;  %v4358_v61 = vld [vmem:[%s5766_s12 + $0x2d0] sm:$0xf] }
 0x2c1   : > { %v3439_v15 = vpop.f32.mrf.mxu2  ;;  %v3103_v59 = vpop.f32.mrf.mxu0 }
 0x2c2   : > { %v3608_v32 = vpop.f32.mrf.mxu3  ;;  %v3440_v39 = vadd.f32 %v3439_v15, %v3271_v47  ;;  %v3272_v62 = vpop.f32.mrf.mxu1  ;;  %v3104_v44 = vadd.f32 %v3103_v59, %v5916_v14  ;;  %v4335_v47 = vor.u32 %v5358_v52, %v4334_v48  ;;  %v4339_v15 = vor.u32 %v5354_v60, %v4336_v20  ;;  %v5365_v48 = vld [vmem:[%s5766_s12 + $0x2ec] sm:$0xf0]  ;;  %v5361_v60 = vld [vmem:[%s5766_s12 + $0x2d4] sm:$0xf] }
 0x2c3   : > { %v4360_v20 = vld [vmem:[%s5766_s12 + $0x2f0] sm:$0xf0] }
 0x2c4   : > { %v3609_v30 = vadd.f32 %v3608_v32, %v3440_v39  ;;  %v3273_v18 = vadd.f32 %v3272_v62, %v3104_v44 }
 0x2c6   : > { %v3765_v6 = vadd.f32 %v6318_v43, %v3609_v30 }
 0x2c8   : > { %3829 = vst [vmem:[%s6323_s19 + $0x10] sm:$0xff] %v3765_v6 }
 0x2c9   : > { %v3441_v33 = vpop.f32.mrf.mxu2  ;;  %v3106_v63 = vpop.f32.mrf.mxu0 }
 0x2ca   : > { %v3610_v34 = vpop.f32.mrf.mxu3  ;;  %v3442_v56 = vadd.f32 %v3441_v33, %v3273_v18  ;;  %v3275_v14 = vpop.f32.mrf.mxu1  ;;  %v3107_v39 = vadd.f32 %v3106_v63, %v5927_v24  ;;  %v4366_v18 = vld [vmem:[%s5766_s12 + $0x2d8] sm:$0xf] }
 0x2cb   : > { %v5366_v33 = vld [vmem:[%s5766_s12 + $0x2f4] sm:$0xf0] }
 0x2cc   : > { %v3611_v32 = vadd.f32 %v3610_v34, %v3442_v56  ;;  %3145 = vmatmul.bf16.gmra.mxu0 %v4327_v12  ;;  %v3276_v62 = vadd.f32 %v3275_v14, %v3107_v39  ;;  %v5362_v34 = vld [vmem:[%s5766_s12 + $0x2dc] sm:$0xf]  ;;  %v4359_v14 = vor.u32 %v5365_v48, %v4358_v61  ;;  %v4367_v39 = vor.u32 %v5366_v33, %v4366_v18  ;;  %v5369_v18 = vld [vmem:[%s5766_s12 + $0x314] sm:$0xf] }
 0x2cd   : > { %3314 = vmatmul.bf16.gmra.mxu1 %v4331_v50  ;;  %v4368_v12 = vld [vmem:[%s5766_s12 + $0x2f8] sm:$0xf0]  ;;  %v4392_v33 = vld [vmem:[%s5766_s12 + $0x330] sm:$0xf0] }
 0x2ce   : > { %v3766_v59 = vadd.f32 %v6318_v43, %v3611_v32  ;;  %3483 = vmatmul.bf16.gmra.mxu2 %v4335_v47  ;;  %v4363_v47 = vor.u32 %v5361_v60, %v4360_v20  ;;  %v5373_v60 = vld [vmem:[%s5766_s12 + $0x32c] sm:$0xf0] }
 0x2cf   : > { %3652 = vmatmul.bf16.gmra.mxu3 %v4339_v15 }
 0x2d0   : > { %3830 = vst [vmem:[%s6323_s19 + $0x18] sm:$0xff] %v3766_v59  ;;  %v4371_v59 = vor.u32 %v5362_v34, %v4368_v12  ;;  %v4398_v34 = vld [vmem:[%s5766_s12 + $0x318] sm:$0xf] }
 0x2d1   : > { %v3444_v30 = vpop.f32.mrf.mxu2  ;;  %v3108_v24 = vpop.f32.mrf.mxu0  ;;  %v5374_v12 = vld [vmem:[%s5766_s12 + $0x334] sm:$0xf0] }
 0x2d2   : > { %v3613_v44 = vpop.f32.mrf.mxu3  ;;  %v3445_v36 = vadd.f32 %v3444_v30, %v3276_v62  ;;  %v3277_v29 = vpop.f32.mrf.mxu1  ;;  %v3109_v57 = vadd.f32 %v3108_v24, %v5940_v45 }
 0x2d4   : > { %v3614_v6 = vadd.f32 %v3613_v44, %v3445_v36  ;;  %v3278_v50 = vadd.f32 %v3277_v29, %v3109_v57 }
 0x2d6   : > { %v3767_v52 = vadd.f32 %v6318_v43, %v3614_v6 }
 0x2d8   : > { %3831 = vst [vmem:[%s6323_s19 + $0x20] sm:$0xff] %v3767_v52  ;;  %v4390_v52 = vld [vmem:[%s5766_s12 + $0x310] sm:$0xf] }
 0x2d9   : > { %v3446_v56 = vpop.f32.mrf.mxu2  ;;  %v3111_v32 = vpop.f32.mrf.mxu0 }
 0x2da   : > { %v3615_v63 = vpop.f32.mrf.mxu3  ;;  %v3447_v15 = vadd.f32 %v3446_v56, %v3278_v50  ;;  %v3280_v45 = vpop.f32.mrf.mxu1  ;;  %v3112_v30 = vadd.f32 %v3111_v32, %v5942_v53  ;;  %v5370_v50 = vld [vmem:[%s5766_s12 + $0x31c] sm:$0xf]  ;;  %v4395_v32 = vor.u32 %v5369_v18, %v4392_v33  ;;  %v5377_v18 = vld [vmem:[%s5766_s12 + $0x354] sm:$0xf] }
 0x2db   : > { %v4400_v56 = vld [vmem:[%s5766_s12 + $0x338] sm:$0xf0]  ;;  %v4424_v33 = vld [vmem:[%s5766_s12 + $0x370] sm:$0xf0] }
 0x2dc   : > { %v3616_v62 = vadd.f32 %v3615_v63, %v3447_v15  ;;  %3150 = vmatmul.bf16.gmra.mxu0 %v4359_v14  ;;  %v3281_v36 = vadd.f32 %v3280_v45, %v3112_v30  ;;  %v4391_v15 = vor.u32 %v5373_v60, %v4390_v52  ;;  %v4422_v52 = vld [vmem:[%s5766_s12 + $0x350] sm:$0xf] }
 0x2dd   : > { %3319 = vmatmul.bf16.gmra.mxu1 %v4363_v47  ;;  %v5381_v60 = vld [vmem:[%s5766_s12 + $0x36c] sm:$0xf0] }
 0x2de   : > { %v3768_v44 = vadd.f32 %v6318_v43, %v3616_v62  ;;  %3488 = vmatmul.bf16.gmra.mxu2 %v4367_v39  ;;  %v4403_v62 = vor.u32 %v5370_v50, %v4400_v56  ;;  %v5378_v50 = vld [vmem:[%s5766_s12 + $0x35c] sm:$0xf] }
 0x2df   : > { %3657 = vmatmul.bf16.gmra.mxu3 %v4371_v59  ;;  %v4399_v59 = vor.u32 %v5374_v12, %v4398_v34  ;;  %v4430_v34 = vld [vmem:[%s5766_s12 + $0x358] sm:$0xf]  ;;  %v4432_v56 = vld [vmem:[%s5766_s12 + $0x378] sm:$0xf0] }
 0x2e0   : > { %3832 = vst [vmem:[%s6323_s19 + $0x28] sm:$0xff] %v3768_v44  ;;  %v5382_v12 = vld [vmem:[%s5766_s12 + $0x374] sm:$0xf0] }
 0x2e1   : > { %v3449_v24 = vpop.f32.mrf.mxu2  ;;  %v3113_v53 = vpop.f32.mrf.mxu0 }
 0x2e2   : > { %v3618_v29 = vpop.f32.mrf.mxu3  ;;  %v3450_v6 = vadd.f32 %v3449_v24, %v3281_v36  ;;  %v3282_v57 = vpop.f32.mrf.mxu1  ;;  %v3114_v48 = vadd.f32 %v3113_v53, %v5952_v9 }
 0x2e4   : > { %v3619_v61 = vadd.f32 %v3618_v29, %v3450_v6  ;;  %v3283_v63 = vadd.f32 %v3282_v57, %v3114_v48 }
 0x2e6   : > { %v3769_v20 = vadd.f32 %v6318_v43, %v3619_v61 }
 0x2e8   : > { %3833 = vst [vmem:[%s6323_s19 + $0x30] sm:$0xff] %v3769_v20 }
 0x2e9   : > { %v3451_v14 = vpop.f32.mrf.mxu2  ;;  %v3116_v39 = vpop.f32.mrf.mxu0 }
 0x2ea   : > { %v3620_v47 = vpop.f32.mrf.mxu3  ;;  %v3452_v45 = vadd.f32 %v3451_v14, %v3283_v63  ;;  %v3285_v9 = vpop.f32.mrf.mxu1  ;;  %v3117_v44 = vadd.f32 %v3116_v39, %v5954_v17 }
 0x2ec   : > { %v3621_v30 = vadd.f32 %v3620_v47, %v3452_v45  ;;  %3155 = vmatmul.bf16.gmra.mxu0 %v4391_v15  ;;  %v3286_v24 = vadd.f32 %v3285_v9, %v3117_v44  ;;  %v4423_v15 = vor.u32 %v5381_v60, %v4422_v52  ;;  %v4431_v9 = vor.u32 %v5382_v12, %v4430_v34  ;;  %v5385_v60 = vld [vmem:[%s5766_s12 + $0x394] sm:$0xf]  ;;  %v5386_v34 = vld [vmem:[%s5766_s12 + $0x39c] sm:$0xf] }
 0x2ed   : > { %3324 = vmatmul.bf16.gmra.mxu1 %v4395_v32  ;;  %v4427_v32 = vor.u32 %v5377_v18, %v4424_v33  ;;  %v4462_v18 = vld [vmem:[%s5766_s12 + $0x398] sm:$0xf]  ;;  %v4464_v12 = vld [vmem:[%s5766_s12 + $0x3b8] sm:$0xf0] }
 0x2ee   : > { %v3770_v36 = vadd.f32 %v6318_v43, %v3621_v30  ;;  %3493 = vmatmul.bf16.gmra.mxu2 %v4399_v59  ;;  %v4435_v59 = vor.u32 %v5378_v50, %v4432_v56  ;;  %v5390_v33 = vld [vmem:[%s5766_s12 + $0x3b4] sm:$0xf0] }
 0x2ef   : > { %3662 = vmatmul.bf16.gmra.mxu3 %v4403_v62 }
 0x2f0   : > { %3834 = vst [vmem:[%s6323_s19 + $0x38] sm:$0xff] %v3770_v36 }
 0x2f1   : > { %v3454_v29 = vpop.f32.mrf.mxu2  ;;  %v3118_v17 = vpop.f32.mrf.mxu0 }
 0x2f2   : > { %v3623_v6 = vpop.f32.mrf.mxu3  ;;  %v3455_v53 = vadd.f32 %v3454_v29, %v3286_v24  ;;  %v3287_v57 = vpop.f32.mrf.mxu1  ;;  %v3119_v48 = vadd.f32 %v3118_v17, %v5964_v38 }
 0x2f4   : > { %v3624_v61 = vadd.f32 %v3623_v6, %v3455_v53  ;;  %v3288_v63 = vadd.f32 %v3287_v57, %v3119_v48  ;;  %v5389_v48 = vld [vmem:[%s5766_s12 + $0x3ac] sm:$0xf0] }
 0x2f6   : > { %v3771_v20 = vadd.f32 %v6318_v43, %v3624_v61  ;;  %v4454_v61 = vld [vmem:[%s5766_s12 + $0x390] sm:$0xf] }
 0x2f8   : > { %3835 = vst [vmem:[%s6323_s19 + $0x40] sm:$0xff] %v3771_v20  ;;  %v4456_v20 = vld [vmem:[%s5766_s12 + $0x3b0] sm:$0xf0] }
 0x2f9   : > { %v3456_v14 = vpop.f32.mrf.mxu2  ;;  %v3121_v39 = vpop.f32.mrf.mxu0 }
 0x2fa   : > { %v3625_v47 = vpop.f32.mrf.mxu3  ;;  %v3457_v45 = vadd.f32 %v3456_v14, %v3288_v63  ;;  %v3290_v38 = vpop.f32.mrf.mxu1  ;;  %v3122_v30 = vadd.f32 %v3121_v39, %v5966_v46  ;;  %v4455_v14 = vor.u32 %v5389_v48, %v4454_v61  ;;  %v4467_v39 = vor.u32 %v5386_v34, %v4464_v12  ;;  %v4488_v61 = vld [vmem:[%s5766_s12 + $0x3f0] sm:$0xf0]  ;;  %v4494_v48 = vld [vmem:[%s5766_s12 + $0x3d8] sm:$0xf] }
 0x2fc   : > { %v3626_v62 = vadd.f32 %v3625_v47, %v3457_v45  ;;  %3160 = vmatmul.bf16.gmra.mxu0 %v4423_v15  ;;  %v3291_v36 = vadd.f32 %v3290_v38, %v3122_v30  ;;  %v4459_v47 = vor.u32 %v5385_v60, %v4456_v20  ;;  %v4463_v45 = vor.u32 %v5390_v33, %v4462_v18  ;;  %v5394_v60 = vld [vmem:[%s5766_s12 + $0x3dc] sm:$0xf] }
 0x2fd   : > { %3329 = vmatmul.bf16.gmra.mxu1 %v4427_v32  ;;  %v4496_v20 = vld [vmem:[%s5766_s12 + $0x3f8] sm:$0xf0] }
 0x2fe   : > { %v3772_v44 = vadd.f32 %v6318_v43, %v3626_v62  ;;  %3498 = vmatmul.bf16.gmra.mxu2 %v4431_v9 }
 0x2ff   : > { %3667 = vmatmul.bf16.gmra.mxu3 %v4435_v59 }
 0x300   : > { %3836 = vst [vmem:[%s6323_s19 + $0x48] sm:$0xff] %v3772_v44 }
 0x301   : > { %v3459_v24 = vpop.f32.mrf.mxu2  ;;  %v3123_v46 = vpop.f32.mrf.mxu0 }
 0x302   : > { %v3628_v29 = vpop.f32.mrf.mxu3  ;;  %v3460_v6 = vadd.f32 %v3459_v24, %v3291_v36  ;;  %v3292_v53 = vpop.f32.mrf.mxu1  ;;  %v3124_v57 = vadd.f32 %v3123_v46, %v5976_v4  ;;  %v4486_v46 = vld [vmem:[%s5766_s12 + $0x3d0] sm:$0xf] }
 0x304   : > { %v3629_v17 = vadd.f32 %v3628_v29, %v3460_v6  ;;  %v3293_v50 = vadd.f32 %v3292_v53, %v3124_v57  ;;  %v5397_v53 = vld [vmem:[%s5766_s12 + $0x3ec] sm:$0xf0]  ;;  %v5393_v57 = vld [vmem:[%s5766_s12 + $0x3d4] sm:$0xf] }
 0x305   : > { %v4487_v12 = vor.u32 %v5397_v53, %v4486_v46  ;;  %v5406_v46 = vld [vmem:[%s5766_s12 + $0x434] sm:$0xf0]  ;;  %v5402_v53 = vld [vmem:[%s5766_s12 + $0x41c] sm:$0xf] }
 0x306   : > { %v3773_v52 = vadd.f32 %v6318_v43, %v3629_v17 }
 0x308   : > { %3837 = vst [vmem:[%s6323_s19 + $0x50] sm:$0xff] %v3773_v52  ;;  %v5398_v52 = vld [vmem:[%s5766_s12 + $0x3f4] sm:$0xf0] }
 0x309   : > { %v3461_v56 = vpop.f32.mrf.mxu2  ;;  %v3126_v32 = vpop.f32.mrf.mxu0 }
 0x30a   : > { %v3630_v63 = vpop.f32.mrf.mxu3  ;;  %v3462_v15 = vadd.f32 %v3461_v56, %v3293_v50  ;;  %v3295_v4 = vpop.f32.mrf.mxu1  ;;  %v3127_v9 = vadd.f32 %v3126_v32, %v5987_v16  ;;  %v4491_v50 = vor.u32 %v5393_v57, %v4488_v61 }
 0x30c   : > { %v3631_v38 = vadd.f32 %v3630_v63, %v3462_v15  ;;  %3165 = vmatmul.bf16.gmra.mxu0 %v4455_v14  ;;  %v3296_v62 = vadd.f32 %v3295_v4, %v3127_v9  ;;  %v4495_v14 = vor.u32 %v5398_v52, %v4494_v48 }
 0x30d   : > { %3334 = vmatmul.bf16.gmra.mxu1 %v4459_v47  ;;  %v4499_v47 = vor.u32 %v5394_v60, %v4496_v20 }
 0x30e   : > { %v3774_v59 = vadd.f32 %v6318_v43, %v3631_v38  ;;  %3503 = vmatmul.bf16.gmra.mxu2 %v4463_v45 }
 0x30f   : > { %3672 = vmatmul.bf16.gmra.mxu3 %v4467_v39 }
 0x310   : > { %3838 = vst [vmem:[%s6323_s19 + $0x58] sm:$0xff] %v3774_v59 }
 0x311   : > { %v3464_v30 = vpop.f32.mrf.mxu2  ;;  %v3128_v16 = vpop.f32.mrf.mxu0 }
 0x312   : > { %v3633_v44 = vpop.f32.mrf.mxu3  ;;  %v3465_v36 = vadd.f32 %v3464_v30, %v3296_v62  ;;  %v3297_v24 = vpop.f32.mrf.mxu1  ;;  %v3129_v6 = vadd.f32 %v3128_v16, %v6000_v40 }
 0x314   : > { %v3634_v29 = vadd.f32 %v3633_v44, %v3465_v36  ;;  %v3298_v18 = vadd.f32 %v3297_v24, %v3129_v6  ;;  %v4518_v44 = vld [vmem:[%s5766_s12 + $0x410] sm:$0xf]  ;;  %v5401_v24 = vld [vmem:[%s5766_s12 + $0x414] sm:$0xf]  ;;  %v4526_v6 = vld [vmem:[%s5766_s12 + $0x418] sm:$0xf] }
 0x315   : > { %v5405_v36 = vld [vmem:[%s5766_s12 + $0x42c] sm:$0xf0] }
 0x316   : > { %v3775_v17 = vadd.f32 %v6318_v43, %v3634_v29  ;;  %v4520_v29 = vld [vmem:[%s5766_s12 + $0x430] sm:$0xf0]  ;;  %v4519_v52 = vor.u32 %v5405_v36, %v4518_v44  ;;  %v4560_v44 = vld [vmem:[%s5766_s12 + $0x478] sm:$0xf0] }
 0x317   : > { %v4523_v60 = vor.u32 %v5401_v24, %v4520_v29 }
 0x318   : > { %3839 = vst [vmem:[%s6323_s19 + $0x60] sm:$0xff] %v3775_v17  ;;  %v4528_v17 = vld [vmem:[%s5766_s12 + $0x438] sm:$0xf0] }
 0x319   : > { %v3466_v33 = vpop.f32.mrf.mxu2  ;;  %v3131_v63 = vpop.f32.mrf.mxu0 }
 0x31a   : > { %v3635_v34 = vpop.f32.mrf.mxu3  ;;  %v3467_v56 = vadd.f32 %v3466_v33, %v3298_v18  ;;  %v3300_v40 = vpop.f32.mrf.mxu1  ;;  %v3132_v32 = vadd.f32 %v3131_v63, %v6002_v49  ;;  %v4527_v33 = vor.u32 %v5406_v46, %v4526_v6 }
 0x31c   : > { %v3636_v15 = vadd.f32 %v3635_v34, %v3467_v56  ;;  %3170 = vmatmul.bf16.gmra.mxu0 %v4487_v12  ;;  %v3301_v45 = vadd.f32 %v3300_v40, %v3132_v32  ;;  %v4531_v34 = vor.u32 %v5402_v53, %v4528_v17 }
 0x31d   : > { %3339 = vmatmul.bf16.gmra.mxu1 %v4491_v50 }
 0x31e   : > { %v3776_v4 = vadd.f32 %v6318_v43, %v3636_v15  ;;  %3508 = vmatmul.bf16.gmra.mxu2 %v4495_v14 }
 0x31f   : > { %3677 = vmatmul.bf16.gmra.mxu3 %v4499_v47 }
 0x320   : > { %3840 = vst [vmem:[%s6323_s19 + $0x68] sm:$0xff] %v3776_v4 }
 0x321   : > { %v3469_v39 = vpop.f32.mrf.mxu2  ;;  %v3133_v49 = vpop.f32.mrf.mxu0 }
 0x322   : > { %v3638_v38 = vpop.f32.mrf.mxu3  ;;  %v3470_v9 = vadd.f32 %v3469_v39, %v3301_v45  ;;  %v3302_v59 = vpop.f32.mrf.mxu1  ;;  %v3134_v30 = vadd.f32 %v3133_v49, %v6012_v8  ;;  %v4550_v45 = vld [vmem:[%s5766_s12 + $0x450] sm:$0xf]  ;;  %v4552_v49 = vld [vmem:[%s5766_s12 + $0x470] sm:$0xf0] }
 0x323   : > { %v5413_v39 = vld [vmem:[%s5766_s12 + $0x46c] sm:$0xf0] }
 0x324   : > { %v3639_v62 = vadd.f32 %v3638_v38, %v3470_v9  ;;  %v3303_v57 = vadd.f32 %v3302_v59, %v3134_v30  ;;  %v5409_v9 = vld [vmem:[%s5766_s12 + $0x454] sm:$0xf]  ;;  %v4558_v59 = vld [vmem:[%s5766_s12 + $0x458] sm:$0xf]  ;;  %v5410_v30 = vld [vmem:[%s5766_s12 + $0x45c] sm:$0xf]  ;;  %v4551_v29 = vor.u32 %v5413_v39, %v4550_v45 }
 0x325   : > { %v4555_v6 = vor.u32 %v5409_v9, %v4552_v49 }
 0x326   : > { %v3777_v16 = vadd.f32 %v6318_v43, %v3639_v62  ;;  %v5414_v62 = vld [vmem:[%s5766_s12 + $0x474] sm:$0xf0] }
 0x327   : > { %v4559_v17 = vor.u32 %v5414_v62, %v4558_v59 }
 0x328   : > { %3841 = vst [vmem:[%s6323_s19 + $0x70] sm:$0xff] %v3777_v16 }
 0x329   : > { %v3471_v61 = vpop.f32.mrf.mxu2  ;;  %v3136_v18 = vpop.f32.mrf.mxu0 }
 0x32a   : > { %v3640_v48 = vpop.f32.mrf.mxu3  ;;  %v3472_v20 = vadd.f32 %v3471_v61, %v3303_v57  ;;  %v3305_v8 = vpop.f32.mrf.mxu1  ;;  %v3137_v50 = vadd.f32 %v3136_v18, %v6014_v19  ;;  %v4563_v57 = vor.u32 %v5410_v30, %v4560_v44 }
 0x32c   : > { %v3641_v12 = vadd.f32 %v3640_v48, %v3472_v20  ;;  %3175 = vmatmul.bf16.gmra.mxu0 %v4519_v52  ;;  %v3306_v63 = vadd.f32 %v3305_v8, %v3137_v50  ;;  %v4582_v50 = vld [vmem:[%s5766_s12 + $0x490] sm:$0xf] }
 0x32d   : > { %3344 = vmatmul.bf16.gmra.mxu1 %v4523_v60 }
 0x32e   : > { %v3778_v56 = vadd.f32 %v6318_v43, %v3641_v12  ;;  %3513 = vmatmul.bf16.gmra.mxu2 %v4527_v33 }
 0x32f   : > { %3682 = vmatmul.bf16.gmra.mxu3 %v4531_v34 }
 0x330   : > { %3842 = vst [vmem:[%s6323_s19 + $0x78] sm:$0xff] %v3778_v56  ;;  %v5421_v56 = vld [vmem:[%s5766_s12 + $0x4ac] sm:$0xf0] }
 0x331   : > { %v3474_v40 = vpop.f32.mrf.mxu2  ;;  %v3138_v19 = vpop.f32.mrf.mxu0 }
 0x332   : > { %v3643_v14 = vpop.f32.mrf.mxu3  ;;  %v3475_v47 = vadd.f32 %v3474_v40, %v3306_v63  ;;  %v3307_v15 = vpop.f32.mrf.mxu1  ;;  %v3139_v4 = vadd.f32 %v3138_v19, %v6024_v42  ;;  %v5417_v40 = vld [vmem:[%s5766_s12 + $0x494] sm:$0xf]  ;;  %v5422_v19 = vld [vmem:[%s5766_s12 + $0x4b4] sm:$0xf0] }
 0x334   : > { %v3644_v32 = vadd.f32 %v3643_v14, %v3475_v47  ;;  %v3308_v36 = vadd.f32 %v3307_v15, %v3139_v4  ;;  %v4584_v14 = vld [vmem:[%s5766_s12 + $0x4b0] sm:$0xf0]  ;;  %v4590_v47 = vld [vmem:[%s5766_s12 + $0x498] sm:$0xf]  ;;  %v5418_v15 = vld [vmem:[%s5766_s12 + $0x49c] sm:$0xf] }
 0x335   : > { %v4587_v9 = vor.u32 %v5417_v40, %v4584_v14  ;;  %v4591_v62 = vor.u32 %v5422_v19, %v4590_v47 }
 0x336   : > { %v3779_v38 = vadd.f32 %v6318_v43, %v3644_v32  ;;  %v4592_v32 = vld [vmem:[%s5766_s12 + $0x4b8] sm:$0xf0] }
 0x337   : > { %v4595_v30 = vor.u32 %v5418_v15, %v4592_v32 }
 0x338   : > { %3843 = vst [vmem:[%s6323_s19 + $0x80] sm:$0xff] %v3779_v38  ;;  %v4583_v38 = vor.u32 %v5421_v56, %v4582_v50 }
 0x339   : > { %v3476_v16 = vpop.f32.mrf.mxu2  ;;  %v3141_v53 = vpop.f32.mrf.mxu0 }
 0x33a   : > { %v3645_v24 = vpop.f32.mrf.mxu3  ;;  %v3477_v46 = vadd.f32 %v3476_v16, %v3308_v36  ;;  %v3310_v42 = vpop.f32.mrf.mxu1  ;;  %v3142_v48 = vadd.f32 %v3141_v53, %v6026_v54 }
 0x33c   : > { %v3646_v61 = vadd.f32 %v3645_v24, %v3477_v46  ;;  %3180 = vmatmul.bf16.gmra.mxu0 %v4551_v29  ;;  %v3311_v60 = vadd.f32 %v3310_v42, %v3142_v48 }
 0x33d   : > { %3349 = vmatmul.bf16.gmra.mxu1 %v4555_v6 }
 0x33e   : > { %v3780_v52 = vadd.f32 %v6318_v43, %v3646_v61  ;;  %3518 = vmatmul.bf16.gmra.mxu2 %v4559_v17  ;;  %v5429_v61 = vld [vmem:[%s5766_s12 + $0x4ec] sm:$0xf0] }
 0x33f   : > { %3687 = vmatmul.bf16.gmra.mxu3 %v4563_v57  ;;  %v4614_v57 = vld [vmem:[%s5766_s12 + $0x4d0] sm:$0xf] }
 0x340   : > { %3844 = vst [vmem:[%s6323_s19 + $0x88] sm:$0xff] %v3780_v52  ;;  %v5425_v52 = vld [vmem:[%s5766_s12 + $0x4d4] sm:$0xf]  ;;  %v4615_v50 = vor.u32 %v5429_v61, %v4614_v57 }
 0x341   : > { %v3479_v20 = vpop.f32.mrf.mxu2  ;;  %v3143_v54 = vpop.f32.mrf.mxu0 }
 0x342   : > { %v3648_v18 = vpop.f32.mrf.mxu3  ;;  %v3480_v8 = vadd.f32 %v3479_v20, %v3311_v60  ;;  %v3312_v33 = vpop.f32.mrf.mxu1  ;;  %v3144_v12 = vadd.f32 %v3143_v54, %v6036_v13  ;;  %v4616_v60 = vld [vmem:[%s5766_s12 + $0x4f0] sm:$0xf0]  ;;  %v4622_v20 = vld [vmem:[%s5766_s12 + $0x4d8] sm:$0xf]  ;;  %v4624_v54 = vld [vmem:[%s5766_s12 + $0x4f8] sm:$0xf0] }
 0x343   : > { %v4619_v56 = vor.u32 %v5425_v52, %v4616_v60 }
 0x344   : > { %v3649_v34 = vadd.f32 %v3648_v18, %v3480_v8  ;;  %v3313_v4 = vadd.f32 %v3312_v33, %v3144_v12  ;;  %v5430_v18 = vld [vmem:[%s5766_s12 + $0x4f4] sm:$0xf0]  ;;  %v5426_v8 = vld [vmem:[%s5766_s12 + $0x4dc] sm:$0xf] }
 0x345   : > { %v4623_v14 = vor.u32 %v5430_v18, %v4622_v20  ;;  %v4627_v47 = vor.u32 %v5426_v8, %v4624_v54  ;;  %v5616_v20 = vld [vmem:[%s6323_s19 + $0xd0] sm:$0xff] }
 0x346   : > { %v3781_v63 = vadd.f32 %v6318_v43, %v3649_v34 }
 0x348   : > { %3845 = vst [vmem:[%s6323_s19 + $0x90] sm:$0xff] %v3781_v63 }
 0x349   : > { %v3481_v45 = vpop.f32.mrf.mxu2  ;;  %v3146_v59 = vpop.f32.mrf.mxu0 }
 0x34a   : > { %v3650_v39 = vpop.f32.mrf.mxu3  ;;  %v3482_v49 = vadd.f32 %v3481_v45, %v3313_v4  ;;  %v3315_v13 = vpop.f32.mrf.mxu1  ;;  %v3147_v36 = vadd.f32 %v3146_v59, %v6047_v28 }
 0x34c   : > { %v3651_v44 = vadd.f32 %v3650_v39, %v3482_v49  ;;  %3185 = vmatmul.bf16.gmra.mxu0 %v4583_v38  ;;  %v3316_v24 = vadd.f32 %v3315_v13, %v3147_v36  ;;  %v4646_v13 = vld [vmem:[%s5766_s12 + $0x510] sm:$0xf]  ;;  %v4648_v36 = vld [vmem:[%s5766_s12 + $0x530] sm:$0xf0] }
 0x34d   : > { %3354 = vmatmul.bf16.gmra.mxu1 %v4587_v9 }
 0x34e   : > { %v3782_v16 = vadd.f32 %v6318_v43, %v3651_v44  ;;  %3523 = vmatmul.bf16.gmra.mxu2 %v4591_v62  ;;  %v5437_v62 = vld [vmem:[%s5766_s12 + $0x52c] sm:$0xf0]  ;;  %v5433_v44 = vld [vmem:[%s5766_s12 + $0x514] sm:$0xf] }
 0x34f   : > { %3692 = vmatmul.bf16.gmra.mxu3 %v4595_v30 }
 0x350   : > { %3846 = vst [vmem:[%s6323_s19 + $0x98] sm:$0xff] %v3782_v16  ;;  %v4654_v16 = vld [vmem:[%s5766_s12 + $0x518] sm:$0xf] }
 0x351   : > { %v3484_v29 = vpop.f32.mrf.mxu2  ;;  %v3148_v28 = vpop.f32.mrf.mxu0 }
 0x352   : > { %v3653_v6 = vpop.f32.mrf.mxu3  ;;  %v3485_v46 = vadd.f32 %v3484_v29, %v3316_v24  ;;  %v3317_v53 = vpop.f32.mrf.mxu1  ;;  %v3149_v17 = vadd.f32 %v3148_v28, %v6060_v58  ;;  %v5438_v24 = vld [vmem:[%s5766_s12 + $0x534] sm:$0xf0]  ;;  %v5434_v29 = vld [vmem:[%s5766_s12 + $0x51c] sm:$0xf] }
 0x354   : > { %v3654_v42 = vadd.f32 %v3653_v6, %v3485_v46  ;;  %v3318_v33 = vadd.f32 %v3317_v53, %v3149_v17  ;;  %v4656_v6 = vld [vmem:[%s5766_s12 + $0x538] sm:$0xf0]  ;;  %v4651_v17 = vor.u32 %v5433_v44, %v4648_v36 }
 0x355   : > { %v4659_v52 = vor.u32 %v5434_v29, %v4656_v6 }
 0x356   : > { %v3783_v48 = vadd.f32 %v6318_v43, %v3654_v42  ;;  %v4647_v42 = vor.u32 %v5437_v62, %v4646_v13 }
 0x358   : > { %3847 = vst [vmem:[%s6323_s19 + $0xa0] sm:$0xff] %v3783_v48  ;;  %v4655_v48 = vor.u32 %v5438_v24, %v4654_v16 }
 0x359   : > { %v3486_v34 = vpop.f32.mrf.mxu2  ;;  %v3151_v40 = vpop.f32.mrf.mxu0 }
 0x35a   : > { %v3655_v12 = vpop.f32.mrf.mxu3  ;;  %v3487_v63 = vadd.f32 %v3486_v34, %v3318_v33  ;;  %v3320_v58 = vpop.f32.mrf.mxu1  ;;  %v3152_v15 = vadd.f32 %v3151_v40, %v6062_v2  ;;  %v5445_v40 = vld [vmem:[%s5766_s12 + $0x56c] sm:$0xf0] }
 0x35c   : > { %v3656_v19 = vadd.f32 %v3655_v12, %v3487_v63  ;;  %3190 = vmatmul.bf16.gmra.mxu0 %v4615_v50  ;;  %v3321_v4 = vadd.f32 %v3320_v58, %v3152_v15  ;;  %v4678_v63 = vld [vmem:[%s5766_s12 + $0x550] sm:$0xf]  ;;  %v5446_v15 = vld [vmem:[%s5766_s12 + $0x574] sm:$0xf0] }
 0x35d   : > { %3359 = vmatmul.bf16.gmra.mxu1 %v4619_v56 }
 0x35e   : > { %v3784_v32 = vadd.f32 %v6318_v43, %v3656_v19  ;;  %3528 = vmatmul.bf16.gmra.mxu2 %v4623_v14  ;;  %v5441_v14 = vld [vmem:[%s5766_s12 + $0x554] sm:$0xf]  ;;  %v4686_v19 = vld [vmem:[%s5766_s12 + $0x558] sm:$0xf] }
 0x35f   : > { %3697 = vmatmul.bf16.gmra.mxu3 %v4627_v47  ;;  %v4680_v47 = vld [vmem:[%s5766_s12 + $0x570] sm:$0xf0] }
 0x360   : > { %3848 = vst [vmem:[%s6323_s19 + $0xa8] sm:$0xff] %v3784_v32  ;;  %v5442_v32 = vld [vmem:[%s5766_s12 + $0x55c] sm:$0xf] }
 0x361   : > { %v3489_v45 = vpop.f32.mrf.mxu2  ;;  %v3153_v2 = vpop.f32.mrf.mxu0 }
 0x362   : > { %v3658_v39 = vpop.f32.mrf.mxu3  ;;  %v3490_v38 = vadd.f32 %v3489_v45, %v3321_v4  ;;  %v3322_v9 = vpop.f32.mrf.mxu1  ;;  %v3154_v59 = vadd.f32 %v3153_v2, %v6072_v31  ;;  %v4688_v4 = vld [vmem:[%s5766_s12 + $0x578] sm:$0xf0]  ;;  %v4679_v2 = vor.u32 %v5445_v40, %v4678_v63 }
 0x363   : > { %v4691_v62 = vor.u32 %v5442_v32, %v4688_v4  ;;  %v326_v63 = vld [vmem:[%s6323_s19 + $0xd8] sm:$0xff] }
 0x364   : > { %v3659_v49 = vadd.f32 %v3658_v39, %v3490_v38  ;;  %v3323_v46 = vadd.f32 %v3322_v9, %v3154_v59  ;;  %v4683_v9 = vor.u32 %v5441_v14, %v4680_v47 }
 0x366   : > { %v3785_v30 = vadd.f32 %v6318_v43, %v3659_v49 }
 0x368   : > { %3849 = vst [vmem:[%s6323_s19 + $0xb0] sm:$0xff] %v3785_v30 }
 0x369   : > { %v3491_v28 = vpop.f32.mrf.mxu2  ;;  %v3156_v31 = vpop.f32.mrf.mxu0 }
 0x36a   : > { %v3660_v53 = vpop.f32.mrf.mxu3  ;;  %v3492_v57 = vadd.f32 %v3491_v28, %v3323_v46  ;;  %v3325_v61 = vpop.f32.mrf.mxu1  ;;  %v3157_v60 = vadd.f32 %v3156_v31, %v6074_v41  ;;  %v325_v28 = vld [vmem:[%s6323_s19 + $0xd0] sm:$0xff] }
 0x36c   : > { %v3661_v43 = vadd.f32 %v3660_v53, %v3492_v57  ;;  %3195 = vmatmul.bf16.gmra.mxu0 %v4647_v42  ;;  %v3326_v8 = vadd.f32 %v3325_v61, %v3157_v60  ;;  %v5453_v57 = vld [vmem:[%s5766_s12 + $0x5ac] sm:$0xf0]  ;;  %v5449_v61 = vld [vmem:[%s5766_s12 + $0x594] sm:$0xf]  ;;  %v5450_v60 = vld [vmem:[%s5766_s12 + $0x59c] sm:$0xf] }
 0x36d   : > { %3364 = vmatmul.bf16.gmra.mxu1 %v4651_v17  ;;  %v4710_v17 = vld [vmem:[%s5766_s12 + $0x590] sm:$0xf] }
 0x36e   : > { %v3786_v18 = vadd.f32 %v5616_v20, %v3661_v43  ;;  %3533 = vmatmul.bf16.gmra.mxu2 %v4655_v48  ;;  %v4712_v48 = vld [vmem:[%s5766_s12 + $0x5b0] sm:$0xf0]  ;;  %v5454_v43 = vld [vmem:[%s5766_s12 + $0x5b4] sm:$0xf0] }
 0x36f   : > { %3702 = vmatmul.bf16.gmra.mxu3 %v4659_v52  ;;  %v4718_v52 = vld [vmem:[%s5766_s12 + $0x598] sm:$0xf] }
 0x370   : > { %3850 = vst [vmem:[%s6323_s19 + $0xb8] sm:$0xff] %v3786_v18 }
 0x371   : > { %v3494_v54 = vpop.f32.mrf.mxu2  ;;  %v3158_v34 = vpop.f32.mrf.mxu0 }
 0x372   : > { %v3663_v33 = vpop.f32.mrf.mxu3  ;;  %v3495_v41 = vadd.f32 %v3494_v54, %v3326_v8  ;;  %v3327_v12 = vpop.f32.mrf.mxu1  ;;  %v3159_v56 = vadd.f32 %v3158_v34, %v6084_v7  ;;  %v4687_v7 = vor.u32 %v5446_v15, %v4686_v19 }
 0x374   : > { %v3664_v50 = vadd.f32 %v3663_v33, %v3495_v41  ;;  %v3328_v45 = vadd.f32 %v3327_v12, %v3159_v56  ;;  %v4711_v33 = vor.u32 %v5453_v57, %v4710_v17  ;;  %v4715_v41 = vor.u32 %v5449_v61, %v4712_v48 }
 0x376   : > { %v3787_v58 = vadd.f32 %v5616_v20, %v3664_v50  ;;  %v4719_v50 = vor.u32 %v5454_v43, %v4718_v52 }
 0x378   : > { %3851 = vst [vmem:[%s6323_s19 + $0xc0] sm:$0xff] %v3787_v58 }
 0x379   : > { %v3496_v39 = vpop.f32.mrf.mxu2  ;;  %v3161_v59 = vpop.f32.mrf.mxu0 }
 0x37a   : > { %v3665_v38 = vpop.f32.mrf.mxu3  ;;  %v3497_v49 = vadd.f32 %v3496_v39, %v3328_v45  ;;  %v3330_v13 = vpop.f32.mrf.mxu1  ;;  %v3162_v44 = vadd.f32 %v3161_v59, %v6086_v21  ;;  %v327_v45 = vld [vmem:[%s6323_s19 + $0xe0] sm:$0xff]  ;;  %v5457_v59 = vld [vmem:[%s5766_s12 + $0x5d4] sm:$0xf] }
 0x37c   : > { %v3666_v30 = vadd.f32 %v3665_v38, %v3497_v49  ;;  %3200 = vmatmul.bf16.gmra.mxu0 %v4679_v2  ;;  %v3331_v16 = vadd.f32 %v3330_v13, %v3162_v44  ;;  %v4742_v2 = vld [vmem:[%s5766_s12 + $0x5d0] sm:$0xf]  ;;  %v4744_v13 = vld [vmem:[%s5766_s12 + $0x5f0] sm:$0xf0]  ;;  %v4752_v44 = vld [vmem:[%s5766_s12 + $0x5f8] sm:$0xf0] }
 0x37d   : > { %3369 = vmatmul.bf16.gmra.mxu1 %v4683_v9  ;;  %v5461_v9 = vld [vmem:[%s5766_s12 + $0x5ec] sm:$0xf0] }
 0x37e   : > { %v3788_v36 = vadd.f32 %v5616_v20, %v3666_v30  ;;  %3538 = vmatmul.bf16.gmra.mxu2 %v4687_v7  ;;  %v4720_v20 = vld [vmem:[%s5766_s12 + $0x5b8] sm:$0xf0]  ;;  %v4750_v7 = vld [vmem:[%s5766_s12 + $0x5d8] sm:$0xf] }
 0x37f   : > { %3707 = vmatmul.bf16.gmra.mxu3 %v4691_v62  ;;  %v4723_v56 = vor.u32 %v5450_v60, %v4720_v20  ;;  %v5462_v62 = vld [vmem:[%s5766_s12 + $0x5f4] sm:$0xf0]  ;;  %v5458_v30 = vld [vmem:[%s5766_s12 + $0x5dc] sm:$0xf]  ;;  %v329_v20 = vld [vmem:[%s6323_s19 + $0xf0] sm:$0xff] }
 0x380   : > { %3852 = vst [vmem:[%s6323_s19 + $0xc8] sm:$0xff] %v3788_v36 }
 0x381   : > { %v3499_v24 = vpop.f32.mrf.mxu2  ;;  %v3163_v21 = vpop.f32.mrf.mxu0 }
 0x382   : > { %v3668_v29 = vpop.f32.mrf.mxu3  ;;  %v3500_v6 = vadd.f32 %v3499_v24, %v3331_v16  ;;  %v3332_v46 = vpop.f32.mrf.mxu1  ;;  %v3164_v42 = vadd.f32 %v3163_v21, %v6096_v51 }
 0x384   : > { %v3669_v53 = vadd.f32 %v3668_v29, %v3500_v6  ;;  %v3333_v18 = vadd.f32 %v3332_v46, %v3164_v42  ;;  %v4743_v29 = vor.u32 %v5461_v9, %v4742_v2  ;;  %v4747_v6 = vor.u32 %v5457_v59, %v4744_v13  ;;  %v328_v42 = vld [vmem:[%s6323_s19 + $0xe8] sm:$0xff] }
 0x386   : > { %v3789_v31 = vadd.f32 %v3669_v53, %v325_v28  ;;  %v4751_v28 = vor.u32 %v5462_v62, %v4750_v7  ;;  %v4755_v53 = vor.u32 %v5458_v30, %v4752_v44  ;;  %v331_v62 = vld [vmem:[%s6323_s19 + $0x100] sm:$0xff] }
 0x388   : > { %3853 = vst [vmem:[%s6323_s19 + $0xd0] sm:$0xff] %v3789_v31 }
 0x389   : > { %v3501_v8 = vpop.f32.mrf.mxu2  ;;  %v3166_v12 = vpop.f32.mrf.mxu0 }
 0x38a   : > { %v3670_v54 = vpop.f32.mrf.mxu3  ;;  %v3502_v34 = vadd.f32 %v3501_v8, %v3333_v18  ;;  %v3335_v51 = vpop.f32.mrf.mxu1  ;;  %v3167_v58 = vadd.f32 %v3166_v12, %v6107_v3  ;;  %v4776_v12 = vld [vmem:[%s5766_s12 + $0x630] sm:$0xf0] }
 0x38c   : > { %v3671_v40 = vadd.f32 %v3670_v54, %v3502_v34  ;;  %3205 = vmatmul.bf16.gmra.mxu0 %v4711_v33  ;;  %v3336_v47 = vadd.f32 %v3335_v51, %v3167_v58  ;;  %v4774_v54 = vld [vmem:[%s5766_s12 + $0x610] sm:$0xf]  ;;  %v5465_v34 = vld [vmem:[%s5766_s12 + $0x614] sm:$0xf]  ;;  %v4782_v51 = vld [vmem:[%s5766_s12 + $0x618] sm:$0xf] }
 0x38d   : > { %3374 = vmatmul.bf16.gmra.mxu1 %v4715_v41  ;;  %v5469_v33 = vld [vmem:[%s5766_s12 + $0x62c] sm:$0xf0] }
 0x38e   : > { %v3790_v14 = vadd.f32 %v3671_v40, %v326_v63  ;;  %3543 = vmatmul.bf16.gmra.mxu2 %v4719_v50  ;;  %v5470_v50 = vld [vmem:[%s5766_s12 + $0x634] sm:$0xf0]  ;;  %v4784_v63 = vld [vmem:[%s5766_s12 + $0x638] sm:$0xf0] }
 0x38f   : > { %3712 = vmatmul.bf16.gmra.mxu3 %v4723_v56  ;;  %v5466_v56 = vld [vmem:[%s5766_s12 + $0x61c] sm:$0xf] }
 0x390   : > { %3854 = vst [vmem:[%s6323_s19 + $0xd8] sm:$0xff] %v3790_v14 }
 0x391   : > { %v3504_v19 = vpop.f32.mrf.mxu2  ;;  %v3168_v3 = vpop.f32.mrf.mxu0 }
 0x392   : > { %v3673_v15 = vpop.f32.mrf.mxu3  ;;  %v3505_v32 = vadd.f32 %v3504_v19, %v3336_v47  ;;  %v3337_v4 = vpop.f32.mrf.mxu1  ;;  %v3169_v38 = vadd.f32 %v3168_v3, %v6120_v37  ;;  %v4775_v47 = vor.u32 %v5469_v33, %v4774_v54  ;;  %v4779_v19 = vor.u32 %v5465_v34, %v4776_v12  ;;  %v333_v12 = vld [vmem:[%s6323_s19 + $0x110] sm:$0xff] }
 0x393   : > { %v4783_v3 = vor.u32 %v5470_v50, %v4782_v51 }
 0x394   : > { %v3674_v39 = vadd.f32 %v3673_v15, %v3505_v32  ;;  %v3338_v36 = vadd.f32 %v3337_v4, %v3169_v38  ;;  %v4787_v4 = vor.u32 %v5466_v56, %v4784_v63  ;;  %v4838_v56 = vld [vmem:[%s5766_s12 + $0x690] sm:$0xf] }
 0x395   : > { %v5485_v63 = vld [vmem:[%s5766_s12 + $0x6ac] sm:$0xf0] }
 0x396   : > { %v3791_v49 = vadd.f32 %v3674_v39, %v327_v45  ;;  %v330_v45 = vld [vmem:[%s6323_s19 + $0xf8] sm:$0xff] }
 0x398   : > { %3855 = vst [vmem:[%s6323_s19 + $0xe0] sm:$0xff] %v3791_v49 }
 0x399   : > { %v3506_v16 = vpop.f32.mrf.mxu2  ;;  %v3171_v46 = vpop.f32.mrf.mxu0 }
 0x39a   : > { %v3675_v24 = vpop.f32.mrf.mxu3  ;;  %v3507_v21 = vadd.f32 %v3506_v16, %v3338_v36  ;;  %v3340_v37 = vpop.f32.mrf.mxu1  ;;  %v3172_v57 = vadd.f32 %v3171_v46, %v6122_v55  ;;  %v4806_v36 = vld [vmem:[%s5766_s12 + $0x650] sm:$0xf]  ;;  %v5478_v46 = vld [vmem:[%s5766_s12 + $0x674] sm:$0xf0] }
 0x39b   : > { %v5477_v16 = vld [vmem:[%s5766_s12 + $0x66c] sm:$0xf0] }
 0x39c   : > { %v3676_v17 = vadd.f32 %v3675_v24, %v3507_v21  ;;  %3210 = vmatmul.bf16.gmra.mxu0 %v4743_v29  ;;  %v3341_v61 = vadd.f32 %v3340_v37, %v3172_v57  ;;  %v5473_v29 = vld [vmem:[%s5766_s12 + $0x654] sm:$0xf]  ;;  %v4814_v21 = vld [vmem:[%s5766_s12 + $0x658] sm:$0xf]  ;;  %v5474_v37 = vld [vmem:[%s5766_s12 + $0x65c] sm:$0xf]  ;;  %v4807_v57 = vor.u32 %v5477_v16, %v4806_v36 }
 0x39d   : > { %3379 = vmatmul.bf16.gmra.mxu1 %v4747_v6  ;;  %v4808_v6 = vld [vmem:[%s5766_s12 + $0x670] sm:$0xf0] }
 0x39e   : > { %v3792_v31 = vadd.f32 %v3676_v17, %v328_v42  ;;  %3548 = vmatmul.bf16.gmra.mxu2 %v4751_v28  ;;  %v4816_v28 = vld [vmem:[%s5766_s12 + $0x678] sm:$0xf0] }
 0x39f   : > { %3717 = vmatmul.bf16.gmra.mxu3 %v4755_v53 }
 0x3a0   : > { %3856 = vst [vmem:[%s6323_s19 + $0xe8] sm:$0xff] %v3792_v31  ;;  %v4811_v31 = vor.u32 %v5473_v29, %v4808_v6 }
 0x3a1   : > { %v3509_v48 = vpop.f32.mrf.mxu2  ;;  %v3173_v55 = vpop.f32.mrf.mxu0 }
 0x3a2   : > { %v3678_v52 = vpop.f32.mrf.mxu3  ;;  %v3510_v43 = vadd.f32 %v3509_v48, %v3341_v61  ;;  %v3342_v60 = vpop.f32.mrf.mxu1  ;;  %v3174_v8 = vadd.f32 %v3173_v55, %v6132_v25  ;;  %v332_v55 = vld [vmem:[%s6323_s19 + $0x108] sm:$0xff] }
 0x3a4   : > { %v3679_v18 = vadd.f32 %v3678_v52, %v3510_v43  ;;  %v3343_v40 = vadd.f32 %v3342_v60, %v3174_v8  ;;  %v4815_v52 = vor.u32 %v5478_v46, %v4814_v21  ;;  %v4819_v43 = vor.u32 %v5474_v37, %v4816_v28  ;;  %v4870_v21 = vld [vmem:[%s5766_s12 + $0x6d0] sm:$0xf]  ;;  %v5489_v28 = vld [vmem:[%s5766_s12 + $0x6d4] sm:$0xf] }
 0x3a5   : > { %v5493_v46 = vld [vmem:[%s5766_s12 + $0x6ec] sm:$0xf0] }
 0x3a6   : > { %v3793_v41 = vadd.f32 %v3679_v18, %v329_v20 }
 0x3a8   : > { %3857 = vst [vmem:[%s6323_s19 + $0xf0] sm:$0xff] %v3793_v41 }
 0x3a9   : > { %v3511_v58 = vpop.f32.mrf.mxu2  ;;  %v3176_v32 = vpop.f32.mrf.mxu0 }
 0x3aa   : > { %v3680_v14 = vpop.f32.mrf.mxu3  ;;  %v3512_v15 = vadd.f32 %v3511_v58, %v3343_v40  ;;  %v3345_v25 = vpop.f32.mrf.mxu1  ;;  %v3177_v38 = vadd.f32 %v3176_v32, %v6134_v35  ;;  %v5481_v58 = vld [vmem:[%s5766_s12 + $0x694] sm:$0xf]  ;;  %v4848_v32 = vld [vmem:[%s5766_s12 + $0x6b8] sm:$0xf0] }
 0x3ac   : > { %v3681_v39 = vadd.f32 %v3680_v14, %v3512_v15  ;;  %3215 = vmatmul.bf16.gmra.mxu0 %v4775_v47  ;;  %v3346_v9 = vadd.f32 %v3345_v25, %v3177_v38  ;;  %v4840_v14 = vld [vmem:[%s5766_s12 + $0x6b0] sm:$0xf0]  ;;  %v4846_v47 = vld [vmem:[%s5766_s12 + $0x698] sm:$0xf]  ;;  %v5482_v15 = vld [vmem:[%s5766_s12 + $0x69c] sm:$0xf] }
 0x3ad   : > { %3384 = vmatmul.bf16.gmra.mxu1 %v4779_v19  ;;  %v5486_v19 = vld [vmem:[%s5766_s12 + $0x6b4] sm:$0xf0] }
 0x3ae   : > { %v3794_v2 = vadd.f32 %v3681_v39, %v330_v45  ;;  %3553 = vmatmul.bf16.gmra.mxu2 %v4783_v3  ;;  %v4839_v45 = vor.u32 %v5485_v63, %v4838_v56  ;;  %v4843_v39 = vor.u32 %v5481_v58, %v4840_v14  ;;  %v337_v56 = vld [vmem:[%s6323_s19 + $0x130] sm:$0xff] }
 0x3af   : > { %3722 = vmatmul.bf16.gmra.mxu3 %v4787_v4  ;;  %v4902_v58 = vld [vmem:[%s5766_s12 + $0x710] sm:$0xf] }
 0x3b0   : > { %3858 = vst [vmem:[%s6323_s19 + $0xf8] sm:$0xff] %v3794_v2  ;;  %v5501_v14 = vld [vmem:[%s5766_s12 + $0x72c] sm:$0xf0] }
 0x3b1   : > { %v3514_v49 = vpop.f32.mrf.mxu2  ;;  %v3178_v35 = vpop.f32.mrf.mxu0 }
 0x3b2   : > { %v3683_v59 = vpop.f32.mrf.mxu3  ;;  %v3515_v13 = vadd.f32 %v3514_v49, %v3346_v9  ;;  %v3347_v7 = vpop.f32.mrf.mxu1  ;;  %v3179_v44 = vadd.f32 %v3178_v35, %v6144_v11  ;;  %v4847_v9 = vor.u32 %v5486_v19, %v4846_v47  ;;  %v4851_v49 = vor.u32 %v5482_v15, %v4848_v32  ;;  %v5497_v19 = vld [vmem:[%s5766_s12 + $0x714] sm:$0xf]  ;;  %v4910_v32 = vld [vmem:[%s5766_s12 + $0x718] sm:$0xf] }
 0x3b3   : > { %v4904_v15 = vld [vmem:[%s5766_s12 + $0x730] sm:$0xf0] }
 0x3b4   : > { %v3684_v30 = vadd.f32 %v3683_v59, %v3515_v13  ;;  %v3348_v53 = vadd.f32 %v3347_v7, %v3179_v44  ;;  %v334_v59 = vld [vmem:[%s6323_s19 + $0x118] sm:$0xff] }
 0x3b6   : > { %v3795_v24 = vadd.f32 %v3684_v30, %v331_v62 }
 0x3b8   : > { %3859 = vst [vmem:[%s6323_s19 + $0x100] sm:$0xff] %v3795_v24  ;;  %v335_v24 = vld [vmem:[%s6323_s19 + $0x120] sm:$0xff] }
 0x3b9   : > { %v3516_v42 = vpop.f32.mrf.mxu2  ;;  %v3181_v48 = vpop.f32.mrf.mxu0 }
 0x3ba   : > { %v3685_v17 = vpop.f32.mrf.mxu3  ;;  %v3517_v61 = vadd.f32 %v3516_v42, %v3348_v53  ;;  %v3350_v11 = vpop.f32.mrf.mxu1  ;;  %v3182_v20 = vadd.f32 %v3181_v48, %v6146_v26  ;;  %v4872_v53 = vld [vmem:[%s5766_s12 + $0x6f0] sm:$0xf0]  ;;  %v4878_v42 = vld [vmem:[%s5766_s12 + $0x6d8] sm:$0xf] }
 0x3bc   : > { %v3686_v60 = vadd.f32 %v3685_v17, %v3517_v61  ;;  %3220 = vmatmul.bf16.gmra.mxu0 %v4807_v57  ;;  %v3351_v8 = vadd.f32 %v3350_v11, %v3182_v20  ;;  %v5494_v17 = vld [vmem:[%s5766_s12 + $0x6f4] sm:$0xf0]  ;;  %v5490_v57 = vld [vmem:[%s5766_s12 + $0x6dc] sm:$0xf] }
 0x3bd   : > { %3389 = vmatmul.bf16.gmra.mxu1 %v4811_v31  ;;  %v4880_v31 = vld [vmem:[%s5766_s12 + $0x6f8] sm:$0xf0]  ;;  %v4879_v20 = vor.u32 %v5494_v17, %v4878_v42  ;;  %v4936_v42 = vld [vmem:[%s5766_s12 + $0x770] sm:$0xf0]  ;;  %v4942_v17 = vld [vmem:[%s5766_s12 + $0x758] sm:$0xf] }
 0x3be   : > { %v3796_v18 = vadd.f32 %v3686_v60, %v332_v55  ;;  %3558 = vmatmul.bf16.gmra.mxu2 %v4815_v52  ;;  %v4871_v52 = vor.u32 %v5493_v46, %v4870_v21  ;;  %v4934_v46 = vld [vmem:[%s5766_s12 + $0x750] sm:$0xf] }
 0x3bf   : > { %3727 = vmatmul.bf16.gmra.mxu3 %v4819_v43  ;;  %v4875_v43 = vor.u32 %v5489_v28, %v4872_v53  ;;  %v5505_v53 = vld [vmem:[%s5766_s12 + $0x754] sm:$0xf] }
 0x3c0   : > { %3860 = vst [vmem:[%s6323_s19 + $0x108] sm:$0xff] %v3796_v18  ;;  %v4883_v18 = vor.u32 %v5490_v57, %v4880_v31  ;;  %v5510_v57 = vld [vmem:[%s5766_s12 + $0x774] sm:$0xf0]  ;;  %v5506_v31 = vld [vmem:[%s5766_s12 + $0x75c] sm:$0xf] }
 0x3c1   : > { %v3519_v54 = vpop.f32.mrf.mxu2  ;;  %v3183_v26 = vpop.f32.mrf.mxu0 }
 0x3c2   : > { %v3688_v33 = vpop.f32.mrf.mxu3  ;;  %v3520_v41 = vadd.f32 %v3519_v54, %v3351_v8  ;;  %v3352_v34 = vpop.f32.mrf.mxu1  ;;  %v3184_v50 = vadd.f32 %v3183_v26, %v6156_v0  ;;  %v336_v8 = vld [vmem:[%s6323_s19 + $0x128] sm:$0xff] }
 0x3c4   : > { %v3689_v51 = vadd.f32 %v3688_v33, %v3520_v41  ;;  %v3353_v25 = vadd.f32 %v3352_v34, %v3184_v50 }
 0x3c6   : > { %v3797_v40 = vadd.f32 %v3689_v51, %v333_v12 }
 0x3c8   : > { %3861 = vst [vmem:[%s6323_s19 + $0x110] sm:$0xff] %v3797_v40 }
 0x3c9   : > { %v3521_v3 = vpop.f32.mrf.mxu2  ;;  %v3186_v2 = vpop.f32.mrf.mxu0 }
 0x3ca   : > { %v3690_v4 = vpop.f32.mrf.mxu3  ;;  %v3522_v38 = vadd.f32 %v3521_v3, %v3353_v25  ;;  %v3355_v0 = vpop.f32.mrf.mxu1  ;;  %v3187_v35 = vadd.f32 %v3186_v2, %v6167_v23  ;;  %v5502_v25 = vld [vmem:[%s5766_s12 + $0x734] sm:$0xf0]  ;;  %v5498_v3 = vld [vmem:[%s5766_s12 + $0x71c] sm:$0xf]  ;;  %v4903_v2 = vor.u32 %v5501_v14, %v4902_v58  ;;  %v6835_v58 = vld [vmem:[#allocation3_spill] sm:$0xff] }
 0x3cc   : > { %v3691_v13 = vadd.f32 %v3690_v4, %v3522_v38  ;;  %3225 = vmatmul.bf16.gmra.mxu0 %v4839_v45  ;;  %v3356_v62 = vadd.f32 %v3355_v0, %v3187_v35  ;;  %v4912_v4 = vld [vmem:[%s5766_s12 + $0x738] sm:$0xf0]  ;;  %v4907_v0 = vor.u32 %v5497_v19, %v4904_v15  ;;  %v5517_v19 = vld [vmem:[%s5766_s12 + $0x7ac] sm:$0xf0] }
 0x3cd   : > { %3394 = vmatmul.bf16.gmra.mxu1 %v4843_v39  ;;  %v338_v35 = vld [vmem:[%s6323_s19 + $0x138] sm:$0xff] }
 0x3ce   : > { %v3798_v7 = vadd.f32 %v3691_v13, %v334_v59  ;;  %3563 = vmatmul.bf16.gmra.mxu2 %v4847_v9  ;;  %v4911_v59 = vor.u32 %v5502_v25, %v4910_v32  ;;  %v4915_v13 = vor.u32 %v5498_v3, %v4912_v4  ;;  %v5513_v32 = vld [vmem:[%s5766_s12 + $0x794] sm:$0xf]  ;;  %v4974_v3 = vld [vmem:[%s5766_s12 + $0x798] sm:$0xf] }
 0x3cf   : > { %3732 = vmatmul.bf16.gmra.mxu3 %v4851_v49  ;;  %v4968_v25 = vld [vmem:[%s5766_s12 + $0x7b0] sm:$0xf0]  ;;  %v5518_v4 = vld [vmem:[%s5766_s12 + $0x7b4] sm:$0xf0] }
 0x3d0   : > { %3862 = vst [vmem:[%s6323_s19 + $0x118] sm:$0xff] %v3798_v7 }
 0x3d1   : > { %v3524_v30 = vpop.f32.mrf.mxu2  ;;  %v3188_v23 = vpop.f32.mrf.mxu0 }
 0x3d2   : > { %v3693_v44 = vpop.f32.mrf.mxu3  ;;  %v3525_v36 = vadd.f32 %v3524_v30, %v3356_v62  ;;  %v3357_v16 = vpop.f32.mrf.mxu1  ;;  %v3189_v6 = vadd.f32 %v3188_v23, %v6180_v5 }
 0x3d4   : > { %v3694_v29 = vadd.f32 %v3693_v44, %v3525_v36  ;;  %v3358_v61 = vadd.f32 %v3357_v16, %v3189_v6 }
 0x3d6   : > { %v3799_v37 = vadd.f32 %v3694_v29, %v335_v24  ;;  %v339_v29 = vld [vmem:[%s6323_s19 + $0x140] sm:$0xff] }
 0x3d8   : > { %3863 = vst [vmem:[%s6323_s19 + $0x120] sm:$0xff] %v3799_v37  ;;  %v5509_v37 = vld [vmem:[%s5766_s12 + $0x76c] sm:$0xf0] }
 0x3d9   : > { %v3526_v48 = vpop.f32.mrf.mxu2  ;;  %v3191_v60 = vpop.f32.mrf.mxu0 }
 0x3da   : > { %v3695_v11 = vpop.f32.mrf.mxu3  ;;  %v3527_v55 = vadd.f32 %v3526_v48, %v3358_v61  ;;  %v3360_v5 = vpop.f32.mrf.mxu1  ;;  %v3192_v33 = vadd.f32 %v3191_v60, %v6182_v22  ;;  %v4944_v61 = vld [vmem:[%s5766_s12 + $0x778] sm:$0xf0] }
 0x3dc   : > { %v3696_v54 = vadd.f32 %v3695_v11, %v3527_v55  ;;  %3230 = vmatmul.bf16.gmra.mxu0 %v4871_v52  ;;  %v3361_v26 = vadd.f32 %v3360_v5, %v3192_v33  ;;  %v4939_v55 = vor.u32 %v5505_v53, %v4936_v42  ;;  %v6834_v33 = vld [vmem:[#allocation2_spill] sm:$0xff]  ;;  %v4998_v42 = vld [vmem:[%s5766_s12 + $0x7d0] sm:$0xf] }
 0x3dd   : > { %3399 = vmatmul.bf16.gmra.mxu1 %v4875_v43  ;;  %v4935_v43 = vor.u32 %v5509_v37, %v4934_v46  ;;  %v343_v46 = vld [vmem:[%s6323_s19 + $0x160] sm:$0xff] }
 0x3de   : > { %v3800_v41 = vadd.f32 %v3696_v54, %v336_v8  ;;  %3568 = vmatmul.bf16.gmra.mxu2 %v4879_v20  ;;  %v4943_v20 = vor.u32 %v5510_v57, %v4942_v17  ;;  %v340_v8 = vld [vmem:[%s6323_s19 + $0x148] sm:$0xff]  ;;  %v5525_v17 = vld [vmem:[%s5766_s12 + $0x7ec] sm:$0xf0] }
 0x3df   : > { %3737 = vmatmul.bf16.gmra.mxu3 %v4883_v18  ;;  %v4947_v18 = vor.u32 %v5506_v31, %v4944_v61  ;;  %v5521_v31 = vld [vmem:[%s5766_s12 + $0x7d4] sm:$0xf] }
 0x3e0   : > { %3864 = vst [vmem:[%s6323_s19 + $0x128] sm:$0xff] %v3800_v41  ;;  %v5000_v61 = vld [vmem:[%s5766_s12 + $0x7f0] sm:$0xf0] }
 0x3e1   : > { %v3529_v34 = vpop.f32.mrf.mxu2  ;;  %v3193_v22 = vpop.f32.mrf.mxu0 }
 0x3e2   : > { %v3698_v12 = vpop.f32.mrf.mxu3  ;;  %v3530_v51 = vadd.f32 %v3529_v34, %v3361_v26  ;;  %v3362_v50 = vpop.f32.mrf.mxu1  ;;  %v3194_v40 = vadd.f32 %v3193_v22, %v6192_v1 }
 0x3e4   : > { %v3699_v63 = vadd.f32 %v3698_v12, %v3530_v51  ;;  %v3363_v45 = vadd.f32 %v3362_v50, %v3194_v40 }
 0x3e6   : > { %v3801_v47 = vadd.f32 %v3699_v63, %v337_v56  ;;  %v341_v63 = vld [vmem:[%s6323_s19 + $0x150] sm:$0xff] }
 0x3e8   : > { %3865 = vst [vmem:[%s6323_s19 + $0x130] sm:$0xff] %v3801_v47  ;;  %v4966_v47 = vld [vmem:[%s5766_s12 + $0x790] sm:$0xf] }
 0x3e9   : > { %v3531_v39 = vpop.f32.mrf.mxu2  ;;  %v3196_v49 = vpop.f32.mrf.mxu0 }
 0x3ea   : > { %v3700_v38 = vpop.f32.mrf.mxu3  ;;  %v3532_v9 = vadd.f32 %v3531_v39, %v3363_v45  ;;  %v3365_v1 = vpop.f32.mrf.mxu1  ;;  %v3197_v62 = vadd.f32 %v3196_v49, %v6194_v27  ;;  %v5514_v45 = vld [vmem:[%s5766_s12 + $0x79c] sm:$0xf]  ;;  %v4971_v49 = vor.u32 %v5513_v32, %v4968_v25 }
 0x3eb   : > { %v4976_v39 = vld [vmem:[%s5766_s12 + $0x7b8] sm:$0xf0] }
 0x3ec   : > { %v3701_v7 = vadd.f32 %v3700_v38, %v3532_v9  ;;  %3235 = vmatmul.bf16.gmra.mxu0 %v4903_v2  ;;  %v3366_v44 = vadd.f32 %v3365_v1, %v3197_v62  ;;  %v4967_v9 = vor.u32 %v5517_v19, %v4966_v47  ;;  %v342_v62 = vld [vmem:[%s6323_s19 + $0x158] sm:$0xff]  ;;  %v345_v47 = vld [vmem:[%s6323_s19 + $0x170] sm:$0xff] }
 0x3ed   : > { %3404 = vmatmul.bf16.gmra.mxu1 %v4907_v0 }
 0x3ee   : > { %v3802_v30 = vadd.f32 %v3701_v7, %v338_v35  ;;  %3573 = vmatmul.bf16.gmra.mxu2 %v4911_v59  ;;  %v4975_v35 = vor.u32 %v5518_v4, %v4974_v3  ;;  %v4979_v7 = vor.u32 %v5514_v45, %v4976_v39 }
 0x3ef   : > { %3742 = vmatmul.bf16.gmra.mxu3 %v4915_v13 }
 0x3f0   : > { %3866 = vst [vmem:[%s6323_s19 + $0x138] sm:$0xff] %v3802_v30 }
 0x3f1   : > { %v3534_v36 = vpop.f32.mrf.mxu2  ;;  %v3198_v27 = vpop.f32.mrf.mxu0 }
 0x3f2   : > { %v3703_v23 = vpop.f32.mrf.mxu3  ;;  %v3535_v16 = vadd.f32 %v3534_v36, %v3366_v44  ;;  %v3367_v24 = vpop.f32.mrf.mxu1  ;;  %v3199_v21 = vadd.f32 %v3198_v27, %v6204_v10  ;;  %v6836_v44 = vld [vmem:[#allocation4_spill] sm:$0xff] }
 0x3f4   : > { %v3704_v6 = vadd.f32 %v3703_v23, %v3535_v16  ;;  %v3368_v48 = vadd.f32 %v3367_v24, %v3199_v21 }
 0x3f6   : > { %v3803_v28 = vadd.f32 %v3704_v6, %v339_v29 }
 0x3f8   : > { %3867 = vst [vmem:[%s6323_s19 + $0x140] sm:$0xff] %v3803_v28  ;;  %v6837_v28 = vld [vmem:[#allocation5_spill] sm:$0xff] }
 0x3f9   : > { %v3536_v11 = vpop.f32.mrf.mxu2  ;;  %v3201_v5 = vpop.f32.mrf.mxu0 }
 0x3fa   : > { %v3705_v52 = vpop.f32.mrf.mxu3  ;;  %v3537_v60 = vadd.f32 %v3536_v11, %v3368_v48  ;;  %v3370_v10 = vpop.f32.mrf.mxu1  ;;  %v3202_v41 = vadd.f32 %v3201_v5, %v6834_v33  ;;  %v5006_v48 = vld [vmem:[%s5766_s12 + $0x7d8] sm:$0xf] }
 0x3fb   : > { %v5526_v11 = vld [vmem:[%s5766_s12 + $0x7f4] sm:$0xf0] }
 0x3fc   : > { %v3706_v54 = vadd.f32 %v3705_v52, %v3537_v60  ;;  %3240 = vmatmul.bf16.gmra.mxu0 %v4935_v43  ;;  %v3371_v34 = vadd.f32 %v3370_v10, %v3202_v41  ;;  %v5522_v52 = vld [vmem:[%s5766_s12 + $0x7dc] sm:$0xf]  ;;  %v4999_v10 = vor.u32 %v5525_v17, %v4998_v42  ;;  %v5007_v33 = vor.u32 %v5526_v11, %v5006_v48  ;;  %v6842_v17 = vld [vmem:[#allocation10_spill] sm:$0xff] }
 0x3fd   : > { %3409 = vmatmul.bf16.gmra.mxu1 %v4939_v55  ;;  %v5008_v43 = vld [vmem:[%s5766_s12 + $0x7f8] sm:$0xf0] }
 0x3fe   : > { %v3804_v26 = vadd.f32 %v3706_v54, %v340_v8  ;;  %3578 = vmatmul.bf16.gmra.mxu2 %v4943_v20  ;;  %v5003_v20 = vor.u32 %v5521_v31, %v5000_v61  ;;  %v5011_v41 = vor.u32 %v5522_v52, %v5008_v43 }
 0x3ff   : > { %3747 = vmatmul.bf16.gmra.mxu3 %v4947_v18 }
 0x400   : > { %3868 = vst [vmem:[%s6323_s19 + $0x148] sm:$0xff] %v3804_v26  ;;  %v344_v26 = vld [vmem:[%s6323_s19 + $0x168] sm:$0xff] }
 0x401   : > { %v3539_v12 = vpop.f32.mrf.mxu2  ;;  %v3203_v50 = vpop.f32.mrf.mxu0 }
 0x402   : > { %v3708_v51 = vpop.f32.mrf.mxu3  ;;  %v3540_v22 = vadd.f32 %v3539_v12, %v3371_v34  ;;  %v3372_v56 = vpop.f32.mrf.mxu1  ;;  %v3204_v14 = vadd.f32 %v3203_v50, %v6835_v58  ;;  %v6838_v12 = vld [vmem:[#allocation6_spill] sm:$0xff] }
 0x404   : > { %v3709_v40 = vadd.f32 %v3708_v51, %v3540_v22  ;;  %v3373_v38 = vadd.f32 %v3372_v56, %v3204_v14 }
 0x406   : > { %v3805_v15 = vadd.f32 %v3709_v40, %v341_v63 }
 0x408   : > { %3869 = vst [vmem:[%s6323_s19 + $0x150] sm:$0xff] %v3805_v15  ;;  %v6839_v15 = vld [vmem:[#allocation7_spill] sm:$0xff] }
 0x409   : > { %v3541_v2 = vpop.f32.mrf.mxu2  ;;  %v3206_v59 = vpop.f32.mrf.mxu0 }
 0x40a   : > { %v3710_v0 = vpop.f32.mrf.mxu3  ;;  %v3542_v1 = vadd.f32 %v3541_v2, %v3373_v38  ;;  %v3375_v13 = vpop.f32.mrf.mxu1  ;;  %v3207_v36 = vadd.f32 %v3206_v59, %v6836_v44 }
 0x40c   : > { %v3711_v30 = vadd.f32 %v3710_v0, %v3542_v1  ;;  %3245 = vmatmul.bf16.gmra.mxu0 %v4967_v9  ;;  %v3376_v16 = vadd.f32 %v3375_v13, %v3207_v36  ;;  %v346_v0 = vld [vmem:[%s6323_s19 + $0x178] sm:$0xff]  ;;  %v347_v36 = vld [vmem:[%s6323_s19 + $0x180] sm:$0xff] }
 0x40d   : > { %3414 = vmatmul.bf16.gmra.mxu1 %v4971_v49  ;;  %v6840_v49 = vld [vmem:[#allocation8_spill] sm:$0xff] }
 0x40e   : > { %v3806_v23 = vadd.f32 %v3711_v30, %v342_v62  ;;  %3583 = vmatmul.bf16.gmra.mxu2 %v4975_v35 }
 0x40f   : > { %3752 = vmatmul.bf16.gmra.mxu3 %v4979_v7 }
 0x410   : > { %3870 = vst [vmem:[%s6323_s19 + $0x158] sm:$0xff] %v3806_v23 }
 0x411   : > { %v3544_v27 = vpop.f32.mrf.mxu2  ;;  %v3208_v6 = vpop.f32.mrf.mxu0 }
 0x412   : > { %v3713_v24 = vpop.f32.mrf.mxu3  ;;  %v3545_v29 = vadd.f32 %v3544_v27, %v3376_v16  ;;  %v3377_v21 = vpop.f32.mrf.mxu1  ;;  %v3209_v53 = vadd.f32 %v3208_v6, %v6837_v28  ;;  %v6841_v16 = vld [vmem:[#allocation9_spill] sm:$0xff] }
 0x414   : > { %v3714_v37 = vadd.f32 %v3713_v24, %v3545_v29  ;;  %v3378_v55 = vadd.f32 %v3377_v21, %v3209_v53  ;;  %v348_v53 = vld [vmem:[%s6323_s19 + $0x188] sm:$0xff] }
 0x416   : > { %v3807_v57 = vadd.f32 %v3714_v37, %v343_v46 }
 0x418   : > { %3871 = vst [vmem:[%s6323_s19 + $0x160] sm:$0xff] %v3807_v57 }
 0x419   : > { %v3546_v60 = vpop.f32.mrf.mxu2  ;;  %v3211_v8 = vpop.f32.mrf.mxu0 }
 0x41a   : > { %v3715_v5 = vpop.f32.mrf.mxu3  ;;  %v3547_v18 = vadd.f32 %v3546_v60, %v3378_v55  ;;  %v3380_v54 = vpop.f32.mrf.mxu1  ;;  %v3212_v51 = vadd.f32 %v3211_v8, %v6838_v12  ;;  %v349_v60 = vld [vmem:[%s6323_s19 + $0x190] sm:$0xff]  ;;  %v350_v12 = vld [vmem:[%s6323_s19 + $0x198] sm:$0xff] }
 0x41c   : > { %v3716_v34 = vadd.f32 %v3715_v5, %v3547_v18  ;;  %3250 = vmatmul.bf16.gmra.mxu0 %v4999_v10  ;;  %v3381_v50 = vadd.f32 %v3380_v54, %v3212_v51  ;;  %v6843_v10 = vld [vmem:[#allocation11_spill] sm:$0xff] }
 0x41d   : > { %3419 = vmatmul.bf16.gmra.mxu1 %v5003_v20 }
 0x41e   : > { %v3808_v22 = vadd.f32 %v3716_v34, %v344_v26  ;;  %3588 = vmatmul.bf16.gmra.mxu2 %v5007_v33 }
 0x41f   : > { %3757 = vmatmul.bf16.gmra.mxu3 %v5011_v41 }
 0x420   : > { %3872 = vst [vmem:[%s6323_s19 + $0x168] sm:$0xff] %v3808_v22  ;;  %v6844_v22 = vld [vmem:[#allocation12_spill] sm:$0xff] }
 0x421   : > { %v3549_v56 = vpop.f32.mrf.mxu2  ;;  %v3213_v58 = vpop.f32.mrf.mxu0 }
 0x422   : > { %v3718_v63 = vpop.f32.mrf.mxu3  ;;  %v3550_v40 = vadd.f32 %v3549_v56, %v3381_v50  ;;  %v3382_v14 = vpop.f32.mrf.mxu1  ;;  %v3214_v32 = vadd.f32 %v3213_v58, %v6839_v15  ;;  %v351_v15 = vld [vmem:[%s6323_s19 + $0x1a0] sm:$0xff] }
 0x424   : > { %v3719_v19 = vadd.f32 %v3718_v63, %v3550_v40  ;;  %v3383_v3 = vadd.f32 %v3382_v14, %v3214_v32 }
 0x426   : > { %v3809_v25 = vadd.f32 %v3719_v19, %v345_v47 }
 0x428   : > { %3873 = vst [vmem:[%s6323_s19 + $0x170] sm:$0xff] %v3809_v25  ;;  %v6845_v25 = vld [vmem:[#allocation13_spill] sm:$0xff] }
 0x429   : > { %v3551_v4 = vpop.f32.mrf.mxu2  ;;  %v3216_v38 = vpop.f32.mrf.mxu0 }
 0x42a   : > { %v3720_v45 = vpop.f32.mrf.mxu3  ;;  %v3552_v39 = vadd.f32 %v3551_v4, %v3383_v3  ;;  %v3385_v2 = vpop.f32.mrf.mxu1  ;;  %v3217_v1 = vadd.f32 %v3216_v38, %v6840_v49  ;;  %v352_v49 = vld [vmem:[%s6323_s19 + $0x1a8] sm:$0xff] }
 0x42c   : > { %v3721_v9 = vadd.f32 %v3720_v45, %v3552_v39  ;;  %v3386_v13 = vadd.f32 %v3385_v2, %v3217_v1 }
 0x42e   : > { %v3810_v59 = vadd.f32 %v3721_v9, %v346_v0 }
 0x430   : > { %3874 = vst [vmem:[%s6323_s19 + $0x178] sm:$0xff] %v3810_v59  ;;  %v6846_v59 = vld [vmem:[#allocation14_spill] sm:$0xff] }
 0x431   : > { %v3554_v35 = vpop.f32.mrf.mxu2  ;;  %v3218_v30 = vpop.f32.mrf.mxu0 }
 0x432   : > { %v3723_v7 = vpop.f32.mrf.mxu3  ;;  %v3555_v62 = vadd.f32 %v3554_v35, %v3386_v13  ;;  %v3387_v44 = vpop.f32.mrf.mxu1  ;;  %v3219_v27 = vadd.f32 %v3218_v30, %v6841_v16  ;;  %v353_v16 = vld [vmem:[%s6323_s19 + $0x1b0] sm:$0xff] }
 0x434   : > { %v3724_v23 = vadd.f32 %v3723_v7, %v3555_v62  ;;  %v3388_v29 = vadd.f32 %v3387_v44, %v3219_v27 }
 0x436   : > { %v3811_v24 = vadd.f32 %v3724_v23, %v347_v36 }
 0x438   : > { %3875 = vst [vmem:[%s6323_s19 + $0x180] sm:$0xff] %v3811_v24  ;;  %v6847_v24 = vld [vmem:[#allocation15_spill] sm:$0xff] }
 0x439   : > { %v3556_v6 = vpop.f32.mrf.mxu2  ;;  %v3221_v37 = vpop.f32.mrf.mxu0 }
 0x43a   : > { %v3725_v21 = vpop.f32.mrf.mxu3  ;;  %v3557_v46 = vadd.f32 %v3556_v6, %v3388_v29  ;;  %v3390_v28 = vpop.f32.mrf.mxu1  ;;  %v3222_v57 = vadd.f32 %v3221_v37, %v6842_v17  ;;  %v354_v17 = vld [vmem:[%s6323_s19 + $0x1b8] sm:$0xff] }
 0x43c   : > { %v3726_v42 = vadd.f32 %v3725_v21, %v3557_v46  ;;  %v3391_v61 = vadd.f32 %v3390_v28, %v3222_v57 }
 0x43e   : > { %v3812_v31 = vadd.f32 %v3726_v42, %v348_v53 }
 0x440   : > { %3876 = vst [vmem:[%s6323_s19 + $0x188] sm:$0xff] %v3812_v31  ;;  %v6848_v31 = vld [vmem:[#allocation16_spill] sm:$0xff] }
 0x441   : > { %v3559_v48 = vpop.f32.mrf.mxu2  ;;  %v3223_v43 = vpop.f32.mrf.mxu0 }
 0x442   : > { %v3728_v11 = vpop.f32.mrf.mxu3  ;;  %v3560_v52 = vadd.f32 %v3559_v48, %v3391_v61  ;;  %v3392_v55 = vpop.f32.mrf.mxu1  ;;  %v3224_v20 = vadd.f32 %v3223_v43, %v6843_v10  ;;  %v355_v10 = vld [vmem:[%s6323_s19 + $0x1c0] sm:$0xff] }
 0x444   : > { %v3729_v5 = vadd.f32 %v3728_v11, %v3560_v52  ;;  %v3393_v8 = vadd.f32 %v3392_v55, %v3224_v20 }
 0x446   : > { %v3813_v18 = vadd.f32 %v3729_v5, %v349_v60 }
 0x448   : > { %3877 = vst [vmem:[%s6323_s19 + $0x190] sm:$0xff] %v3813_v18  ;;  %v6849_v18 = vld [vmem:[#allocation17_spill] sm:$0xff] }
 0x449   : > { %v3561_v54 = vpop.f32.mrf.mxu2  ;;  %v3226_v26 = vpop.f32.mrf.mxu0 }
 0x44a   : > { %v3730_v33 = vpop.f32.mrf.mxu3  ;;  %v3562_v41 = vadd.f32 %v3561_v54, %v3393_v8  ;;  %v3395_v34 = vpop.f32.mrf.mxu1  ;;  %v3227_v50 = vadd.f32 %v3226_v26, %v6844_v22  ;;  %v356_v22 = vld [vmem:[%s6323_s19 + $0x1c8] sm:$0xff] }
 0x44c   : > { %v3731_v51 = vadd.f32 %v3730_v33, %v3562_v41  ;;  %v3396_v63 = vadd.f32 %v3395_v34, %v3227_v50 }
 0x44e   : > { %v3814_v56 = vadd.f32 %v3731_v51, %v350_v12 }
 0x450   : > { %3878 = vst [vmem:[%s6323_s19 + $0x198] sm:$0xff] %v3814_v56  ;;  %v6850_v56 = vld [vmem:[#allocation18_spill] sm:$0xff] }
 0x451   : > { %v3564_v40 = vpop.f32.mrf.mxu2  ;;  %v3228_v47 = vpop.f32.mrf.mxu0 }
 0x452   : > { %v3733_v58 = vpop.f32.mrf.mxu3  ;;  %v3565_v14 = vadd.f32 %v3564_v40, %v3396_v63  ;;  %v3397_v19 = vpop.f32.mrf.mxu1  ;;  %v3229_v3 = vadd.f32 %v3228_v47, %v6845_v25  ;;  %v357_v25 = vld [vmem:[%s6323_s19 + $0x1d0] sm:$0xff] }
 0x454   : > { %v3734_v32 = vadd.f32 %v3733_v58, %v3565_v14  ;;  %v3398_v45 = vadd.f32 %v3397_v19, %v3229_v3 }
 0x456   : > { %v3815_v4 = vadd.f32 %v3734_v32, %v351_v15 }
 0x458   : > { %3879 = vst [vmem:[%s6323_s19 + $0x1a0] sm:$0xff] %v3815_v4  ;;  %v6851_v4 = vld [vmem:[#allocation19_spill] sm:$0xff] }
 0x459   : > { %v3566_v39 = vpop.f32.mrf.mxu2  ;;  %v3231_v0 = vpop.f32.mrf.mxu0 }
 0x45a   : > { %v3735_v38 = vpop.f32.mrf.mxu3  ;;  %v3567_v2 = vadd.f32 %v3566_v39, %v3398_v45  ;;  %v3400_v9 = vpop.f32.mrf.mxu1  ;;  %v3232_v13 = vadd.f32 %v3231_v0, %v6846_v59  ;;  %v358_v59 = vld [vmem:[%s6323_s19 + $0x1d8] sm:$0xff] }
 0x45c   : > { %v3736_v1 = vadd.f32 %v3735_v38, %v3567_v2  ;;  %v3401_v7 = vadd.f32 %v3400_v9, %v3232_v13 }
 0x45e   : > { %v3816_v35 = vadd.f32 %v3736_v1, %v352_v49 }
 0x460   : > { %3880 = vst [vmem:[%s6323_s19 + $0x1a8] sm:$0xff] %v3816_v35  ;;  %v6852_v35 = vld [vmem:[#allocation20_spill] sm:$0xff] }
 0x461   : > { %v3569_v62 = vpop.f32.mrf.mxu2  ;;  %v3233_v36 = vpop.f32.mrf.mxu0 }
 0x462   : > { %v3738_v30 = vpop.f32.mrf.mxu3  ;;  %v3570_v44 = vadd.f32 %v3569_v62, %v3401_v7  ;;  %v3402_v23 = vpop.f32.mrf.mxu1  ;;  %v3234_v29 = vadd.f32 %v3233_v36, %v6847_v24 }
 0x464   : > { %v3739_v27 = vadd.f32 %v3738_v30, %v3570_v44  ;;  %v3403_v21 = vadd.f32 %v3402_v23, %v3234_v29 }
 0x466   : > { %v3817_v6 = vadd.f32 %v3739_v27, %v353_v16  ;;  %v359_v27 = vld [vmem:[%s6323_s19 + $0x1e0] sm:$0xff] }
 0x468   : > { %3881 = vst [vmem:[%s6323_s19 + $0x1b0] sm:$0xff] %v3817_v6  ;;  %v6853_v6 = vld [vmem:[#allocation21_spill] sm:$0xff] }
 0x469   : > { %v3571_v46 = vpop.f32.mrf.mxu2  ;;  %v3236_v53 = vpop.f32.mrf.mxu0 }
 0x46a   : > { %v3740_v37 = vpop.f32.mrf.mxu3  ;;  %v3572_v28 = vadd.f32 %v3571_v46, %v3403_v21  ;;  %v3405_v42 = vpop.f32.mrf.mxu1  ;;  %v3237_v61 = vadd.f32 %v3236_v53, %v6848_v31 }
 0x46c   : > { %v3741_v57 = vadd.f32 %v3740_v37, %v3572_v28  ;;  %v3406_v11 = vadd.f32 %v3405_v42, %v3237_v61  ;;  %v6854_v61 = vld [vmem:[#allocation22_spill] sm:$0xff] }
 0x46e   : > { %v3818_v48 = vadd.f32 %v3741_v57, %v354_v17  ;;  %v360_v57 = vld [vmem:[%s6323_s19 + $0x1e8] sm:$0xff] }
 0x470   : > { %3882 = vst [vmem:[%s6323_s19 + $0x1b8] sm:$0xff] %v3818_v48 }
 0x471   : > { %v3574_v52 = vpop.f32.mrf.mxu2  ;;  %v3238_v60 = vpop.f32.mrf.mxu0 }
 0x472   : > { %v3743_v43 = vpop.f32.mrf.mxu3  ;;  %v3575_v55 = vadd.f32 %v3574_v52, %v3406_v11  ;;  %v3407_v5 = vpop.f32.mrf.mxu1  ;;  %v3239_v8 = vadd.f32 %v3238_v60, %v6849_v18 }
 0x474   : > { %v3744_v20 = vadd.f32 %v3743_v43, %v3575_v55  ;;  %v3408_v33 = vadd.f32 %v3407_v5, %v3239_v8  ;;  %v6855_v8 = vld [vmem:[#allocation23_spill] sm:$0xff] }
 0x476   : > { %v3819_v54 = vadd.f32 %v3744_v20, %v355_v10  ;;  %v361_v20 = vld [vmem:[%s6323_s19 + $0x1f0] sm:$0xff] }
 0x478   : > { %3883 = vst [vmem:[%s6323_s19 + $0x1c0] sm:$0xff] %v3819_v54 }
 0x479   : > { %v3576_v41 = vpop.f32.mrf.mxu2  ;;  %v3241_v12 = vpop.f32.mrf.mxu0 }
 0x47a   : > { %v3745_v26 = vpop.f32.mrf.mxu3  ;;  %v3577_v34 = vadd.f32 %v3576_v41, %v3408_v33  ;;  %v3410_v51 = vpop.f32.mrf.mxu1  ;;  %v3242_v63 = vadd.f32 %v3241_v12, %v6850_v56 }
 0x47c   : > { %v3746_v50 = vadd.f32 %v3745_v26, %v3577_v34  ;;  %v3411_v58 = vadd.f32 %v3410_v51, %v3242_v63  ;;  %v362_v51 = vld [vmem:[%s6323_s19 + $0x1f8] sm:$0xff] }
 0x47e   : > { %v3820_v40 = vadd.f32 %v3746_v50, %v356_v22 }
 0x480   : > { %3884 = vst [vmem:[%s6323_s19 + $0x1c8] sm:$0xff] %v3820_v40 }
 0x481   : > { %v3579_v14 = vpop.f32.mrf.mxu2  ;;  %v3243_v15 = vpop.f32.mrf.mxu0 }
 0x482   : > { %v3748_v47 = vpop.f32.mrf.mxu3  ;;  %v3580_v19 = vadd.f32 %v3579_v14, %v3411_v58  ;;  %v3412_v32 = vpop.f32.mrf.mxu1  ;;  %v3244_v45 = vadd.f32 %v3243_v15, %v6851_v4 }
 0x484   : > { %v3749_v3 = vadd.f32 %v3748_v47, %v3580_v19  ;;  %v3413_v38 = vadd.f32 %v3412_v32, %v3244_v45 }
 0x486   : > { %v3821_v39 = vadd.f32 %v3749_v3, %v357_v25 }
 0x488   : > { %3885 = vst [vmem:[%s6323_s19 + $0x1d0] sm:$0xff] %v3821_v39 }
 0x489   : > { %v3581_v2 = vpop.f32.mrf.mxu2  ;;  %v3246_v49 = vpop.f32.mrf.mxu0 }
 0x48a   : > { %v3750_v0 = vpop.f32.mrf.mxu3  ;;  %v3582_v9 = vadd.f32 %v3581_v2, %v3413_v38  ;;  %v3415_v1 = vpop.f32.mrf.mxu1  ;;  %v3247_v7 = vadd.f32 %v3246_v49, %v6852_v35 }
 0x48c   : > { %v3751_v13 = vadd.f32 %v3750_v0, %v3582_v9  ;;  %v3416_v30 = vadd.f32 %v3415_v1, %v3247_v7 }
 0x48e   : > { %v3822_v62 = vadd.f32 %v3751_v13, %v358_v59 }
 0x490   : > { %3886 = vst [vmem:[%s6323_s19 + $0x1d8] sm:$0xff] %v3822_v62 }
 0x491   : > { %v3584_v44 = vpop.f32.mrf.mxu2  ;;  %v3248_v16 = vpop.f32.mrf.mxu0 }
 0x492   : > { %v3753_v36 = vpop.f32.mrf.mxu3  ;;  %v3585_v23 = vadd.f32 %v3584_v44, %v3416_v30  ;;  %v3417_v24 = vpop.f32.mrf.mxu1  ;;  %v3249_v21 = vadd.f32 %v3248_v16, %v6853_v6 }
 0x494   : > { %v3754_v29 = vadd.f32 %v3753_v36, %v3585_v23  ;;  %v3418_v37 = vadd.f32 %v3417_v24, %v3249_v21 }
 0x496   : > { %v3823_v46 = vadd.f32 %v3754_v29, %v359_v27 }
 0x498   : > { %3887 = vst [vmem:[%s6323_s19 + $0x1e0] sm:$0xff] %v3823_v46 }
 0x499   : > { %v3586_v28 = vpop.f32.mrf.mxu2  ;;  %v3251_v17 = vpop.f32.mrf.mxu0 }
 0x49a   : > { %v3755_v53 = vpop.f32.mrf.mxu3  ;;  %v3587_v42 = vadd.f32 %v3586_v28, %v3418_v37  ;;  %v3252_v48 = vadd.f32 %v3251_v17, %v6854_v61  ;;  %v3420_v11 = vpop.f32.mrf.mxu1 }
 0x49c   : > { %v3756_v31 = vadd.f32 %v3755_v53, %v3587_v42  ;;  %v3421_v43 = vadd.f32 %v3420_v11, %v3252_v48 }
 0x49e   : > { %v3824_v52 = vadd.f32 %v3756_v31, %v360_v57 }
 0x4a0   : > { %3888 = vst [vmem:[%s6323_s19 + $0x1e8] sm:$0xff] %v3824_v52 }
 0x4a1   : > { %v3589_v55 = vpop.f32.mrf.mxu2  ;;  %v3253_v10 = vpop.f32.mrf.mxu0 }
 0x4a2   : > { %v3758_v60 = vpop.f32.mrf.mxu3  ;;  %v3590_v5 = vadd.f32 %v3589_v55, %v3421_v43  ;;  %v3254_v54 = vadd.f32 %v3253_v10, %v6855_v8  ;;  %v3422_v41 = vpop.f32.mrf.mxu1 }
 0x4a4   : > { %v3759_v18 = vadd.f32 %v3758_v60, %v3590_v5  ;;  %v3423_v26 = vadd.f32 %v3422_v41, %v3254_v54 }
 0x4a6   : > { %v3825_v33 = vadd.f32 %v3759_v18, %v361_v20 }
 0x4a8   : > { %3889 = vst [vmem:[%s6323_s19 + $0x1f0] sm:$0xff] %v3825_v33 }
 0x4a9   : > { %v3591_v34 = vpop.f32.mrf.mxu2 }
 0x4aa   : > { %v3592_v12 = vadd.f32 %v3591_v34, %v3423_v26  ;;  %v3760_v22 = vpop.f32.mrf.mxu3 }
 0x4ac   : > { %v3761_v50 = vadd.f32 %v3760_v22, %v3592_v12 }
 0x4ae   : > { %v3826_v56 = vadd.f32 %v3761_v50, %v362_v51 }
 0x4b0   : > { %3890 = vst [vmem:[%s6323_s19 + $0x1f8] sm:$0xff] %v3826_v56 }
 0x4b1 PF: > { %s13_s14 = sadd.s32 1, %s5639_s14   ;;  %s6856_s12 = smov %s5635_s13 }
 0x4b2   : > { %p10_p5 = scmp.ge.s32.totalorder %s13_s14, 4   ;;  %s6857_s13 = smov %s6859_s15 }
 0x4b4   :  { %12 = sbr.rel (!%p10_p5) target bundleno = 2 (0x2), region = 69 }

</bundles_post_ra>
